<compile_context>
chip_gen: v7x
topology: tpu7x:2x2x1
jax: 0.10.0
libtpu: 0.0.40
codegen_flags: <defaults>
</compile_context>

<pallas_src>
import functools

import jax
import jax.numpy as jnp
from jax.experimental import pallas as pl
from jax.experimental.pallas import tpu as pltpu


def _conv2d_same_kernel(x_ref, w_ref, b_ref, *rest, KH, KW, H, W, ph, pw,
                        NB, use_scale, m_chunk):
    # x_ref    : (NB, H, W, Cin)        unpadded input batch tile (compute dtype)
    # w_ref    : (KH*KW*Cin, TCO)       im2col-flattened weights (compute dtype)
    # b_ref    : (1, TCO)               float32 bias
    # g_ref    : (1, TCO)               float32 per-channel scale (if use_scale)
    # o_ref    : (NB*H*W, TCO)          output tile (lane-dense)
    # xpad_ref : (NB, Hp, Wp, Cin)      VMEM scratch: zero-halo padded input
    # col_ref  : (NB*H*W, KH*KW*Cin)    VMEM scratch: im2col matrix
    if use_scale:
        g_ref, o_ref, xpad_ref, col_ref = rest
    else:
        o_ref, xpad_ref, col_ref = rest

    Cin = x_ref.shape[3]
    Hp = H + KH - 1
    Wp = W + KW - 1
    M = NB * H * W

    co = pl.program_id(1)

    # Build padded input + im2col once per batch tile; the Cout-tile axis is
    # the inner ("arbitrary") grid axis, so this is reused across all Cout
    # tiles on the same core (x_ref itself also stays VMEM-resident).
    @pl.when(co == 0)
    def _build():
        xpad_ref[...] = jnp.zeros_like(xpad_ref)        # in-kernel halo padding
        xpad_ref[:, ph:ph + H, pw:pw + W, :] = x_ref[...]
        for kw in range(KW):
            # One sublane-shifting W slice + (Hp,W,Cin)->(Hp*W,Cin) relayout
            # per kw; the KH taps below are free static row slices of it.
            xw = xpad_ref[:, :, kw:kw + W, :].reshape(NB, Hp * W, Cin)
            for kh in range(KH):
                tap = kh * KW + kw
                col_ref[:, tap * Cin:(tap + 1) * Cin] = (
                    xw[:, kh * W:kh * W + H * W, :].reshape(M, Cin))

    w = w_ref[...]                                      # (KH*KW*Cin, TCO)
    b = b_ref[...]                                      # (1, TCO) float32
    if use_scale:
        g = g_ref[...]

    # One deep contraction (K = KH*KW*Cin) per output tile, chunked along M to
    # bound the f32 result live value; f32 accumulation on the MXU.
    for c in range(M // m_chunk):
        m0 = c * m_chunk
        out = jax.lax.dot_general(
            col_ref[m0:m0 + m_chunk, :], w,
            dimension_numbers=(((1,), (0,)), ((), ())),
            preferred_element_type=jnp.float32)
        out = out + b                                   # f32 bias add
        if use_scale:
            out = out * g                               # f32 per-channel scale
        o_ref[m0:m0 + m_chunk, :] = out.astype(o_ref.dtype)


def _pick_m_chunk(M):
    for c in (512, 256, 128, 64, 32, 16, 8):
        if M % c == 0:
            return c
    return M


def _pick_batch_block(N, H, W, KH, KW, Cin, TCO, csize, osize, budget_bytes):
    """Largest batch tile NB (dividing N) whose VMEM footprint fits the budget."""
    Hp, Wp = H + KH - 1, W + KW - 1
    per_elem = (H * W * KH * KW * Cin * csize      # im2col scratch
                + Hp * Wp * Cin * csize            # padded-input scratch
                + 2 * H * W * Cin * csize          # x block (double-buffered)
                + 2 * H * W * TCO * osize)         # out block (double-buffered)
    fixed = 2 * KH * KW * Cin * TCO * csize + 4 * 2 * TCO * 4   # w + bias/g
    nb_max = max(1, (budget_bytes - fixed) // per_elem)
    nb = 1
    for d in range(1, N + 1):
        if N % d != 0 or d > nb_max:
            continue
        if d != N and (d * H * W) % 8 != 0:        # (8,128) rule on out block
            continue
        nb = d
    if (nb * H * W) % 8 != 0:                      # fall back to full-extent block
        nb = N
    return nb


def conv2d_pallas(x_nchw, weight_oihw, bias, g=None, use_scale=False,
                  compute_dtype=jnp.bfloat16, batch_block=None):
    """Forward of the `conv2d` module: y = conv(x) + bias, optionally * g.

    Module defaults only: stride=1, dilation=1, pad='same'.
    compute_dtype: MXU input dtype (bf16 default; accumulation is always f32).
    # TODO(synk): spec_norm=True (nn.utils.spectral_norm) is a weight
    # reparameterization with no in-kernel equivalent; apply it to the weight
    # before calling this function if needed.
    """
    N, Cin, H, W = x_nchw.shape
    Cout, Cin_w, KH, KW = weight_oihw.shape
    assert Cin == Cin_w, "weight Cin mismatch"

    out_dtype = x_nchw.dtype
    if compute_dtype is None:
        compute_dtype = x_nchw.dtype

    # PyTorch padding='same' (stride=1, dilation=1): left=(k-1)//2, rest right.
    ph = (KH - 1) // 2
    pw = (KW - 1) // 2

    # NCHW -> NHWC (+ cast). Halo padding now happens inside the kernel.
    # TODO(synk): in an all-NHWC pipeline this transpose (and the inverse one
    # on the way out) disappears; kept here to preserve the NCHW interface.
    x_nhwc = jnp.transpose(x_nchw, (0, 2, 3, 1)).astype(compute_dtype)

    # Weights: OIHW -> HWIO -> (KH*KW*Cin, Cout_pad), matching im2col order.
    # TODO(synk): tiny-Cout stem layers (Cout=8/16) waste MXU columns / output
    # HBM on the 128-pad; a dedicated small-Cout path would avoid it.
    Cout_pad = ((Cout + 127) // 128) * 128
    pad_co = Cout_pad - Cout
    w_flat = jnp.transpose(weight_oihw, (2, 3, 1, 0)).astype(compute_dtype)
    w_flat = jnp.pad(w_flat, ((0, 0), (0, 0), (0, 0), (0, pad_co)))
    w_flat = w_flat.reshape(KH * KW * Cin, Cout_pad)
    b2 = jnp.pad(bias.astype(jnp.float32).reshape(1, Cout),
                 ((0, 0), (0, pad_co)))

    TCO = 256 if Cout_pad % 256 == 0 else 128
    n_co = Cout_pad // TCO

    # VMEM budget: ~3/4 of physical capacity (v7x 64 MiB vs v5e/v6e 128 MiB),
    # capped; leave headroom for pipeline internals and dot temporaries.
    try:
        vmem_cap = int(pltpu.get_tpu_info().vmem_capacity_bytes)
    except Exception:
        vmem_cap = 64 * 1024 * 1024
    vmem_limit = max(32 * 1024 * 1024, min(vmem_cap * 3 // 4, 96 * 1024 * 1024))
    budget = vmem_limit - 12 * 1024 * 1024

    csize = jnp.dtype(compute_dtype).itemsize
    osize = jnp.dtype(out_dtype).itemsize
    if batch_block is None:
        NB = _pick_batch_block(N, H, W, KH, KW, Cin, TCO, csize, osize, budget)
    else:
        NB = batch_block
        assert N % NB == 0
        assert NB == N or (NB * H * W) % 8 == 0
    n_b = N // NB
    M = NB * H * W
    m_chunk = _pick_m_chunk(M)
    Hp, Wp = H + KH - 1, W + KW - 1

    in_specs = [
        pl.BlockSpec((NB, H, W, Cin), lambda b, co: (b, 0, 0, 0)),
        pl.BlockSpec((KH * KW * Cin, TCO), lambda b, co: (0, co)),
        pl.BlockSpec((1, TCO), lambda b, co: (0, co)),
    ]
    args = [x_nhwc, w_flat, b2]
    if use_scale:
        assert g is not None, "use_scale=True requires g"
        g2 = jnp.pad(g.reshape(1, Cout).astype(jnp.float32),
                     ((0, 0), (0, pad_co)), constant_values=1.0)
        in_specs.append(pl.BlockSpec((1, TCO), lambda b, co: (0, co)))
        args.append(g2)
    # (g is not DMA'd at all when use_scale=False.)

    kernel = functools.partial(_conv2d_same_kernel, KH=KH, KW=KW, H=H, W=W,
                               ph=ph, pw=pw, NB=NB, use_scale=use_scale,
                               m_chunk=m_chunk)

    out2d = pl.pallas_call(
        kernel,
        out_shape=jax.ShapeDtypeStruct((N * H * W, Cout_pad), out_dtype),
        grid=(n_b, n_co),
        in_specs=in_specs,
        out_specs=pl.BlockSpec((M, TCO), lambda b, co: (b, co)),
        scratch_shapes=[
            pltpu.VMEM((NB, Hp, Wp, Cin), compute_dtype),       # padded input
            pltpu.VMEM((M, KH * KW * Cin), compute_dtype),      # im2col
        ],
        compiler_params=pltpu.CompilerParams(
            # Cout tiles are the inner, sequential ("arbitrary") axis so the
            # im2col scratch built under `co == 0` is valid for every Cout
            # tile on the same core; batch tiles are megacore-parallel.
            dimension_semantics=("parallel", "arbitrary"),
            vmem_limit_bytes=vmem_limit),
    )(*args)

    out = out2d.reshape(N, H, W, Cout_pad)[..., :Cout]
    # TODO(synk): the Cout slice and NHWC->NCHW transpose are extra HBM passes
    # only needed to preserve the PyTorch NCHW interface.
    return jnp.transpose(out, (0, 3, 1, 2))


def _reference(x, weight, bias, g=None, use_scale=False):
    y = jax.lax.conv_general_dilated(
        x.astype(jnp.float32), weight.astype(jnp.float32),
        window_strides=(1, 1), padding="SAME",
        dimension_numbers=("NCHW", "OIHW", "NCHW"))
    y = y + bias[None, :, None, None]
    if use_scale:
        y = y * g[None]
    return y


if __name__ == "__main__":
    key = jax.random.PRNGKey(0)
    kx, kwt, kg, kx2, kw2 = jax.random.split(key, 5)

    # Case 1: module defaults (use_scale=False), bf16-by-default MXU path.
    N, Cin, H, W = 2, 4, 16, 16
    Cout, KH, KW = 8, 3, 3
    fan_in = Cin * KH * KW
    x = jax.random.normal(kx, (N, Cin, H, W), jnp.float32)
    # default_init(init_scale=1.0): variance-scaling-style init (deterministic).
    weight = (1.0 / jnp.sqrt(jnp.float32(fan_in))) * jax.random.normal(
        kwt, (Cout, Cin, KH, KW), jnp.float32)
    bias = jnp.zeros((Cout,), jnp.float32)                # nn.init.zeros_(bias)
    g = 1.0 + 0.5 * jax.random.normal(kg, (Cout, 1, 1), jnp.float32)

    y_ref = _reference(x, weight, bias)
    y = jax.block_until_ready(conv2d_pallas(x, weight, bias))
    assert y.shape == (N, Cout, H, W)
    assert jnp.allclose(y, y_ref, rtol=5e-2, atol=5e-2)

    # Case 2: use_scale=True (per-channel scale after the bias add).
    y_s = jax.block_until_ready(
        conv2d_pallas(x, weight, bias, g=g, use_scale=True))
    y_s_ref = _reference(x, weight, bias, g=g, use_scale=True)
    assert jnp.allclose(y_s, y_s_ref, rtol=5e-2, atol=5e-2)

    # Case 3: explicit f32 compute path, tight tolerance.
    y_f32 = jax.block_until_ready(
        conv2d_pallas(x, weight, bias, compute_dtype=jnp.float32))
    assert jnp.allclose(y_f32, y_ref, rtol=1e-4, atol=1e-4)

    # Case 4: wider channels, multiple Cout tiles (n_co=3) and multiple batch
    # blocks (NB=2 of N=4) to exercise the pl.when(co==0) im2col reuse.
    N2, Cin2, H2, W2, Cout2 = 4, 64, 16, 16, 384
    fan_in2 = Cin2 * KH * KW
    x2 = jax.random.normal(kx2, (N2, Cin2, H2, W2), jnp.float32)
    weight2 = (1.0 / jnp.sqrt(jnp.float32(fan_in2))) * jax.random.normal(
        kw2, (Cout2, Cin2, KH, KW), jnp.float32)
    bias2 = 0.1 * jnp.ones((Cout2,), jnp.float32)
    y2 = jax.block_until_ready(
        conv2d_pallas(x2, weight2, bias2, compute_dtype=jnp.float32,
                      batch_block=2))
    y2_ref = _reference(x2, weight2, bias2)
    assert y2.shape == (N2, Cout2, H2, W2)
    assert jnp.allclose(y2, y2_ref, rtol=1e-3, atol=1e-3)

    # Case 4b: same layer on the default bf16 fast path.
    y2_bf = jax.block_until_ready(
        conv2d_pallas(x2, weight2, bias2, batch_block=2))
    assert jnp.allclose(y2_bf, y2_ref, rtol=5e-2, atol=5e-2)

    print("KERNEL_OK")
</pallas_src>

<mosaic_0001>
module attributes {stable_mosaic.version = 11 : i64} {
  func.func @_conv2d_same_kernel(%arg0: i32, %arg1: i32, %arg2: memref<2x16x16x4xbf16, #tpu.memory_space<vmem>>, %arg3: memref<36x128xbf16, #tpu.memory_space<vmem>>, %arg4: memref<1x128xf32, #tpu.memory_space<vmem>>, %arg5: memref<512x128xf32, #tpu.memory_space<vmem>>, %arg6: memref<2x18x18x4xbf16, #tpu.memory_space<vmem>>, %arg7: memref<512x36xbf16, #tpu.memory_space<vmem>>) attributes {dimension_semantics = [#tpu.dimension_semantics<parallel>, #tpu.dimension_semantics<arbitrary>], iteration_bounds = array<i64: 1, 1>, scalar_prefetch = 0 : i64, scratch_operands = 2 : i64, tpu.core_type = #tpu.core_type<tc>, window_params = [{transform_indices = @transform_0, window_bounds = array<i64: 2, 16, 16, 4>}, {transform_indices = @transform_1, window_bounds = array<i64: 36, 128>}, {transform_indices = @transform_2, window_bounds = array<i64: 1, 128>}, {transform_indices = @transform_3, window_bounds = array<i64: 512, 128>}]} {
    %c0_i32 = arith.constant 0 : i32
    %0 = arith.cmpi eq, %arg1, %c0_i32 : i32
    %1 = arith.extui %0 : i1 to i32
    %c0_i32_0 = arith.constant 0 : i32
    %2 = arith.cmpi ne, %1, %c0_i32_0 : i32
    scf.if %2 {
      %cst_8 = arith.constant 0.000000e+00 : bf16
      %10 = vector.broadcast %cst_8 : bf16 to vector<2x18x18x4xbf16>
      %c0_9 = arith.constant 0 : index
      %c0_10 = arith.constant 0 : index
      %c0_11 = arith.constant 0 : index
      %c0_12 = arith.constant 0 : index
      %11 = vector.load %arg6[%c0_9, %c0_10, %c0_11, %c0_12] : memref<2x18x18x4xbf16, #tpu.memory_space<vmem>>, vector<2x18x18x4xbf16>
      tpu.vector_store %arg6[%c0_9, %c0_10, %c0_11, %c0_12], %10 {strides = array<i32>} : memref<2x18x18x4xbf16, #tpu.memory_space<vmem>>, vector<2x18x18x4xbf16>,
      %c0_13 = arith.constant 0 : index
      %c0_14 = arith.constant 0 : index
      %c0_15 = arith.constant 0 : index
      %c0_16 = arith.constant 0 : index
      %12 = vector.load %arg2[%c0_13, %c0_14, %c0_15, %c0_16] : memref<2x16x16x4xbf16, #tpu.memory_space<vmem>>, vector<2x16x16x4xbf16>
      %c0_17 = arith.constant 0 : index
      %c1 = arith.constant 1 : index
      %c1_18 = arith.constant 1 : index
      %c0_19 = arith.constant 0 : index
      %13 = vector.load %arg6[%c0_17, %c1, %c1_18, %c0_19] : memref<2x18x18x4xbf16, #tpu.memory_space<vmem>>, vector<2x16x16x4xbf16>
      tpu.vector_store %arg6[%c0_17, %c1, %c1_18, %c0_19], %12 {strides = array<i32>} : memref<2x18x18x4xbf16, #tpu.memory_space<vmem>>, vector<2x16x16x4xbf16>,
      %c0_20 = arith.constant 0 : index
      %c0_21 = arith.constant 0 : index
      %c0_22 = arith.constant 0 : index
      %c0_23 = arith.constant 0 : index
      %14 = vector.load %arg6[%c0_20, %c0_21, %c0_22, %c0_23] : memref<2x18x18x4xbf16, #tpu.memory_space<vmem>>, vector<2x18x16x4xbf16>
      %15 = vector.shape_cast %14 : vector<2x18x16x4xbf16> to vector<2x288x4xbf16>
      %16 = vector.extract_strided_slice %15 {offsets = [0, 0, 0], sizes = [2, 256, 4], strides = [1, 1, 1]} : vector<2x288x4xbf16> to vector<2x256x4xbf16>
      %17 = vector.shape_cast %16 : vector<2x256x4xbf16> to vector<512x4xbf16>
      %c0_24 = arith.constant 0 : index
      %c0_25 = arith.constant 0 : index
      %18 = vector.load %arg7[%c0_24, %c0_25] : memref<512x36xbf16, #tpu.memory_space<vmem>>, vector<512x4xbf16>
      tpu.vector_store %arg7[%c0_24, %c0_25], %17 {strides = array<i32>} : memref<512x36xbf16, #tpu.memory_space<vmem>>, vector<512x4xbf16>,
      %19 = vector.extract_strided_slice %15 {offsets = [0, 16, 0], sizes = [2, 256, 4], strides = [1, 1, 1]} : vector<2x288x4xbf16> to vector<2x256x4xbf16>
      %20 = vector.shape_cast %19 : vector<2x256x4xbf16> to vector<512x4xbf16>
      %c0_26 = arith.constant 0 : index
      %c12 = arith.constant 12 : index
      %21 = vector.load %arg7[%c0_26, %c12] : memref<512x36xbf16, #tpu.memory_space<vmem>>, vector<512x4xbf16>
      tpu.vector_store %arg7[%c0_26, %c12], %20 {strides = array<i32>} : memref<512x36xbf16, #tpu.memory_space<vmem>>, vector<512x4xbf16>,
      %22 = vector.extract_strided_slice %15 {offsets = [0, 32, 0], sizes = [2, 256, 4], strides = [1, 1, 1]} : vector<2x288x4xbf16> to vector<2x256x4xbf16>
      %23 = vector.shape_cast %22 : vector<2x256x4xbf16> to vector<512x4xbf16>
      %c0_27 = arith.constant 0 : index
      %c24 = arith.constant 24 : index
      %24 = vector.load %arg7[%c0_27, %c24] : memref<512x36xbf16, #tpu.memory_space<vmem>>, vector<512x4xbf16>
      tpu.vector_store %arg7[%c0_27, %c24], %23 {strides = array<i32>} : memref<512x36xbf16, #tpu.memory_space<vmem>>, vector<512x4xbf16>,
      %c0_28 = arith.constant 0 : index
      %c0_29 = arith.constant 0 : index
      %c1_30 = arith.constant 1 : index
      %c0_31 = arith.constant 0 : index
      %25 = vector.load %arg6[%c0_28, %c0_29, %c1_30, %c0_31] : memref<2x18x18x4xbf16, #tpu.memory_space<vmem>>, vector<2x18x16x4xbf16>
      %26 = vector.shape_cast %25 : vector<2x18x16x4xbf16> to vector<2x288x4xbf16>
      %27 = vector.extract_strided_slice %26 {offsets = [0, 0, 0], sizes = [2, 256, 4], strides = [1, 1, 1]} : vector<2x288x4xbf16> to vector<2x256x4xbf16>
      %28 = vector.shape_cast %27 : vector<2x256x4xbf16> to vector<512x4xbf16>
      %c0_32 = arith.constant 0 : index
      %c4 = arith.constant 4 : index
      %29 = vector.load %arg7[%c0_32, %c4] : memref<512x36xbf16, #tpu.memory_space<vmem>>, vector<512x4xbf16>
      tpu.vector_store %arg7[%c0_32, %c4], %28 {strides = array<i32>} : memref<512x36xbf16, #tpu.memory_space<vmem>>, vector<512x4xbf16>,
      %30 = vector.extract_strided_slice %26 {offsets = [0, 16, 0], sizes = [2, 256, 4], strides = [1, 1, 1]} : vector<2x288x4xbf16> to vector<2x256x4xbf16>
      %31 = vector.shape_cast %30 : vector<2x256x4xbf16> to vector<512x4xbf16>
      %c0_33 = arith.constant 0 : index
      %c16 = arith.constant 16 : index
      %32 = vector.load %arg7[%c0_33, %c16] : memref<512x36xbf16, #tpu.memory_space<vmem>>, vector<512x4xbf16>
      tpu.vector_store %arg7[%c0_33, %c16], %31 {strides = array<i32>} : memref<512x36xbf16, #tpu.memory_space<vmem>>, vector<512x4xbf16>,
      %33 = vector.extract_strided_slice %26 {offsets = [0, 32, 0], sizes = [2, 256, 4], strides = [1, 1, 1]} : vector<2x288x4xbf16> to vector<2x256x4xbf16>
      %34 = vector.shape_cast %33 : vector<2x256x4xbf16> to vector<512x4xbf16>
      %c0_34 = arith.constant 0 : index
      %c28 = arith.constant 28 : index
      %35 = vector.load %arg7[%c0_34, %c28] : memref<512x36xbf16, #tpu.memory_space<vmem>>, vector<512x4xbf16>
      tpu.vector_store %arg7[%c0_34, %c28], %34 {strides = array<i32>} : memref<512x36xbf16, #tpu.memory_space<vmem>>, vector<512x4xbf16>,
      %c0_35 = arith.constant 0 : index
      %c0_36 = arith.constant 0 : index
      %c2 = arith.constant 2 : index
      %c0_37 = arith.constant 0 : index
      %36 = vector.load %arg6[%c0_35, %c0_36, %c2, %c0_37] : memref<2x18x18x4xbf16, #tpu.memory_space<vmem>>, vector<2x18x16x4xbf16>
      %37 = vector.shape_cast %36 : vector<2x18x16x4xbf16> to vector<2x288x4xbf16>
      %38 = vector.extract_strided_slice %37 {offsets = [0, 0, 0], sizes = [2, 256, 4], strides = [1, 1, 1]} : vector<2x288x4xbf16> to vector<2x256x4xbf16>
      %39 = vector.shape_cast %38 : vector<2x256x4xbf16> to vector<512x4xbf16>
      %c0_38 = arith.constant 0 : index
      %c8 = arith.constant 8 : index
      %40 = vector.load %arg7[%c0_38, %c8] : memref<512x36xbf16, #tpu.memory_space<vmem>>, vector<512x4xbf16>
      tpu.vector_store %arg7[%c0_38, %c8], %39 {strides = array<i32>} : memref<512x36xbf16, #tpu.memory_space<vmem>>, vector<512x4xbf16>,
      %41 = vector.extract_strided_slice %37 {offsets = [0, 16, 0], sizes = [2, 256, 4], strides = [1, 1, 1]} : vector<2x288x4xbf16> to vector<2x256x4xbf16>
      %42 = vector.shape_cast %41 : vector<2x256x4xbf16> to vector<512x4xbf16>
      %c0_39 = arith.constant 0 : index
      %c20 = arith.constant 20 : index
      %43 = vector.load %arg7[%c0_39, %c20] : memref<512x36xbf16, #tpu.memory_space<vmem>>, vector<512x4xbf16>
      tpu.vector_store %arg7[%c0_39, %c20], %42 {strides = array<i32>} : memref<512x36xbf16, #tpu.memory_space<vmem>>, vector<512x4xbf16>,
      %44 = vector.extract_strided_slice %37 {offsets = [0, 32, 0], sizes = [2, 256, 4], strides = [1, 1, 1]} : vector<2x288x4xbf16> to vector<2x256x4xbf16>
      %45 = vector.shape_cast %44 : vector<2x256x4xbf16> to vector<512x4xbf16>
      %c0_40 = arith.constant 0 : index
      %c32 = arith.constant 32 : index
      %46 = vector.load %arg7[%c0_40, %c32] : memref<512x36xbf16, #tpu.memory_space<vmem>>, vector<512x4xbf16>
      tpu.vector_store %arg7[%c0_40, %c32], %45 {strides = array<i32>} : memref<512x36xbf16, #tpu.memory_space<vmem>>, vector<512x4xbf16>,
    } else {
    }
    %c0 = arith.constant 0 : index
    %c0_1 = arith.constant 0 : index
    %3 = vector.load %arg3[%c0, %c0_1] : memref<36x128xbf16, #tpu.memory_space<vmem>>, vector<36x128xbf16>
    %c0_2 = arith.constant 0 : index
    %c0_3 = arith.constant 0 : index
    %4 = vector.load %arg4[%c0_2, %c0_3] : memref<1x128xf32, #tpu.memory_space<vmem>>, vector<1x128xf32>
    %c0_4 = arith.constant 0 : index
    %c0_5 = arith.constant 0 : index
    %5 = vector.load %arg7[%c0_4, %c0_5] : memref<512x36xbf16, #tpu.memory_space<vmem>>, vector<512x36xbf16>
    %cst = arith.constant dense<0.000000e+00> : vector<512x128xf32>
    %6 = tpu.matmul %5, %3, %cst {dimension_numbers = #tpu.dot_dimension_numbers<[1], [0], [0], [1], [0, 0, 1, 1], [], []>} : vector<512x36xbf16>, vector<36x128xbf16>, vector<512x128xf32> -> vector<512x128xf32>
    %7 = vector.broadcast %4 : vector<1x128xf32> to vector<512x128xf32>
    %8 = arith.addf %6, %7 : vector<512x128xf32>
    %c0_6 = arith.constant 0 : index
    %c0_7 = arith.constant 0 : index
    %9 = vector.load %arg5[%c0_6, %c0_7] : memref<512x128xf32, #tpu.memory_space<vmem>>, vector<512x128xf32>
    tpu.vector_store %arg5[%c0_6, %c0_7], %8 {strides = array<i32>} : memref<512x128xf32, #tpu.memory_space<vmem>>, vector<512x128xf32>,
    return
  }
  func.func @transform_0(%arg0: i32, %arg1: i32) -> (i32, i32, i32, i32) {
    %c0_i32 = arith.constant 0 : i32
    %c0_i32_0 = arith.constant 0 : i32
    %c0_i32_1 = arith.constant 0 : i32
    %c0_i32_2 = arith.constant 0 : i32
    return %arg0, %c0_i32, %c0_i32_0, %c0_i32_1 : i32, i32, i32, i32
  }
  func.func @transform_1(%arg0: i32, %arg1: i32) -> (i32, i32) {
    %c0_i32 = arith.constant 0 : i32
    %c0_i32_0 = arith.constant 0 : i32
    return %c0_i32, %arg1 : i32, i32
  }
  func.func @transform_2(%arg0: i32, %arg1: i32) -> (i32, i32) {
    %c0_i32 = arith.constant 0 : i32
    %c0_i32_0 = arith.constant 0 : i32
    return %c0_i32, %arg1 : i32, i32
  }
  func.func @transform_3(%arg0: i32, %arg1: i32) -> (i32, i32) {
    %c0_i32 = arith.constant 0 : i32
    return %arg0, %arg1 : i32, i32
  }
}

</mosaic_0001>

<bundles_post_ra>
// kernel: tpu_custom_call.1
= control target key start
LH: loop header
LB: loop body
LE: loop exit
PB: predicated region body
PF: predicated region fallthrough
CT: control target
= control target key end

     0   :  { %vm20_vm0 = vcmask 27648   ;;  %vm23_vm1 = vcmask 24576   ;;  %v4975_v1 = vmov 0   ;;  %vm194_vm2 = vsmask.f32 256  ;;  %s4976_s15 = smov 12   ;;  %s7470_s0 = inlined_call_operand.vmem [shape: bf16[2,16,16,4], index: 0, kind: input, shape index: {}]   ;;  %s7471_s1 = inlined_call_operand.vmem [shape: bf16[36,128], index: 1, kind: input, shape index: {}]   ;;  %s7472_s2 = inlined_call_operand.vmem [shape: f32[1,128], index: 2, kind: input, shape index: {}]   ;;  %s7473_s3 = inlined_call_operand.hbm [shape: f32[512,128], index: 3, kind: output, shape index: {}]  }
   0x1   :  { %v5009_v0 = vld [vmem:[%s7470_s0 + $0x10] sm:$0xf]  ;;  %31 = vst.msk [vmem:[#allocation2 + $0x24] sm:$0xf] %vm20_vm0, %v4975_v1  ;;  %32 = vst.msk [vmem:[#allocation2 + $0x28] sm:$0xf] %vm20_vm0, %v4975_v1 }
   0x2   :  { %v5018_v2 = vld [vmem:[%s7470_s0 + $0x14] sm:$0xf]  ;;  %vm195_vm3 = vsmask.f32 4368  ;;  %21 = vst.msk [vmem:[#allocation2] sm:$0xf] %vm20_vm0, %v4975_v1  ;;  %vm5241_vm5 = vmand %vm23_vm1, %vm194_vm2 }
   0x3   :  { %22 = vst.msk [vmem:[#allocation2 + $0x4] sm:$0xf] %vm20_vm0, %v4975_v1  ;;  %25 = vst.msk [vmem:[#allocation2 + $0xc] sm:$0xf] %vm20_vm0, %v4975_v1  ;;  %v232_v3 = vshrl.u32 %v5009_v0, 16  ;;  %v235_v4 = vshll.u32 %v5009_v0, 16 }
   0x4   :  { %24 = vst.msk [vmem:[#allocation2 + $0x8] sm:$0x1] %vm23_vm1, %v4975_v1  ;;  %27 = vst.msk [vmem:[#allocation2 + $0x14] sm:$0x1] %vm23_vm1, %v4975_v1  ;;  %v240_v5 = vshrl.u32 %v5018_v2, 16  ;;  %v243_v6 = vshll.u32 %v5018_v2, 16 }
   0x5   :  { %26 = vst.msk [vmem:[#allocation2 + $0x10] sm:$0xf] %vm20_vm0, %v4975_v1  ;;  %28 = vst.msk [vmem:[#allocation2 + $0x18] sm:$0xf] %vm20_vm0, %v4975_v1  ;;  %v130_v7 = vld [vmem:[%s7470_s0] sm:$0xf] }
   0x6   :  { %29 = vst.msk [vmem:[#allocation2 + $0x1c] sm:$0xf] %vm20_vm0, %v4975_v1  ;;  %34 = vst.msk [vmem:[#allocation2 + $0x30] sm:$0xf] %vm20_vm0, %v4975_v1  ;;  %vm839_vm4 = vsmask.f32 7938 }
   0x7   :  { %30 = vst.msk [vmem:[#allocation2 + $0x20] sm:$0x1] %vm23_vm1, %v4975_v1  ;;  %33 = vst.msk [vmem:[#allocation2 + $0x2c] sm:$0x1] %vm23_vm1, %v4975_v1  ;;  %v131_v9 = vld [vmem:[%s7470_s0 + $0x4] sm:$0xf] }
   0x8   :  { %35 = vst.msk [vmem:[#allocation2 + $0x34] sm:$0xf] %vm20_vm0, %v4975_v1  ;;  %37 = vst.msk [vmem:[#allocation2 + $0x3c] sm:$0xf] %vm20_vm0, %v4975_v1  ;;  %v198_v10 = vshrl.u32 %v130_v7, 16  ;;  %v201_v11 = vshll.u32 %v130_v7, 16 }
   0x9   :  { %36 = vst.msk [vmem:[#allocation2 + $0x38] sm:$0x1] %vm23_vm1, %v4975_v1  ;;  %39 = vst.msk [vmem:[#allocation2 + $0x44] sm:$0x1] %vm23_vm1, %v4975_v1  ;;  %v234_v12 = vrot.slane %v232_v3, 7  ;;  %v5248_v13 = vrot.slane %v240_v5, 7 }
   0xa   :  { %38 = vst.msk [vmem:[#allocation2 + $0x40] sm:$0xf] %vm20_vm0, %v4975_v1  ;;  %40 = vst.msk [vmem:[#allocation2 + $0x48] sm:$0xf] %vm20_vm0, %v4975_v1  ;;  %v206_v14 = vshrl.u32 %v131_v9, 16  ;;  %v200_v17 = vrot.slane %v198_v10, 7 }
   0xb   :  { %41 = vst.msk [vmem:[#allocation2 + $0x4c] sm:$0xf] %vm20_vm0, %v4975_v1  ;;  %43 = vst.msk [vmem:[#allocation2 + $0x54] sm:$0xf] %vm20_vm0, %v4975_v1  ;;  %v136_v15 = vld [vmem:[%s7470_s0 + $0x18] sm:$0xf]  ;;  %v237_v21 = vor.u32 %v235_v4, %v234_v12  ;;  %v245_v23 = vor.u32 %v243_v6, %v5248_v13 }
   0xc   :  { %42 = vst.msk [vmem:[#allocation2 + $0x50] sm:$0x1] %vm23_vm1, %v4975_v1  ;;  %45 = vst.msk [vmem:[#allocation2 + $0x5c] sm:$0x1] %vm23_vm1, %v4975_v1  ;;  %v209_v18 = vshll.u32 %v131_v9, 16  ;;  %v249_v20 = vshrl.u32 %v136_v15, 16  ;;  %v203_v27 = vor.u32 %v201_v11, %v200_v17 }
   0xd   :  { %44 = vst.msk [vmem:[#allocation2 + $0x58] sm:$0xf] %vm20_vm0, %v4975_v1  ;;  %46 = vst.msk [vmem:[#allocation2 + $0x60] sm:$0xf] %vm20_vm0, %v4975_v1  ;;  %v137_v19 = vld [vmem:[%s7470_s0 + $0x1c] sm:$0xf] }
   0xe   :  { %47 = vst.msk [vmem:[#allocation2 + $0x64] sm:$0xf] %vm20_vm0, %v4975_v1  ;;  %49 = vst.msk [vmem:[#allocation2 + $0x6c] sm:$0xf] %vm20_vm0, %v4975_v1  ;;  %v238_v22 = vrot.slane %v234_v12, 4  ;;  %v252_v25 = vshll.u32 %v136_v15, 16 }
   0xf   :  { %48 = vst.msk [vmem:[#allocation2 + $0x68] sm:$0x1] %vm23_vm1, %v4975_v1  ;;  %51 = vst.msk [vmem:[#allocation2 + $0x74] sm:$0x1] %vm23_vm1, %v4975_v1  ;;  %v132_v26 = vld [vmem:[%s7470_s0 + $0x8] sm:$0xf] }
  0x10   :  { %50 = vst.msk [vmem:[#allocation2 + $0x70] sm:$0xf] %vm20_vm0, %v4975_v1  ;;  %52 = vst.msk [vmem:[#allocation2 + $0x78] sm:$0xf] %vm20_vm0, %v4975_v1  ;;  %v204_v28 = vrot.slane %v200_v17, 4  ;;  %v5272_v29 = vrot.slane %v206_v14, 7 }
  0x11   :  { %53 = vst.msk [vmem:[#allocation2 + $0x7c] sm:$0xf] %vm20_vm0, %v4975_v1  ;;  %55 = vst.msk [vmem:[#allocation2 + $0x84] sm:$0xf] %vm20_vm0, %v4975_v1  ;;  %v251_v30 = vrot.slane %v249_v20, 7  ;;  %v257_v35 = vshrl.u32 %v137_v19, 16 }
  0x12   :  { %54 = vst.msk [vmem:[#allocation2 + $0x80] sm:$0x1] %vm23_vm1, %v4975_v1  ;;  %57 = vst.msk [vmem:[#allocation2 + $0x8c] sm:$0x1] %vm23_vm1, %v4975_v1  ;;  %v133_v31 = vld [vmem:[%s7470_s0 + $0xc] sm:$0xf]  ;;  %v211_v38 = vor.u32 %v209_v18, %v5272_v29 }
  0x13   :  { %56 = vst.msk [vmem:[#allocation2 + $0x88] sm:$0xf] %vm20_vm0, %v4975_v1  ;;  %58 = vst.msk [vmem:[#allocation2 + $0x90] sm:$0xf] %vm20_vm0, %v4975_v1  ;;  %v857_v33 = vld [vmem:[#allocation2 + $0x24] sm:$0xf]  ;;  %v254_v42 = vor.u32 %v252_v25, %v251_v30 }
  0x14   :  { %59 = vst.msk [vmem:[#allocation2 + $0x94] sm:$0xf] %vm20_vm0, %v4975_v1  ;;  %61 = vst.msk [vmem:[#allocation2 + $0x9c] sm:$0xf] %vm20_vm0, %v4975_v1  ;;  %v841_v34 = vld [vmem:[#allocation2 + $0xc] sm:$0xf] }
  0x15   :  { %60 = vst.msk [vmem:[#allocation2 + $0x98] sm:$0x1] %vm23_vm1, %v4975_v1  ;;  %63 = vst.msk [vmem:[#allocation2 + $0xa4] sm:$0x1] %vm23_vm1, %v4975_v1  ;;  %v260_v36 = vshll.u32 %v137_v19, 16  ;;  %v255_v43 = vrot.slane %v251_v30, 4 }
  0x16   :  { %62 = vst.msk [vmem:[#allocation2 + $0xa0] sm:$0xf] %vm20_vm0, %v4975_v1  ;;  %64 = vst.msk [vmem:[#allocation2 + $0xa8] sm:$0xf] %vm20_vm0, %v4975_v1  ;;  %v864_v40 = vld [vmem:[#allocation2 + $0x30] sm:$0xf] }
  0x17   :  { %65 = vst.msk [vmem:[#allocation2 + $0xac] sm:$0xf] %vm20_vm0, %v4975_v1  ;;  %67 = vst.msk [vmem:[#allocation2 + $0xb4] sm:$0xf] %vm20_vm0, %v4975_v1  ;;  %v140_v41 = vld [vmem:[%s7470_s0 + $0x28] sm:$0xf] }
  0x18   :  { %66 = vst.msk [vmem:[#allocation2 + $0xb0] sm:$0x1] %vm23_vm1, %v4975_v1  ;;  %69 = vst.msk [vmem:[#allocation2 + $0xbc] sm:$0x1] %vm23_vm1, %v4975_v1  ;;  %v5288_v44 = vrot.slane %v257_v35, 7  ;;  %v215_v45 = vshrl.u32 %v132_v26, 16 }
  0x19   :  { %68 = vst.msk [vmem:[#allocation2 + $0xb8] sm:$0xf] %vm20_vm0, %v4975_v1  ;;  %70 = vst.msk [vmem:[#allocation2 + $0xc0] sm:$0xf] %vm20_vm0, %v4975_v1  ;;  %v141_v46 = vld [vmem:[%s7470_s0 + $0x2c] sm:$0xf] }
  0x1a   :  { %71 = vst.msk [vmem:[#allocation2 + $0xc4] sm:$0xf] %vm20_vm0, %v4975_v1  ;;  %73 = vst.msk [vmem:[#allocation2 + $0xcc] sm:$0xf] %vm20_vm0, %v4975_v1  ;;  %v218_v48 = vshll.u32 %v132_v26, 16  ;;  %v223_v49 = vshrl.u32 %v133_v31, 16  ;;  %v262_v51 = vor.u32 %v260_v36, %v5288_v44 }
  0x1b   :  { %72 = vst.msk [vmem:[#allocation2 + $0xc8] sm:$0x1] %vm23_vm1, %v4975_v1  ;;  %75 = vst.msk [vmem:[#allocation2 + $0xd4] sm:$0x1] %vm23_vm1, %v4975_v1  ;;  %v226_v50 = vshll.u32 %v133_v31, 16  ;;  %v217_v53 = vrot.slane %v215_v45, 7 }
  0x1c   :  { %74 = vst.msk [vmem:[#allocation2 + $0xd0] sm:$0xf] %vm20_vm0, %v4975_v1  ;;  %76 = vst.msk [vmem:[#allocation2 + $0xd8] sm:$0xf] %vm20_vm0, %v4975_v1  ;;  %v850_v54 = vld [vmem:[#allocation2 + $0x18] sm:$0xf] }
  0x1d   :  { %77 = vst.msk [vmem:[#allocation2 + $0xdc] sm:$0xf] %vm20_vm0, %v4975_v1  ;;  %79 = vst.msk [vmem:[#allocation2 + $0xe4] sm:$0xf] %vm20_vm0, %v4975_v1  ;;  %v138_v55 = vld [vmem:[%s7470_s0 + $0x20] sm:$0xf]  ;;  %v220_v62 = vor.u32 %v218_v48, %v217_v53 }
  0x1e   :  { %78 = vst.msk [vmem:[#allocation2 + $0xe0] sm:$0x1] %vm23_vm1, %v4975_v1  ;;  %81 = vst.msk [vmem:[#allocation2 + $0xec] sm:$0x1] %vm23_vm1, %v4975_v1  ;;  %v5302_v56 = vrot.slane %v223_v49, 7  ;;  %v283_v57 = vshrl.u32 %v140_v41, 16 }
  0x1f   :  { %80 = vst.msk [vmem:[#allocation2 + $0xe8] sm:$0xf] %vm20_vm0, %v4975_v1  ;;  %82 = vst.msk [vmem:[#allocation2 + $0xf0] sm:$0xf] %vm20_vm0, %v4975_v1  ;;  %v286_v58 = vshll.u32 %v140_v41, 16  ;;  %v291_v59 = vshrl.u32 %v141_v46, 16 }
  0x20   :  { %83 = vst.msk [vmem:[#allocation2 + $0xf4] sm:$0xf] %vm20_vm0, %v4975_v1  ;;  %85 = vst.msk [vmem:[#allocation2 + $0xfc] sm:$0xf] %vm20_vm0, %v4975_v1  ;;  %v139_v60 = vld [vmem:[%s7470_s0 + $0x24] sm:$0xf] }
  0x21   :  { %84 = vst.msk [vmem:[#allocation2 + $0xf8] sm:$0x1] %vm23_vm1, %v4975_v1  ;;  %87 = vst.msk [vmem:[#allocation2 + $0x104] sm:$0x1] %vm23_vm1, %v4975_v1  ;;  %v221_v63 = vrot.slane %v217_v53, 4  ;;  %v294_v0 = vshll.u32 %v141_v46, 16 }
  0x22   :  { %86 = vst.msk [vmem:[#allocation2 + $0x100] sm:$0xf] %vm20_vm0, %v4975_v1  ;;  %88 = vst.msk [vmem:[#allocation2 + $0x108] sm:$0xf] %vm20_vm0, %v4975_v1  ;;  %v285_v2 = vrot.slane %v283_v57, 7  ;;  %v5311_v3 = vrot.slane %v291_v59, 7 }
  0x23   :  { %89 = vst.msk [vmem:[#allocation2 + $0x10c] sm:$0xf] %vm20_vm0, %v4975_v1  ;;  %91 = vst.msk [vmem:[#allocation2 + $0x114] sm:$0xf] %vm20_vm0, %v4975_v1  ;;  %v878_v4 = vld [vmem:[#allocation2 + $0x48] sm:$0xf] }
  0x24   :  { %90 = vst.msk [vmem:[#allocation2 + $0x110] sm:$0x1] %vm23_vm1, %v4975_v1  ;;  %93 = vst.msk [vmem:[#allocation2 + $0x11c] sm:$0x1] %vm23_vm1, %v4975_v1  ;;  %v144_v5 = vld [vmem:[%s7470_s0 + $0x38] sm:$0xf]  ;;  %v288_v15 = vor.u32 %v286_v58, %v285_v2  ;;  %v296_v18 = vor.u32 %v294_v0, %v5311_v3 }
  0x25   :  { %92 = vst.msk [vmem:[#allocation2 + $0x118] sm:$0xf] %vm20_vm0, %v4975_v1  ;;  %94 = vst.msk [vmem:[#allocation2 + $0x120] sm:$0xf] %vm20_vm0, %v4975_v1  ;;  %v266_v7 = vshrl.u32 %v138_v55, 16  ;;  %v269_v9 = vshll.u32 %v138_v55, 16 }
  0x26   :  { %95 = vst.msk [vmem:[#allocation2 + $0x124] sm:$0xf] %vm20_vm0, %v4975_v1  ;;  %97 = vst.msk [vmem:[#allocation2 + $0x12c] sm:$0xf] %vm20_vm0, %v4975_v1  ;;  %v274_v10 = vshrl.u32 %v139_v60, 16  ;;  %v289_v17 = vrot.slane %v285_v2, 4 }
  0x27   :  { %96 = vst.msk [vmem:[#allocation2 + $0x128] sm:$0x1] %vm23_vm1, %v4975_v1  ;;  %99 = vst.msk [vmem:[#allocation2 + $0x134] sm:$0x1] %vm23_vm1, %v4975_v1  ;;  %v145_v11 = vld [vmem:[%s7470_s0 + $0x3c] sm:$0xf] }
  0x28   :  { %98 = vst.msk [vmem:[#allocation2 + $0x130] sm:$0xf] %vm20_vm0, %v4975_v1  ;;  %100 = vst.msk [vmem:[#allocation2 + $0x138] sm:$0xf] %vm20_vm0, %v4975_v1  ;;  %v871_v19 = vld [vmem:[#allocation2 + $0x3c] sm:$0xf] }
  0x29   :  { %101 = vst.msk [vmem:[#allocation2 + $0x13c] sm:$0xf] %vm20_vm0, %v4975_v1  ;;  %103 = vst.msk [vmem:[#allocation2 + $0x144] sm:$0xf] %vm20_vm0, %v4975_v1  ;;  %vm1331_vm8 = vcmask 31744   ;;  %v268_v20 = vrot.slane %v266_v7, 7 }
  0x2a   :  { %102 = vst.msk [vmem:[#allocation2 + $0x140] sm:$0x1] %vm23_vm1, %v4975_v1  ;;  %105 = vst.msk [vmem:[#allocation2 + $0x14c] sm:$0x1] %vm23_vm1, %v4975_v1  ;;  %v320_v30 = vshll.u32 %v144_v5, 16  ;;  %v325_v36 = vshrl.u32 %v145_v11, 16 }
  0x2b   :  { %104 = vst.msk [vmem:[#allocation2 + $0x148] sm:$0xf] %vm20_vm0, %v4975_v1  ;;  %106 = vst.msk [vmem:[#allocation2 + $0x150] sm:$0xf] %vm20_vm0, %v4975_v1  ;;  %v271_v31 = vor.u32 %v269_v9, %v268_v20  ;;  %v885_v53 = vld [vmem:[#allocation2 + $0x54] sm:$0xf] }
  0x2c   :  { %107 = vst.msk [vmem:[#allocation2 + $0x154] sm:$0xf] %vm20_vm0, %v4975_v1  ;;  %109 = vst.msk [vmem:[#allocation2 + $0x15c] sm:$0xf] %vm20_vm0, %v4975_v1  ;;  %v5354_v48 = vrot.slane %v325_v36, 7  ;;  %vm1470_vm11 = vcmask 130144  }
  0x2d   :  { %108 = vst.msk [vmem:[#allocation2 + $0x158] sm:$0x1] %vm23_vm1, %v4975_v1  ;;  %111 = vst.msk [vmem:[#allocation2 + $0x164] sm:$0x1] %vm23_vm1, %v4975_v1  ;;  %v149_v59 = vld [vmem:[%s7470_s0 + $0x4c] sm:$0xf] }
  0x2e   :  { %110 = vst.msk [vmem:[#allocation2 + $0x160] sm:$0xf] %vm20_vm0, %v4975_v1  ;;  %112 = vst.msk [vmem:[#allocation2 + $0x168] sm:$0xf] %vm20_vm0, %v4975_v1  ;;  %v359_v7 = vshrl.u32 %v149_v59, 16 }
  0x2f   :  { %113 = vst.msk [vmem:[#allocation2 + $0x16c] sm:$0xf] %vm20_vm0, %v4975_v1  ;;  %115 = vst.msk [vmem:[#allocation2 + $0x174] sm:$0xf] %vm20_vm0, %v4975_v1  ;;  %v147_v9 = vld [vmem:[%s7470_s0 + $0x44] sm:$0xf] }
  0x30   :  { %114 = vst.msk [vmem:[#allocation2 + $0x170] sm:$0x1] %vm23_vm1, %v4975_v1  ;;  %117 = vst.msk [vmem:[#allocation2 + $0x17c] sm:$0x1] %vm23_vm1, %v4975_v1  ;;  %vm1750_vm9 = vsmask.f32 3328 }
  0x31   :  { %116 = vst.msk [vmem:[#allocation2 + $0x178] sm:$0xf] %vm20_vm0, %v4975_v1  ;;  %118 = vst.msk [vmem:[#allocation2 + $0x180] sm:$0xf] %vm20_vm0, %v4975_v1  ;;  %vm1751_vm10 = vsmask.f32 7440 }
  0x32   :  { %119 = vst.msk [vmem:[#allocation2 + $0x184] sm:$0xf] %vm20_vm0, %v4975_v1  ;;  %121 = vst.msk [vmem:[#allocation2 + $0x18c] sm:$0xf] %vm20_vm0, %v4975_v1 }
  0x33   :  { %120 = vst.msk [vmem:[#allocation2 + $0x188] sm:$0x1] %vm23_vm1, %v4975_v1  ;;  %123 = vst.msk [vmem:[#allocation2 + $0x194] sm:$0x1] %vm23_vm1, %v4975_v1 }
  0x34   :  { %122 = vst.msk [vmem:[#allocation2 + $0x190] sm:$0xf] %vm20_vm0, %v4975_v1  ;;  %124 = vst.msk [vmem:[#allocation2 + $0x198] sm:$0xf] %vm20_vm0, %v4975_v1 }
  0x35   :  { %125 = vst.msk [vmem:[#allocation2 + $0x19c] sm:$0xf] %vm20_vm0, %v4975_v1  ;;  %127 = vst.msk [vmem:[#allocation2 + $0x1a4] sm:$0xf] %vm20_vm0, %v4975_v1 }
  0x36   :  { %126 = vst.msk [vmem:[#allocation2 + $0x1a0] sm:$0x1] %vm23_vm1, %v4975_v1  ;;  %129 = vst.msk [vmem:[#allocation2 + $0x1ac] sm:$0x1] %vm23_vm1, %v4975_v1 }
  0x37   :  { %128 = vst.msk [vmem:[#allocation2 + $0x1a8] sm:$0xf] %vm20_vm0, %v4975_v1  ;;  %vm5255_vm6 = vmor %vm194_vm2, %vm195_vm3  ;;  %v228_v1 = vor.u32 %v226_v50, %v5302_v56  ;;  %v148_v50 = vld [vmem:[%s7470_s0 + $0x48] sm:$0xf] }
  0x38   :  { %vm5265_vm7 = vmand %vm20_vm0, %vm839_vm4  ;;  %v246_v32 = vsel %vm5255_vm6, %v238_v22, %v245_v23  ;;  %v212_v47 = vsel %vm5255_vm6, %v204_v28, %v211_v38  ;;  %v263_v61 = vsel %vm5255_vm6, %v255_v43, %v262_v51  ;;  %v277_v22 = vshll.u32 %v139_v60, 16  ;;  %v142_v23 = vld [vmem:[%s7470_s0 + $0x30] sm:$0xf]  ;;  %v892_v38 = vld [vmem:[#allocation2 + $0x60] sm:$0xf] }
  0x39   :  { %v858_v37 = vsel %vm5265_vm7, %v237_v21, %v857_v33  ;;  %860 = vst.msk [vmem:[#allocation2 + $0x28] sm:$0xf] %vm20_vm0, %v246_v32  ;;  %v842_v39 = vsel %vm5265_vm7, %v203_v27, %v841_v34  ;;  %844 = vst.msk [vmem:[#allocation2 + $0x10] sm:$0xf] %vm20_vm0, %v212_v47  ;;  %v865_v52 = vsel %vm5265_vm7, %v254_v42, %v864_v40  ;;  %v5327_v21 = vrot.slane %v274_v10, 7 }
  0x3a   :  { %859 = vst [vmem:[#allocation2 + $0x24] sm:$0xf] %v858_v37  ;;  %843 = vst [vmem:[#allocation2 + $0xc] sm:$0xf] %v842_v39  ;;  %v851_v6 = vsel %vm5265_vm7, %v220_v62, %v850_v54  ;;  %v229_v14 = vsel %vm5255_vm6, %v221_v63, %v228_v1  ;;  %v297_v26 = vsel %vm5255_vm6, %v289_v17, %v296_v18  ;;  %v317_v28 = vshrl.u32 %v144_v5, 16 }
  0x3b   :  { %866 = vst [vmem:[#allocation2 + $0x30] sm:$0xf] %v865_v52  ;;  %867 = vst.msk [vmem:[#allocation2 + $0x34] sm:$0xf] %vm20_vm0, %v263_v61  ;;  %v879_v27 = vsel %vm5265_vm7, %v288_v15, %v878_v4  ;;  %v272_v32 = vrot.slane %v268_v20, 4  ;;  %v279_v33 = vor.u32 %v277_v22, %v5327_v21  ;;  %v328_v37 = vshll.u32 %v145_v11, 16 }
  0x3c   :  { %852 = vst [vmem:[#allocation2 + $0x18] sm:$0xf] %v851_v6  ;;  %853 = vst.msk [vmem:[#allocation2 + $0x1c] sm:$0xf] %vm20_vm0, %v229_v14  ;;  %v143_v34 = vld [vmem:[%s7470_s0 + $0x34] sm:$0xf]  ;;  %v872_v42 = vsel %vm5265_vm7, %v271_v31, %v871_v19 }
  0x3d   :  { %880 = vst [vmem:[#allocation2 + $0x48] sm:$0xf] %v879_v27  ;;  %881 = vst.msk [vmem:[#allocation2 + $0x4c] sm:$0xf] %vm20_vm0, %v297_v26  ;;  %v319_v35 = vrot.slane %v317_v28, 7  ;;  %v300_v39 = vshrl.u32 %v142_v23, 16  ;;  %v280_v41 = vsel %vm5255_vm6, %v272_v32, %v279_v33  ;;  %v330_v55 = vor.u32 %v328_v37, %v5354_v48 }
  0x3e   :  { %v303_v43 = vshll.u32 %v142_v23, 16  ;;  %v308_v45 = vshrl.u32 %v143_v34, 16  ;;  %873 = vst [vmem:[#allocation2 + $0x3c] sm:$0xf] %v872_v42  ;;  %874 = vst.msk [vmem:[#allocation2 + $0x40] sm:$0xf] %vm20_vm0, %v280_v41 }
  0x3f   :  { %v322_v46 = vor.u32 %v320_v30, %v319_v35  ;;  %v323_v47 = vrot.slane %v319_v35, 4  ;;  %v302_v49 = vrot.slane %v300_v39, 7  ;;  %v311_v52 = vshll.u32 %v143_v34, 16  ;;  %v146_v63 = vld [vmem:[%s7470_s0 + $0x40] sm:$0xf]  ;;  %vm5942_vm12 = vmor %vm1750_vm9, %vm1751_vm10 }
  0x40   :  { %v5363_v51 = vrot.slane %v308_v45, 7  ;;  %v351_v62 = vshrl.u32 %v148_v50, 16  ;;  %v354_v4 = vshll.u32 %v148_v50, 16  ;;  %v362_v10 = vshll.u32 %v149_v59, 16  ;;  %v906_v11 = vld [vmem:[#allocation2 + $0x78] sm:$0xf] }
  0x41   :  { %v5321_v12 = vld [vmem:[#allocation2 + $0x24] sm:$0xff]   ;;  %v4912_v25 = vld [vmem:[#allocation2 + $0xc] sm:$0xff]   ;;  %v893_v57 = vsel %vm5265_vm7, %v322_v46, %v892_v38  ;;  %v305_v58 = vor.u32 %v303_v43, %v302_v49  ;;  %v306_v60 = vrot.slane %v302_v49, 4  ;;  %v331_v1 = vsel %vm5255_vm6, %v323_v47, %v330_v55  ;;  %v152_v27 = vld [vmem:[%s7470_s0 + $0x58] sm:$0xf] }
  0x42   :  { %1378 = vrot.lane.b32.xlu1 %v5321_v12, %s4976_s15  ;;  %1335 = vst.msk [vmem:[#allocation3 + $0x18] sm:$0xff] %vm1331_vm8, %v5321_v12  ;;  %1374 = vrot.lane.b32.xlu0 %v4912_v25, %s4976_s15  ;;  %1333 = vst.msk [vmem:[#allocation3 + $0x8] sm:$0xff] %vm1331_vm8, %v4912_v25  ;;  %v5347_v40 = vld [vmem:[#allocation2 + $0x30] sm:$0xff]   ;;  %v313_v61 = vor.u32 %v311_v52, %v5363_v51  ;;  %v353_v6 = vrot.slane %v351_v62, 7  ;;  %v334_v14 = vshrl.u32 %v146_v63, 16  ;;  %v337_v15 = vshll.u32 %v146_v63, 16 }
  0x43   :  { %1336 = vst.msk [vmem:[#allocation3 + $0x20] sm:$0xff] %vm1331_vm8, %v5347_v40  ;;  %v5365_v54 = vld [vmem:[#allocation2 + $0x18] sm:$0xff]   ;;  %894 = vst [vmem:[#allocation2 + $0x60] sm:$0xf] %v893_v57  ;;  %v886_v2 = vsel %vm5265_vm7, %v305_v58, %v885_v53  ;;  %v342_v17 = vshrl.u32 %v147_v9, 16  ;;  %v345_v20 = vshll.u32 %v147_v9, 16 }
  0x44   :  { %1334 = vst.msk [vmem:[#allocation3 + $0x10] sm:$0xff] %vm1331_vm8, %v5365_v54  ;;  %v5381_v0 = vld [vmem:[#allocation2 + $0x48] sm:$0xff]   ;;  %v314_v5 = vsel %vm5255_vm6, %v306_v60, %v313_v61  ;;  %887 = vst [vmem:[#allocation2 + $0x54] sm:$0xf] %v886_v2  ;;  %v356_v19 = vor.u32 %v354_v4, %v353_v6  ;;  %v357_v22 = vrot.slane %v353_v6, 4  ;;  %v5400_v23 = vrot.slane %v359_v7, 7 }
  0x45   :  { %895 = vst.msk [vmem:[#allocation2 + $0x64] sm:$0xf] %vm20_vm0, %v331_v1  ;;  %888 = vst.msk [vmem:[#allocation2 + $0x58] sm:$0xf] %vm20_vm0, %v314_v5  ;;  %v5398_v18 = vld [vmem:[#allocation2 + $0x3c] sm:$0xff]   ;;  %v336_v25 = vrot.slane %v334_v14, 7 }
  0x46   :  { %1380 = vrot.lane.b32.xlu1 %v5347_v40, %s4976_s15  ;;  %1376 = vrot.lane.b32.xlu0 %v5365_v54, %s4976_s15  ;;  %1338 = vst.msk [vmem:[#allocation3 + $0x30] sm:$0xff] %vm1331_vm8, %v5381_v0  ;;  %v5402_v26 = vrot.slane %v342_v17, 7  ;;  %1337 = vst.msk [vmem:[#allocation3 + $0x28] sm:$0xff] %vm1331_vm8, %v5398_v18  ;;  %v907_v28 = vsel %vm5265_vm7, %v356_v19, %v906_v11  ;;  %v899_v30 = vld [vmem:[#allocation2 + $0x6c] sm:$0xf]  ;;  %v385_v32 = vshrl.u32 %v152_v27, 16 }
  0x47   :  { %v153_v31 = vld [vmem:[%s7470_s0 + $0x5c] sm:$0xf]  ;;  %v388_v33 = vshll.u32 %v152_v27, 16  ;;  %v364_v34 = vor.u32 %v362_v10, %v5400_v23  ;;  %908 = vst [vmem:[#allocation2 + $0x78] sm:$0xf] %v907_v28  ;;  %v339_v35 = vor.u32 %v337_v15, %v336_v25  ;;  %v340_v36 = vrot.slane %v336_v25, 4 }
  0x48   :  { %v920_v37 = vld [vmem:[#allocation2 + $0x90] sm:$0xf]  ;;  %v347_v38 = vor.u32 %v345_v20, %v5402_v26  ;;  %v387_v39 = vrot.slane %v385_v32, 7  ;;  %v393_v41 = vshrl.u32 %v153_v31, 16  ;;  %v151_v43 = vld [vmem:[%s7470_s0 + $0x54] sm:$0xf] }
  0x49   :  { %v150_v42 = vld [vmem:[%s7470_s0 + $0x50] sm:$0xf]  ;;  %v365_v46 = vsel %vm5255_vm6, %v357_v22, %v364_v34  ;;  %v900_v47 = vsel %vm5265_vm7, %v339_v35, %v899_v30  ;;  %v396_v49 = vshll.u32 %v153_v31, 16  ;;  %v376_v60 = vshrl.u32 %v151_v43, 16  ;;  %v156_v1 = vld [vmem:[%s7470_s0 + $0x68] sm:$0xf] }
  0x4a   :  { %1384 = vrot.lane.b32.xlu1 %v5381_v0, %s4976_s15  ;;  %1382 = vrot.lane.b32.xlu0 %v5398_v18, %s4976_s15  ;;  %909 = vst.msk [vmem:[#allocation2 + $0x7c] sm:$0xf] %vm20_vm0, %v365_v46  ;;  %v348_v52 = vsel %vm5255_vm6, %v340_v36, %v347_v38  ;;  %901 = vst [vmem:[#allocation2 + $0x6c] sm:$0xf] %v900_v47  ;;  %v390_v53 = vor.u32 %v388_v33, %v387_v39  ;;  %v391_v55 = vrot.slane %v387_v39, 4 }
  0x4b   :  { %v5435_v57 = vrot.slane %v393_v41, 7  ;;  %902 = vst.msk [vmem:[#allocation2 + $0x70] sm:$0xf] %vm20_vm0, %v348_v52  ;;  %v368_v58 = vshrl.u32 %v150_v42, 16  ;;  %v371_v59 = vshll.u32 %v150_v42, 16  ;;  %v379_v61 = vshll.u32 %v151_v43, 16 }
  0x4c   :  { %v5424_v45 = vld [vmem:[#allocation2 + $0x60] sm:$0xff]   ;;  %v5430_v50 = vld [vmem:[#allocation2 + $0x54] sm:$0xff]   ;;  %v921_v63 = vsel %vm5265_vm7, %v390_v53, %v920_v37  ;;  %v157_v2 = vld [vmem:[%s7470_s0 + $0x6c] sm:$0xf]  ;;  %v5455_v5 = vrot.slane %v376_v60, 7  ;;  %v419_v7 = vshrl.u32 %v156_v1, 16 }
  0x4d   :  { %1340 = vst.msk [vmem:[#allocation3 + $0x40] sm:$0xff] %vm1331_vm8, %v5424_v45  ;;  %1339 = vst.msk [vmem:[#allocation3 + $0x38] sm:$0xff] %vm1331_vm8, %v5430_v50  ;;  %v398_v62 = vor.u32 %v396_v49, %v5435_v57  ;;  %v370_v4 = vrot.slane %v368_v58, 7  ;;  %v913_v6 = vld [vmem:[#allocation2 + $0x84] sm:$0xf]  ;;  %v422_v9 = vshll.u32 %v156_v1, 16 }
  0x4e   :  { %1388 = vrot.lane.b32.xlu1 %v5424_v45, %s4976_s15  ;;  %1386 = vrot.lane.b32.xlu0 %v5430_v50, %s4976_s15  ;;  %922 = vst [vmem:[#allocation2 + $0x90] sm:$0xf] %v921_v63  ;;  %v427_v11 = vshrl.u32 %v157_v2, 16  ;;  %v430_v14 = vshll.u32 %v157_v2, 16  ;;  %v154_v15 = vld [vmem:[%s7470_s0 + $0x60] sm:$0xf]  ;;  %v381_v20 = vor.u32 %v379_v61, %v5455_v5 }
  0x4f   :  { %v399_v10 = vsel %vm5255_vm6, %v391_v55, %v398_v62  ;;  %v373_v17 = vor.u32 %v371_v59, %v370_v4  ;;  %v374_v19 = vrot.slane %v370_v4, 4  ;;  %v934_v22 = vld [vmem:[#allocation2 + $0xa8] sm:$0xf]  ;;  %v155_v25 = vld [vmem:[%s7470_s0 + $0x64] sm:$0xf]  ;;  %v421_v27 = vrot.slane %v419_v7, 7 }
  0x50   :  { %923 = vst.msk [vmem:[#allocation2 + $0x94] sm:$0xf] %vm20_vm0, %v399_v10  ;;  %v5467_v28 = vrot.slane %v427_v11, 7  ;;  %v402_v30 = vshrl.u32 %v154_v15, 16  ;;  %v405_v31 = vshll.u32 %v154_v15, 16  ;;  %v410_v36 = vshrl.u32 %v155_v25, 16 }
  0x51   :  { %v160_v32 = vld [vmem:[%s7470_s0 + $0x78] sm:$0xf]  ;;  %v382_v34 = vsel %vm5255_vm6, %v374_v19, %v381_v20  ;;  %v914_v35 = vsel %vm5265_vm7, %v373_v17, %v913_v6  ;;  %v424_v38 = vor.u32 %v422_v9, %v421_v27  ;;  %v425_v39 = vrot.slane %v421_v27, 4  ;;  %v4944_v42 = vld [vmem:[#allocation2] sm:$0xff]   ;;  %v161_v49 = vld [vmem:[%s7470_s0 + $0x7c] sm:$0xf] }
  0x52   :  { %7502 = vst [vmem:[#allocation7_spill] sm:$0xff] %v5467_v28  ;;  %v5472_v33 = vld [vmem:[#allocation2 + $0x78] sm:$0xff]   ;;  %v5478_v37 = vld [vmem:[#allocation2 + $0x6c] sm:$0xff]   ;;  %915 = vst [vmem:[#allocation2 + $0x84] sm:$0xf] %v914_v35  ;;  %v432_v41 = vor.u32 %v430_v14, %v5467_v28  ;;  %v404_v43 = vrot.slane %v402_v30, 7 }
  0x53   :  { %916 = vst.msk [vmem:[#allocation2 + $0x88] sm:$0xf] %vm20_vm0, %v382_v34  ;;  %1392 = vrot.lane.b32.xlu1 %v5472_v33, %s4976_s15  ;;  %v5486_v46 = vrot.slane %v410_v36, 7  ;;  %v413_v47 = vshll.u32 %v155_v25, 16  ;;  %v453_v52 = vshrl.u32 %v160_v32, 16  ;;  %1390 = vrot.lane.b32.xlu0 %v5478_v37, %s4976_s15  ;;  %v935_v55 = vsel %vm5265_vm7, %v424_v38, %v934_v22 }
  0x54   :  { %1342 = vst.msk [vmem:[#allocation3 + $0x50] sm:$0xff] %vm1331_vm8, %v5472_v33  ;;  %1341 = vst.msk [vmem:[#allocation3 + $0x48] sm:$0xff] %vm1331_vm8, %v5478_v37  ;;  %v433_v53 = vsel %vm5255_vm6, %v425_v39, %v432_v41  ;;  %v927_v58 = vld [vmem:[#allocation2 + $0x9c] sm:$0xf]  ;;  %v456_v59 = vshll.u32 %v160_v32, 16  ;;  %v461_v60 = vshrl.u32 %v161_v49, 16  ;;  %v407_v61 = vor.u32 %v405_v31, %v404_v43 }
  0x55   :  { %1332 = vst.msk [vmem:[#allocation3] sm:$0xff] %vm1331_vm8, %v4944_v42  ;;  %936 = vst [vmem:[#allocation2 + $0xa8] sm:$0xf] %v935_v55  ;;  %v408_v62 = vrot.slane %v404_v43, 4  ;;  %v415_v63 = vor.u32 %v413_v47, %v5486_v46  ;;  %v158_v1 = vld [vmem:[%s7470_s0 + $0x70] sm:$0xf] }
  0x56   :  { %937 = vst.msk [vmem:[#allocation2 + $0xac] sm:$0xf] %vm20_vm0, %v433_v53  ;;  %v455_v4 = vrot.slane %v453_v52, 7  ;;  %v5507_v6 = vrot.slane %v461_v60, 7  ;;  %v464_v7 = vshll.u32 %v161_v49, 16  ;;  %v928_v10 = vsel %vm5265_vm7, %v407_v61, %v927_v58 }
  0x57   :  { %v5505_v2 = vld [vmem:[#allocation2 + $0x90] sm:$0xff]   ;;  %v416_v9 = vsel %vm5255_vm6, %v408_v62, %v415_v63  ;;  %v948_v11 = vld [vmem:[#allocation2 + $0xc0] sm:$0xf]  ;;  %v436_v15 = vshrl.u32 %v158_v1, 16  ;;  %v439_v17 = vshll.u32 %v158_v1, 16 }
  0x58   :  { %7503 = vst [vmem:[#allocation8_spill] sm:$0xff] %v5507_v6  ;;  %v159_v14 = vld [vmem:[%s7470_s0 + $0x74] sm:$0xf]  ;;  %1396 = vrot.lane.b32.xlu1 %v5505_v2, %s4976_s15  ;;  %1344 = vst.msk [vmem:[#allocation3 + $0x60] sm:$0xff] %vm1331_vm8, %v5505_v2  ;;  %v458_v19 = vor.u32 %v456_v59, %v455_v4  ;;  %v459_v20 = vrot.slane %v455_v4, 4  ;;  %v466_v22 = vor.u32 %v464_v7, %v5507_v6 }
  0x59   :  { %929 = vst [vmem:[#allocation2 + $0x9c] sm:$0xf] %v928_v10  ;;  %930 = vst.msk [vmem:[#allocation2 + $0xa0] sm:$0xf] %vm20_vm0, %v416_v9  ;;  %v164_v25 = vld [vmem:[%s7470_s0 + $0x88] sm:$0xf] }
  0x5a   :  { %v5525_v27 = vld [vmem:[#allocation2 + $0x84] sm:$0xff]   ;;  %v438_v30 = vrot.slane %v436_v15, 7  ;;  %v467_v31 = vsel %vm5255_vm6, %v459_v20, %v466_v22  ;;  %v949_v32 = vsel %vm5265_vm7, %v458_v19, %v948_v11  ;;  %v444_v34 = vshrl.u32 %v159_v14, 16  ;;  %v941_v36 = vld [vmem:[#allocation2 + $0xb4] sm:$0xf] }
  0x5b   :  { %v447_v35 = vshll.u32 %v159_v14, 16  ;;  %v165_v38 = vld [vmem:[%s7470_s0 + $0x8c] sm:$0xf]  ;;  %1394 = vrot.lane.b32.xlu0 %v5525_v27, %s4976_s15  ;;  %1343 = vst.msk [vmem:[#allocation3 + $0x58] sm:$0xff] %vm1331_vm8, %v5525_v27  ;;  %950 = vst [vmem:[#allocation2 + $0xc0] sm:$0xf] %v949_v32 }
  0x5c   :  { %951 = vst.msk [vmem:[#allocation2 + $0xc4] sm:$0xf] %vm20_vm0, %v467_v31  ;;  %v441_v39 = vor.u32 %v439_v17, %v438_v30  ;;  %v442_v41 = vrot.slane %v438_v30, 4  ;;  %v487_v42 = vshrl.u32 %v164_v25, 16  ;;  %v490_v43 = vshll.u32 %v164_v25, 16 }
  0x5d   :  { %v162_v47 = vld [vmem:[%s7470_s0 + $0x80] sm:$0xf]  ;;  %v5542_v49 = vld [vmem:[#allocation2 + $0xa8] sm:$0xff]   ;;  %v5544_v52 = vrot.slane %v444_v34, 7  ;;  %v495_v58 = vshrl.u32 %v165_v38, 16  ;;  %v498_v62 = vshll.u32 %v165_v38, 16 }
  0x5e   :  { %v942_v53 = vsel %vm5265_vm7, %v441_v39, %v941_v36  ;;  %v489_v55 = vrot.slane %v487_v42, 7  ;;  %v962_v59 = vld [vmem:[#allocation2 + $0xf0] sm:$0xf]  ;;  %v163_v60 = vld [vmem:[%s7470_s0 + $0x84] sm:$0xf]  ;;  %1400 = vrot.lane.b32.xlu1 %v5542_v49, %s4976_s15  ;;  %1346 = vst.msk [vmem:[#allocation3 + $0x70] sm:$0xff] %vm1331_vm8, %v5542_v49 }
  0x5f   :  { %v449_v61 = vor.u32 %v447_v35, %v5544_v52  ;;  %943 = vst [vmem:[#allocation2 + $0xb4] sm:$0xf] %v942_v53  ;;  %v470_v63 = vshrl.u32 %v162_v47, 16  ;;  %v473_v1 = vshll.u32 %v162_v47, 16  ;;  %v168_v4 = vld [vmem:[%s7470_s0 + $0x98] sm:$0xf] }
  0x60   :  { %v5559_v7 = vld [vmem:[#allocation2 + $0x9c] sm:$0xff]   ;;  %v492_v9 = vor.u32 %v490_v43, %v489_v55  ;;  %v493_v10 = vrot.slane %v489_v55, 4  ;;  %v955_v11 = vld [vmem:[#allocation2 + $0xe4] sm:$0xf]  ;;  %v5563_v15 = vrot.slane %v495_v58, 7  ;;  %v478_v19 = vshrl.u32 %v163_v60, 16 }
  0x61   :  { %v450_v14 = vsel %vm5255_vm6, %v442_v41, %v449_v61  ;;  %v472_v17 = vrot.slane %v470_v63, 7  ;;  %v169_v20 = vld [vmem:[%s7470_s0 + $0x9c] sm:$0xf]  ;;  %1398 = vrot.lane.b32.xlu0 %v5559_v7, %s4976_s15  ;;  %1345 = vst.msk [vmem:[#allocation3 + $0x68] sm:$0xff] %vm1331_vm8, %v5559_v7  ;;  %v481_v25 = vshll.u32 %v163_v60, 16  ;;  %v521_v30 = vshrl.u32 %v168_v4, 16 }
  0x62   :  { %7504 = vst [vmem:[#allocation9_spill] sm:$0xff] %v5563_v15  ;;  %944 = vst.msk [vmem:[#allocation2 + $0xb8] sm:$0xf] %vm20_vm0, %v450_v14  ;;  %v963_v22 = vsel %vm5265_vm7, %v492_v9, %v962_v59  ;;  %v524_v31 = vshll.u32 %v168_v4, 16  ;;  %v166_v32 = vld [vmem:[%s7470_s0 + $0x90] sm:$0xf]  ;;  %v500_v35 = vor.u32 %v498_v62, %v5563_v15 }
  0x63   :  { %v4925_v34 = vld [vmem:[#allocation2 + $0xc0] sm:$0xff]   ;;  %964 = vst [vmem:[#allocation2 + $0xf0] sm:$0xf] %v963_v22  ;;  %v475_v36 = vor.u32 %v473_v1, %v472_v17  ;;  %v476_v38 = vrot.slane %v472_v17, 4  ;;  %v5579_v39 = vrot.slane %v478_v19, 7  ;;  %v523_v41 = vrot.slane %v521_v30, 7 }
  0x64   :  { %v529_v42 = vshrl.u32 %v169_v20, 16  ;;  %v167_v43 = vld [vmem:[%s7470_s0 + $0x94] sm:$0xf]  ;;  %1404 = vrot.lane.b32.xlu1 %v4925_v34, %s4976_s15  ;;  %v501_v47 = vsel %vm5255_vm6, %v493_v10, %v500_v35  ;;  %v532_v55 = vshll.u32 %v169_v20, 16  ;;  %v976_v58 = vld [vmem:[#allocation2 + $0x108] sm:$0xf] }
  0x65   :  { %7505 = vst [vmem:[#allocation10_spill] sm:$0xff] %v5579_v39  ;;  %v956_v53 = vsel %vm5265_vm7, %v475_v36, %v955_v11  ;;  %v504_v59 = vshrl.u32 %v166_v32, 16  ;;  %v172_v60 = vld [vmem:[%s7470_s0 + $0xa8] sm:$0xf]  ;;  %965 = vst.msk [vmem:[#allocation2 + $0xf4] sm:$0xf] %vm20_vm0, %v501_v47  ;;  %v483_v61 = vor.u32 %v481_v25, %v5579_v39  ;;  %v526_v62 = vor.u32 %v524_v31, %v523_v41 }
  0x66   :  { %957 = vst [vmem:[#allocation2 + $0xe4] sm:$0xf] %v956_v53  ;;  %v527_v63 = vrot.slane %v523_v41, 4  ;;  %v5594_v1 = vrot.slane %v529_v42, 7  ;;  %v507_v9 = vshll.u32 %v166_v32, 16  ;;  %v512_v10 = vshrl.u32 %v167_v43, 16 }
  0x67   :  { %v506_v4 = vrot.slane %v504_v59, 7  ;;  %v173_v11 = vld [vmem:[%s7470_s0 + $0xac] sm:$0xf]  ;;  %v484_v14 = vsel %vm5255_vm6, %v476_v38, %v483_v61  ;;  %v977_v17 = vsel %vm5265_vm7, %v526_v62, %v976_v58  ;;  %v515_v19 = vshll.u32 %v167_v43, 16  ;;  %v969_v20 = vld [vmem:[#allocation2 + $0xfc] sm:$0xf] }
  0x68   :  { %7506 = vst [vmem:[#allocation11_spill] sm:$0xff] %v5594_v1  ;;  %v555_v22 = vshrl.u32 %v172_v60, 16  ;;  %v170_v25 = vld [vmem:[%s7470_s0 + $0xa0] sm:$0xf]  ;;  %958 = vst.msk [vmem:[#allocation2 + $0xe8] sm:$0xf] %vm20_vm0, %v484_v14  ;;  %v534_v31 = vor.u32 %v532_v55, %v5594_v1 }
  0x69   :  { %v5606_v30 = vld [vmem:[#allocation2 + $0xb4] sm:$0xff]   ;;  %978 = vst [vmem:[#allocation2 + $0x108] sm:$0xf] %v977_v17  ;;  %v509_v32 = vor.u32 %v507_v9, %v506_v4  ;;  %v510_v34 = vrot.slane %v506_v4, 4  ;;  %v5610_v35 = vrot.slane %v512_v10, 7  ;;  %v558_v38 = vshll.u32 %v172_v60, 16 }
  0x6a   :  { %v557_v36 = vrot.slane %v555_v22, 7  ;;  %v563_v41 = vshrl.u32 %v173_v11, 16  ;;  %1402 = vrot.lane.b32.xlu0 %v5606_v30, %s4976_s15  ;;  %1347 = vst.msk [vmem:[#allocation3 + $0x78] sm:$0xff] %vm1331_vm8, %v5606_v30  ;;  %v535_v42 = vsel %vm5255_vm6, %v527_v63, %v534_v31  ;;  %v566_v47 = vshll.u32 %v173_v11, 16  ;;  %v990_v53 = vld [vmem:[#allocation2 + $0x120] sm:$0xf] }
  0x6b   :  { %7507 = vst [vmem:[#allocation12_spill] sm:$0xff] %v5610_v35  ;;  %v970_v43 = vsel %vm5265_vm7, %v509_v32, %v969_v20  ;;  %v538_v55 = vshrl.u32 %v170_v25, 16  ;;  %979 = vst.msk [vmem:[#allocation2 + $0x10c] sm:$0xf] %vm20_vm0, %v535_v42  ;;  %v517_v58 = vor.u32 %v515_v19, %v5610_v35  ;;  %v171_v61 = vld [vmem:[%s7470_s0 + $0xa4] sm:$0xf] }
  0x6c   :  { %971 = vst [vmem:[#allocation2 + $0xfc] sm:$0xf] %v970_v43  ;;  %v560_v59 = vor.u32 %v558_v38, %v557_v36  ;;  %v561_v60 = vrot.slane %v557_v36, 4  ;;  %v5625_v62 = vld [vmem:[#allocation2 + $0xf0] sm:$0xff]   ;;  %v5627_v63 = vrot.slane %v563_v41, 7  ;;  %v541_v11 = vshll.u32 %v170_v25, 16 }
  0x6d   :  { %v518_v4 = vsel %vm5255_vm6, %v510_v34, %v517_v58  ;;  %v540_v10 = vrot.slane %v538_v55, 7  ;;  %v983_v14 = vld [vmem:[#allocation2 + $0x114] sm:$0xf]  ;;  %v176_v17 = vld [vmem:[%s7470_s0 + $0xb8] sm:$0xf]  ;;  %1408 = vrot.lane.b32.xlu1 %v5625_v62, %s4976_s15  ;;  %1350 = vst.msk [vmem:[#allocation3 + $0x90] sm:$0xff] %vm1331_vm8, %v5625_v62 }
  0x6e   :  { %7508 = vst [vmem:[#allocation13_spill] sm:$0xff] %v5627_v63  ;;  %v991_v9 = vsel %vm5265_vm7, %v560_v59, %v990_v53  ;;  %972 = vst.msk [vmem:[#allocation2 + $0x100] sm:$0xf] %vm20_vm0, %v518_v4  ;;  %v568_v19 = vor.u32 %v566_v47, %v5627_v63  ;;  %v546_v20 = vshrl.u32 %v171_v61, 16  ;;  %v549_v22 = vshll.u32 %v171_v61, 16 }
  0x6f   :  { %992 = vst [vmem:[#allocation2 + $0x120] sm:$0xf] %v991_v9  ;;  %v177_v25 = vld [vmem:[%s7470_s0 + $0xbc] sm:$0xf]  ;;  %v174_v31 = vld [vmem:[%s7470_s0 + $0xb0] sm:$0xf]  ;;  %v543_v34 = vor.u32 %v541_v11, %v540_v10 }
  0x70   :  { %v4928_v32 = vld [vmem:[#allocation2 + $0xe4] sm:$0xff]   ;;  %v544_v36 = vrot.slane %v540_v10, 4  ;;  %v569_v38 = vsel %vm5255_vm6, %v561_v60, %v568_v19  ;;  %v5650_v41 = vrot.slane %v546_v20, 7  ;;  %v589_v42 = vshrl.u32 %v176_v17, 16  ;;  %v175_v47 = vld [vmem:[%s7470_s0 + $0xb4] sm:$0xf] }
  0x71   :  { %v592_v43 = vshll.u32 %v176_v17, 16  ;;  %1406 = vrot.lane.b32.xlu0 %v4928_v32, %s4976_s15  ;;  %1349 = vst.msk [vmem:[#allocation3 + $0x88] sm:$0xff] %vm1331_vm8, %v4928_v32  ;;  %v984_v53 = vsel %vm5265_vm7, %v543_v34, %v983_v14  ;;  %v597_v55 = vshrl.u32 %v177_v25, 16  ;;  %v600_v58 = vshll.u32 %v177_v25, 16  ;;  %v180_v60 = vld [vmem:[%s7470_s0 + $0xc8] sm:$0xf] }
  0x72   :  { %7509 = vst [vmem:[#allocation14_spill] sm:$0xff] %v5650_v41  ;;  %993 = vst.msk [vmem:[#allocation2 + $0x124] sm:$0xf] %vm20_vm0, %v569_v38  ;;  %v572_v59 = vshrl.u32 %v174_v31, 16  ;;  %v5663_v61 = vld [vmem:[#allocation2 + $0x108] sm:$0xff]   ;;  %v551_v4 = vor.u32 %v549_v22, %v5650_v41  ;;  %v591_v10 = vrot.slane %v589_v42, 7 }
  0x73   :  { %985 = vst [vmem:[#allocation2 + $0x114] sm:$0xf] %v984_v53  ;;  %v1004_v9 = vld [vmem:[#allocation2 + $0x138] sm:$0xf]  ;;  %v5666_v11 = vrot.slane %v597_v55, 7  ;;  %v575_v19 = vshll.u32 %v174_v31, 16  ;;  %1412 = vrot.lane.b32.xlu1 %v5663_v61, %s4976_s15 }
  0x74   :  { %v574_v17 = vrot.slane %v572_v59, 7  ;;  %v997_v20 = vld [vmem:[#allocation2 + $0x12c] sm:$0xf]  ;;  %1352 = vst.msk [vmem:[#allocation3 + $0xa0] sm:$0xff] %vm1331_vm8, %v5663_v61  ;;  %v552_v14 = vsel %vm5255_vm6, %v544_v36, %v551_v4  ;;  %v580_v25 = vshrl.u32 %v175_v47, 16  ;;  %v583_v32 = vshll.u32 %v175_v47, 16 }
  0x75   :  { %7510 = vst [vmem:[#allocation15_spill] sm:$0xff] %v5666_v11  ;;  %v181_v22 = vld [vmem:[%s7470_s0 + $0xcc] sm:$0xf]  ;;  %v623_v34 = vshrl.u32 %v180_v60, 16  ;;  %v4946_v38 = vld [vmem:[#allocation2 + $0xd8] sm:$0xff]   ;;  %v594_v31 = vor.u32 %v592_v43, %v591_v10  ;;  %v595_v53 = vrot.slane %v591_v10, 4  ;;  %v602_v55 = vor.u32 %v600_v58, %v5666_v11 }
  0x76   :  { %v5677_v42 = vld [vmem:[#allocation2 + $0xfc] sm:$0xff]   ;;  %986 = vst.msk [vmem:[#allocation2 + $0x118] sm:$0xf] %vm20_vm0, %v552_v14  ;;  %v577_v59 = vor.u32 %v575_v19, %v574_v17  ;;  %v578_v6 = vrot.slane %v574_v17, 4  ;;  %v5681_v63 = vrot.slane %v580_v25, 7  ;;  %v626_v17 = vshll.u32 %v180_v60, 16 }
  0x77   :  { %v625_v36 = vrot.slane %v623_v34, 7  ;;  %v1018_v47 = vld [vmem:[#allocation2 + $0x150] sm:$0xf]  ;;  %v178_v4 = vld [vmem:[%s7470_s0 + $0xc0] sm:$0xf]  ;;  %1348 = vst.msk [vmem:[#allocation3 + $0x80] sm:$0xff] %vm1331_vm8, %v4946_v38  ;;  %1410 = vrot.lane.b32.xlu0 %v5677_v42, %s4976_s15  ;;  %v603_v43 = vsel %vm5255_vm6, %v595_v53, %v602_v55  ;;  %v1005_v58 = vsel %vm5265_vm7, %v594_v31, %v1004_v9 }
  0x78   :  { %7511 = vst [vmem:[#allocation16_spill] sm:$0xff] %v5681_v63  ;;  %1351 = vst.msk [vmem:[#allocation3 + $0x98] sm:$0xff] %vm1331_vm8, %v5677_v42  ;;  %v998_v10 = vsel %vm5265_vm7, %v577_v59, %v997_v20  ;;  %v179_v19 = vld [vmem:[%s7470_s0 + $0xc4] sm:$0xf]  ;;  %v184_v14 = vld [vmem:[%s7470_s0 + $0xd8] sm:$0xf]  ;;  %v585_v34 = vor.u32 %v583_v32, %v5681_v63 }
  0x79   :  { %v5703_v25 = vld [vmem:[#allocation2 + $0x120] sm:$0xff]   ;;  %1006 = vst [vmem:[#allocation2 + $0x138] sm:$0xf] %v1005_v58  ;;  %1007 = vst.msk [vmem:[#allocation2 + $0x13c] sm:$0xf] %vm20_vm0, %v603_v43  ;;  %v629_v9 = vrot.slane %v625_v36, 4  ;;  %v628_v20 = vor.u32 %v626_v17, %v625_v36 }
  0x7a   :  { %999 = vst [vmem:[#allocation2 + $0x12c] sm:$0xf] %v998_v10  ;;  %v631_v38 = vshrl.u32 %v181_v22, 16  ;;  %v634_v60 = vshll.u32 %v181_v22, 16  ;;  %v606_v31 = vshrl.u32 %v178_v4, 16  ;;  %v609_v53 = vshll.u32 %v178_v4, 16  ;;  %1416 = vrot.lane.b32.xlu1 %v5703_v25, %s4976_s15 }
  0x7b   :  { %1354 = vst.msk [vmem:[#allocation3 + $0xb0] sm:$0xff] %vm1331_vm8, %v5703_v25  ;;  %v586_v55 = vsel %vm5255_vm6, %v578_v6, %v585_v34  ;;  %v614_v43 = vshrl.u32 %v179_v19, 16  ;;  %v617_v32 = vshll.u32 %v179_v19, 16  ;;  %v185_v36 = vld [vmem:[%s7470_s0 + $0xdc] sm:$0xf]  ;;  %v1019_v22 = vsel %vm5265_vm7, %v628_v20, %v1018_v47 }
  0x7c   :  { %v5713_v59 = vrot.slane %v631_v38, 7  ;;  %1000 = vst.msk [vmem:[#allocation2 + $0x130] sm:$0xf] %vm20_vm0, %v586_v55  ;;  %v608_v4 = vrot.slane %v606_v31, 7  ;;  %v1011_v58 = vld [vmem:[#allocation2 + $0x144] sm:$0xf] }
  0x7d   :  { %v657_v10 = vshrl.u32 %v184_v14, 16  ;;  %v660_v17 = vshll.u32 %v184_v14, 16  ;;  %v5721_v11 = vld [vmem:[#allocation2 + $0x114] sm:$0xff]   ;;  %1020 = vst [vmem:[#allocation2 + $0x150] sm:$0xf] %v1019_v22  ;;  %v5724_v34 = vrot.slane %v614_v43, 7 }
  0x7e   :  { %7512 = vst [vmem:[#allocation17_spill] sm:$0xff] %v5713_v59  ;;  %v636_v6 = vor.u32 %v634_v60, %v5713_v59  ;;  %v665_v19 = vshrl.u32 %v185_v36, 16  ;;  %v611_v38 = vor.u32 %v609_v53, %v608_v4  ;;  %v612_v63 = vrot.slane %v608_v4, 4  ;;  %v182_v47 = vld [vmem:[%s7470_s0 + $0xd0] sm:$0xf]  ;;  %1414 = vrot.lane.b32.xlu0 %v5721_v11, %s4976_s15  ;;  %1353 = vst.msk [vmem:[#allocation3 + $0xa8] sm:$0xff] %vm1331_vm8, %v5721_v11 }
  0x7f   :  { %7513 = vst [vmem:[#allocation18_spill] sm:$0xff] %v5724_v34  ;;  %v659_v41 = vrot.slane %v657_v10, 7  ;;  %v668_v1 = vshll.u32 %v185_v36, 16  ;;  %v619_v20 = vor.u32 %v617_v32, %v5724_v34  ;;  %v1032_v31 = vld [vmem:[#allocation2 + $0x168] sm:$0xf]  ;;  %v640_v4 = vshrl.u32 %v182_v47, 16 }
  0x80   :  { %v637_v14 = vsel %vm5255_vm6, %v629_v9, %v636_v6  ;;  %v5736_v60 = vrot.slane %v665_v19, 7  ;;  %v183_v53 = vld [vmem:[%s7470_s0 + $0xd4] sm:$0xf]  ;;  %v5741_v55 = vld [vmem:[#allocation2 + $0x138] sm:$0xff]   ;;  %v1012_v43 = vsel %vm5265_vm7, %v611_v38, %v1011_v58  ;;  %v188_v10 = vld [vmem:[%s7470_s0 + $0xe8] sm:$0xf] }
  0x81   :  { %1021 = vst.msk [vmem:[#allocation2 + $0x154] sm:$0xf] %vm20_vm0, %v637_v14  ;;  %v662_v36 = vor.u32 %v660_v17, %v659_v41  ;;  %v663_v22 = vrot.slane %v659_v41, 4  ;;  %v620_v9 = vsel %vm5255_vm6, %v612_v63, %v619_v20  ;;  %1013 = vst [vmem:[#allocation2 + $0x144] sm:$0xf] %v1012_v43  ;;  %1420 = vrot.lane.b32.xlu1 %v5741_v55, %s4976_s15  ;;  %v643_v63 = vshll.u32 %v182_v47, 16 }
  0x82   :  { %7514 = vst [vmem:[#allocation19_spill] sm:$0xff] %v5736_v60  ;;  %v670_v32 = vor.u32 %v668_v1, %v5736_v60  ;;  %1356 = vst.msk [vmem:[#allocation3 + $0xc0] sm:$0xff] %vm1331_vm8, %v5741_v55  ;;  %v648_v58 = vshrl.u32 %v183_v53, 16  ;;  %v651_v17 = vshll.u32 %v183_v53, 16  ;;  %v1025_v1 = vld [vmem:[#allocation2 + $0x15c] sm:$0xf] }
  0x83   :  { %1014 = vst.msk [vmem:[#allocation2 + $0x148] sm:$0xf] %vm20_vm0, %v620_v9  ;;  %v1033_v41 = vsel %vm5265_vm7, %v662_v36, %v1032_v31  ;;  %v189_v6 = vld [vmem:[%s7470_s0 + $0xec] sm:$0xf]  ;;  %v642_v14 = vrot.slane %v640_v4, 7  ;;  %v691_v20 = vshrl.u32 %v188_v10, 16 }
  0x84   :  { %v5762_v19 = vld [vmem:[#allocation2 + $0x12c] sm:$0xff]   ;;  %v671_v38 = vsel %vm5255_vm6, %v663_v22, %v670_v32  ;;  %1034 = vst [vmem:[#allocation2 + $0x168] sm:$0xf] %v1033_v41  ;;  %v694_v43 = vshll.u32 %v188_v10, 16  ;;  %v5767_v31 = vrot.slane %v648_v58, 7  ;;  %v699_v47 = vshrl.u32 %v189_v6, 16 }
  0x85   :  { %1035 = vst.msk [vmem:[#allocation2 + $0x16c] sm:$0xf] %vm20_vm0, %v671_v38  ;;  %v702_v53 = vshll.u32 %v189_v6, 16  ;;  %1418 = vrot.lane.b32.xlu0 %v5762_v19, %s4976_s15  ;;  %v645_v36 = vor.u32 %v643_v63, %v642_v14  ;;  %v646_v9 = vrot.slane %v642_v14, 4  ;;  %v693_v60 = vrot.slane %v691_v20, 7 }
  0x86   :  { %7515 = vst [vmem:[#allocation20_spill] sm:$0xff] %v5767_v31  ;;  %1355 = vst.msk [vmem:[#allocation3 + $0xb8] sm:$0xff] %vm1331_vm8, %v5762_v19  ;;  %v186_v22 = vld [vmem:[%s7470_s0 + $0xe0] sm:$0xf]  ;;  %v653_v32 = vor.u32 %v651_v17, %v5767_v31  ;;  %v5777_v4 = vrot.slane %v699_v47, 7  ;;  %v7528_v39 = vrot.slane %v5311_v3, 4 }
  0x87   :  { %v1046_v10 = vld [vmem:[#allocation2 + $0x180] sm:$0xf]  ;;  %v187_v41 = vld [vmem:[%s7470_s0 + $0xe4] sm:$0xf]  ;;  %v674_v58 = vshrl.u32 %v186_v22, 16  ;;  %v1026_v63 = vsel %vm5265_vm7, %v645_v36, %v1025_v1  ;;  %v696_v38 = vor.u32 %v694_v43, %v693_v60  ;;  %v697_v14 = vrot.slane %v693_v60, 4 }
  0x88   :  { %7516 = vst [vmem:[#allocation21_spill] sm:$0xff] %v5777_v4  ;;  %v5782_v6 = vld [vmem:[#allocation2 + $0x150] sm:$0xff]   ;;  %v677_v20 = vshll.u32 %v186_v22, 16  ;;  %v654_v59 = vsel %vm5255_vm6, %v646_v9, %v653_v32  ;;  %1027 = vst [vmem:[#allocation2 + $0x15c] sm:$0xf] %v1026_v63  ;;  %v704_v17 = vor.u32 %v702_v53, %v5777_v4  ;;  %v682_v1 = vshrl.u32 %v187_v41, 16 }
  0x89   :  { %7517 = vst [vmem:[#allocation22_spill] sm:$0xff] %v5782_v6  ;;  %v676_v47 = vrot.slane %v674_v58, 7  ;;  %v1039_v31 = vld [vmem:[#allocation2 + $0x174] sm:$0xf]  ;;  %1424 = vrot.lane.b32.xlu1 %v5782_v6, %s4976_s15  ;;  %1358 = vst.msk [vmem:[#allocation3 + $0xd0] sm:$0xff] %vm1331_vm8, %v5782_v6  ;;  %v1047_v60 = vsel %vm5265_vm7, %v696_v38, %v1046_v10  ;;  %v685_v43 = vshll.u32 %v187_v41, 16 }
  0x8a   :  { %v5793_v34 = vld [vmem:[#allocation2 + $0x144] sm:$0xff]   ;;  %1028 = vst.msk [vmem:[#allocation2 + $0x160] sm:$0xf] %vm20_vm0, %v654_v59  ;;  %v705_v53 = vsel %vm5255_vm6, %v697_v14, %v704_v17  ;;  %1048 = vst [vmem:[#allocation2 + $0x180] sm:$0xf] %v1047_v60  ;;  %v5810_v32 = vrot.slane %v682_v1, 7 }
  0x8b   :  { %v679_v36 = vor.u32 %v677_v20, %v676_v47  ;;  %v680_v9 = vrot.slane %v676_v47, 4  ;;  %v192_v22 = vld [vmem:[%s7470_s0 + $0xf8] sm:$0xf]  ;;  %1422 = vrot.lane.b32.xlu0 %v5793_v34, %s4976_s15  ;;  %1357 = vst.msk [vmem:[#allocation3 + $0xc8] sm:$0xff] %vm1331_vm8, %v5793_v34  ;;  %v193_v10 = vld [vmem:[%s7470_s0 + $0xfc] sm:$0xf] }
  0x8c   :  { %v5807_v59 = vld [vmem:[#allocation2 + $0x168] sm:$0xff]   ;;  %1049 = vst.msk [vmem:[#allocation2 + $0x184] sm:$0xf] %vm20_vm0, %v705_v53  ;;  %7519 = vst [vmem:[#allocation24_spill] sm:$0xff] %v5810_v32  ;;  %v725_v58 = vshrl.u32 %v192_v22, 16  ;;  %v728_v63 = vshll.u32 %v192_v22, 16  ;;  %v687_v20 = vor.u32 %v685_v43, %v5810_v32 }
  0x8d   :  { %7518 = vst [vmem:[#allocation23_spill] sm:$0xff] %v5807_v59  ;;  %v1040_v41 = vsel %vm5265_vm7, %v679_v36, %v1039_v31  ;;  %v733_v38 = vshrl.u32 %v193_v10, 16  ;;  %v213_v14 = vrot.slane %v5272_v29, 4  ;;  %1428 = vrot.lane.b32.xlu1 %v5807_v59, %s4976_s15  ;;  %1360 = vst.msk [vmem:[#allocation3 + $0xe0] sm:$0xff] %vm1331_vm8, %v5807_v59  ;;  %v736_v17 = vshll.u32 %v193_v10, 16 }
  0x8e   :  { %1041 = vst [vmem:[#allocation2 + $0x174] sm:$0xf] %v1040_v41  ;;  %v190_v47 = vld [vmem:[%s7470_s0 + $0xf0] sm:$0xf]  ;;  %v191_v31 = vld [vmem:[%s7470_s0 + $0xf4] sm:$0xf]  ;;  %v688_v22 = vsel %vm5255_vm6, %v680_v9, %v687_v20 }
  0x8f   :  { %v727_v60 = vrot.slane %v725_v58, 7  ;;  %v5829_v29 = vrot.slane %v733_v38, 7  ;;  %v1060_v1 = vld [vmem:[#allocation2 + $0x198] sm:$0xf]  ;;  %v708_v53 = vshrl.u32 %v190_v47, 16  ;;  %v711_v36 = vshll.u32 %v190_v47, 16 }
  0x90   :  { %v716_v43 = vshrl.u32 %v191_v31, 16  ;;  %v719_v41 = vshll.u32 %v191_v31, 16  ;;  %1042 = vst.msk [vmem:[#allocation2 + $0x178] sm:$0xf] %vm20_vm0, %v688_v22  ;;  %v1053_v6 = vld [vmem:[#allocation2 + $0x18c] sm:$0xf] }
  0x91   :  { %7520 = vst [vmem:[#allocation25_spill] sm:$0xff] %v5829_v29  ;;  %v5833_v10 = vld [vmem:[#allocation2 + $0x15c] sm:$0xff]   ;;  %v730_v4 = vor.u32 %v728_v63, %v727_v60  ;;  %v731_v32 = vrot.slane %v727_v60, 4  ;;  %v738_v59 = vor.u32 %v736_v17, %v5829_v29  ;;  %v710_v58 = vrot.slane %v708_v53, 7  ;;  %v847_v60 = vld [vmem:[#allocation2 + $0x14] sm:$0x1] }
  0x92   :  { %v5837_v38 = vrot.slane %v716_v43, 7  ;;  %1426 = vrot.lane.b32.xlu0 %v5833_v10, %s4976_s15  ;;  %1359 = vst.msk [vmem:[#allocation3 + $0xd8] sm:$0xff] %vm1331_vm8, %v5833_v10  ;;  %v247_v53 = vrot.slane %v5248_v13, 4  ;;  %v1645_v16 = vld [vmem:[#allocation2 + $0xc] sm:$0xf]  ;;  %s4977_s0 = smov 24  }
  0x93   :  { %v5843_v9 = vld [vmem:[#allocation2 + $0x180] sm:$0xff]   ;;  %v739_v20 = vsel %vm5255_vm6, %v731_v32, %v738_v59  ;;  %v1061_v63 = vsel %vm5265_vm7, %v730_v4, %v1060_v1  ;;  %v713_v17 = vor.u32 %v711_v36, %v710_v58  ;;  %v714_v47 = vrot.slane %v710_v58, 4  ;;  %v1646_v24 = vld [vmem:[#allocation2 + $0x10] sm:$0xf]  ;;  %v861_v22 = vld [vmem:[#allocation2 + $0x2c] sm:$0x1] }
  0x94   :  { %7521 = vst [vmem:[#allocation26_spill] sm:$0xff] %v5837_v38  ;;  %7522 = vst [vmem:[#allocation27_spill] sm:$0xff] %v5843_v9  ;;  %v721_v31 = vor.u32 %v719_v41, %v5837_v38  ;;  %1432 = vrot.lane.b32.xlu1 %v5843_v9, %s4976_s15  ;;  %v848_v32 = vsel %vm5241_vm5, %v213_v14, %v847_v60  ;;  %v230_v14 = vrot.slane %v5302_v56, 4  ;;  %v1642_v36 = vld [vmem:[#allocation2] sm:$0xf]  ;;  %v1778_v43 = vshrl.u32 %v1645_v16, 16 }
  0x95   :  { %1062 = vst [vmem:[#allocation2 + $0x198] sm:$0xf] %v1061_v63  ;;  %1063 = vst.msk [vmem:[#allocation2 + $0x19c] sm:$0xf] %vm20_vm0, %v739_v20  ;;  %v1054_v4 = vsel %vm5265_vm7, %v713_v17, %v1053_v6  ;;  %v1781_v41 = vshll.u32 %v1645_v16, 16  ;;  %v1787_v13 = vshll.u32 %v1646_v24, 16  ;;  %v862_v58 = vsel %vm5241_vm5, %v247_v53, %v861_v22 }
  0x96   :  { %1362 = vst.msk [vmem:[#allocation3 + $0xf0] sm:$0xff] %vm1331_vm8, %v5843_v9  ;;  %v722_v59 = vsel %vm5255_vm6, %v714_v47, %v721_v31  ;;  %1055 = vst [vmem:[#allocation2 + $0x18c] sm:$0xf] %v1054_v4  ;;  %v1791_v63 = vshrl.u32 %v1646_v24, 16  ;;  %v1643_v47 = vld [vmem:[#allocation2 + $0x4] sm:$0xf] }
  0x97   :  { %1056 = vst.msk [vmem:[#allocation2 + $0x190] sm:$0xf] %vm20_vm0, %v722_v59  ;;  %849 = vst [vmem:[#allocation2 + $0x14] sm:$0x1] %v848_v32  ;;  %v5862_v1 = vld [vmem:[#allocation2 + $0x174] sm:$0xff]   ;;  %v1754_v31 = vshrl.u32 %v1642_v36, 16 }
  0x98   :  { %1430 = vrot.lane.b32.xlu0 %v5862_v1, %s4976_s15  ;;  %1361 = vst.msk [vmem:[#allocation3 + $0xe8] sm:$0xff] %vm1331_vm8, %v5862_v1  ;;  %863 = vst [vmem:[#allocation2 + $0x2c] sm:$0x1] %v862_v58  ;;  %v1757_v56 = vshll.u32 %v1642_v36, 16  ;;  %v281_v59 = vrot.slane %v5327_v21, 4  ;;  %v1780_v24 = vrot.slane %v1778_v43, 4 }
  0x99   :  { %v854_v53 = vld [vmem:[#allocation2 + $0x20] sm:$0x1]  ;;  %v1783_v36 = vrot.slane %v1781_v41, 5  ;;  %v5890_v21 = vrot.slane %v1787_v13, 5  ;;  %v1793_v22 = vrot.slane %v1791_v63, 4  ;;  %v1763_v58 = vshll.u32 %v1643_v47, 16 }
  0x9a   :  { %v1767_v4 = vshrl.u32 %v1643_v47, 16  ;;  %v855_v60 = vsel %vm5241_vm5, %v230_v14, %v854_v53  ;;  %v1756_v29 = vrot.slane %v1754_v31, 4  ;;  %v1759_v16 = vrot.slane %v1757_v56, 5  ;;  %v1644_v41 = vld [vmem:[#allocation2 + $0x8] sm:$0x1] }
  0x9b   :  { %856 = vst [vmem:[#allocation2 + $0x20] sm:$0x1] %v855_v60  ;;  %v1784_v47 = vor.u32 %v1783_v36, %v1780_v24  ;;  %v875_v31 = vld [vmem:[#allocation2 + $0x44] sm:$0x1]  ;;  %v1794_v60 = vor.u32 %v1793_v22, %v5890_v21  ;;  %v5907_v53 = vrot.slane %v1763_v58, 5  ;;  %v1773_v13 = vshll.u32 %v1644_v41, 16 }
  0x9c   :  { %v5869_v6 = vld [vmem:[#allocation2 + $0x198] sm:$0xff]   ;;  %v1760_v38 = vor.u32 %v1759_v16, %v1756_v29  ;;  %v1652_v32 = vld [vmem:[#allocation2 + $0x28] sm:$0xf]  ;;  %v1654_v15 = vld [vmem:[#allocation2 + $0x30] sm:$0xf] }
  0x9d   :  { %7523 = vst [vmem:[#allocation28_spill] sm:$0xff] %v5869_v6  ;;  %1436 = vrot.lane.b32.xlu1 %v5869_v6, %s4976_s15  ;;  %v868_v14 = vld [vmem:[#allocation2 + $0x38] sm:$0x1]  ;;  %v5918_v36 = vrot.slane %v1794_v60, 4  ;;  %v1649_v58 = vld [vmem:[#allocation2 + $0x1c] sm:$0xf] }
  0x9e   :  { %v5876_v20 = vld [vmem:[#allocation2 + $0x18c] sm:$0xff]   ;;  %v1647_v43 = vld [vmem:[#allocation2 + $0x14] sm:$0x1]  ;;  %v1648_v24 = vld [vmem:[#allocation2 + $0x18] sm:$0xf] }
  0x9f   :  { %1434 = vrot.lane.b32.xlu0 %v5876_v20, %s4976_s15  ;;  %1363 = vst.msk [vmem:[#allocation3 + $0xf8] sm:$0xff] %vm1331_vm8, %v5876_v20  ;;  %v1797_v17 = vshll.u32 %v1647_v43, 16  ;;  %v7524_v43 = vrot.slane %v5288_v44, 4  ;;  %v1802_v60 = vshrl.u32 %v1648_v24, 16  ;;  %v889_v63 = vld [vmem:[#allocation2 + $0x5c] sm:$0x1] }
  0xa0   :  { %v1655_v35 = vld [vmem:[#allocation2 + $0x34] sm:$0xf]  ;;  %v1660_v28 = vld [vmem:[#allocation2 + $0x48] sm:$0xf]  ;;  %s4978_s15 = smov 4  }
  0xa1   :  { %1515 = vrot.lane.b32.xlu1 %v5321_v12, %s4977_s0  ;;  %v1651_v12 = vld [vmem:[#allocation2 + $0x24] sm:$0xf]  ;;  %v5925_v41 = vrot.slane %v1797_v17, 5 }
  0xa2   :  { %v1826_v29 = vshrl.u32 %v1651_v12, 16  ;;  %v1829_v16 = vshll.u32 %v1651_v12, 16  ;;  %v1839_v12 = vshrl.u32 %v1652_v32, 16 }
  0xa3   :  { %1513 = vrot.lane.b32.xlu0 %v5365_v54, %s4977_s0  ;;  %v1769_v54 = vrot.slane %v1767_v4, 4  ;;  %v5916_v4 = vrot.slane %v1784_v47, 4  ;;  %v5929_v47 = vrot.slane %v1773_v13, 5 }
  0xa4   :  { %v1828_v17 = vrot.slane %v1826_v29, 4 }
  0xa5   :  { %1519 = vrot.lane.b32.xlu1 %v5398_v18, %s4977_s0  ;;  %v876_v18 = vsel %vm5241_vm5, %v281_v59, %v875_v31  ;;  %v1770_v22 = vor.u32 %v1769_v54, %v5907_v53  ;;  %v869_v59 = vsel %vm5241_vm5, %v7524_v43, %v868_v14  ;;  %v1657_v31 = vld [vmem:[#allocation2 + $0x3c] sm:$0xf]  ;;  %v1805_v54 = vshll.u32 %v1648_v24, 16 }
  0xa6   :  { %877 = vst [vmem:[#allocation2 + $0x44] sm:$0x1] %v876_v18  ;;  %870 = vst [vmem:[#allocation2 + $0x38] sm:$0x1] %v869_v59  ;;  %v1658_v18 = vld [vmem:[#allocation2 + $0x40] sm:$0xf] }
  0xa7   :  { %1517 = vrot.lane.b32.xlu0 %v5347_v40, %s4977_s0  ;;  %v1835_v40 = vshll.u32 %v1652_v32, 16  ;;  %v1831_v14 = vrot.slane %v1829_v16, 5  ;;  %v1815_v43 = vshrl.u32 %v1649_v58, 16  ;;  %v5936_v32 = vrot.slane %v1770_v22, 4 }
  0xa8   :  { %v1874_v59 = vshrl.u32 %v1657_v31, 16  ;;  %v1883_v29 = vshll.u32 %v1658_v18, 16  ;;  %v1887_v16 = vshrl.u32 %v1658_v18, 16 }
  0xa9   :  { %1523 = vrot.lane.b32.xlu1 %v5430_v50, %s4977_s0  ;;  %v5927_v50 = vrot.slane %v1760_v38, 4  ;;  %v1811_v38 = vshll.u32 %v1649_v58, 16  ;;  %v5938_v13 = vrot.slane %v1835_v40, 5  ;;  %v7527_v58 = vrot.slane %v5363_v51, 4  ;;  %v1653_v40 = vld [vmem:[#allocation2 + $0x2c] sm:$0x1] }
  0xaa   :  { %v1817_v51 = vrot.slane %v1815_v43, 4 }
  0xab   :  { %1521 = vrot.lane.b32.xlu0 %v5381_v0, %s4977_s0  ;;  %v1877_v0 = vshll.u32 %v1657_v31, 16  ;;  %v890_v22 = vsel %vm5241_vm5, %v7527_v58, %v889_v63  ;;  %v1804_v31 = vrot.slane %v1802_v60, 4  ;;  %v5955_v18 = vrot.slane %v1811_v38, 5  ;;  %v1650_v63 = vld [vmem:[#allocation2 + $0x20] sm:$0x1] }
  0xac   :  { %891 = vst [vmem:[#allocation2 + $0x5c] sm:$0x1] %v890_v22  ;;  %v5962_v58 = vrot.slane %v1883_v29, 5  ;;  %v1821_v22 = vshll.u32 %v1650_v63, 16  ;;  %v1663_v38 = vld [vmem:[#allocation2 + $0x54] sm:$0xf] }
  0xad   :  { %1527 = vrot.lane.b32.xlu1 %v5478_v37, %s4977_s0  ;;  %v1841_v37 = vrot.slane %v1839_v12, 4  ;;  %v1832_v12 = vor.u32 %v1831_v14, %v1828_v17  ;;  %v1879_v60 = vrot.slane %v1877_v0, 5  ;;  %v1850_v17 = vshrl.u32 %v1654_v15, 16  ;;  %v1656_v63 = vld [vmem:[#allocation2 + $0x38] sm:$0x1] }
  0xae   :  { %v1853_v14 = vshll.u32 %v1654_v15, 16  ;;  %v1863_v0 = vshrl.u32 %v1655_v35, 16  ;;  %v1800_v15 = vsel %vm5942_vm12, %v5918_v36, %v5925_v41  ;;  %v4943_v41 = vld [vmem:[#allocation2 + $0xcc] sm:$0xff]  }
  0xaf   :  { %1525 = vrot.lane.b32.xlu0 %v5424_v45, %s4977_s0  ;;  %v1842_v43 = vor.u32 %v1841_v37, %v5938_v13  ;;  %v5981_v29 = vrot.slane %v1832_v12, 4  ;;  %v1659_v37 = vld [vmem:[#allocation2 + $0x44] sm:$0x1]  ;;  %v1664_v45 = vld [vmem:[#allocation2 + $0x58] sm:$0xf] }
  0xb0   :  { %v1855_v12 = vrot.slane %v1853_v14, 5  ;;  %v1893_v3 = vshll.u32 %v1659_v37, 16 }
  0xb1   :  { %1531 = vrot.lane.b32.xlu1 %v5525_v27, %s4977_s0  ;;  %v1889_v27 = vrot.slane %v1887_v16, 4  ;;  %v1845_v16 = vshll.u32 %v1653_v40, 16  ;;  %v1852_v40 = vrot.slane %v1850_v17, 4 }
  0xb3   :  { %1529 = vrot.lane.b32.xlu0 %v5472_v33, %s4977_s0  ;;  %v1776_v33 = vsel %vm5942_vm12, %v5936_v32, %v5929_v47  ;;  %v1890_v32 = vor.u32 %v1889_v27, %v5962_v58  ;;  %v1935_v27 = vshrl.u32 %v1664_v45, 16  ;;  %v1847_v14 = vrot.slane %v1845_v16, 5 }
  0xb4   :  { %v1379_v44 = vpop.permute.xlu1 %1378  ;;  %v1375_v56 = vpop.permute.xlu0 %1374  ;;  %v1869_v16 = vshll.u32 %v1656_v63, 16  ;;  %v1669_v63 = vld [vmem:[#allocation2 + $0x6c] sm:$0xf] }
  0xb5   :  { %1473 = vst.msk [vmem:[#allocation3 + $0x10] sm:$0xff] %vm1470_vm11, %v1379_v44  ;;  %1471 = vst.msk [vmem:[#allocation3] sm:$0xff] %vm1470_vm11, %v1375_v56  ;;  %v1807_v44 = vrot.slane %v1805_v54, 5  ;;  %v1876_v56 = vrot.slane %v1874_v59, 4  ;;  %v882_v54 = vld [vmem:[#allocation2 + $0x50] sm:$0x1]  ;;  %1535 = vrot.lane.b32.xlu1 %v5559_v7, %s4977_s0  ;;  %v1818_v7 = vor.u32 %v1817_v51, %v5955_v18 }
  0xb6   :  { %v1859_v59 = vshll.u32 %v1655_v35, 16  ;;  %v883_v36 = vsel %vm5241_vm5, %v7528_v39, %v882_v54  ;;  %v1865_v39 = vrot.slane %v1863_v0, 4  ;;  %v896_v51 = vld [vmem:[#allocation2 + $0x68] sm:$0x1]  ;;  %v1931_v54 = vshll.u32 %v1664_v45, 16 }
  0xb7   :  { %v1808_v35 = vor.u32 %v1807_v44, %v1804_v31  ;;  %v1880_v47 = vor.u32 %v1879_v60, %v1876_v56  ;;  %884 = vst [vmem:[#allocation2 + $0x50] sm:$0x1] %v883_v36  ;;  %1533 = vrot.lane.b32.xlu0 %v5505_v2, %s4977_s0  ;;  %v5993_v31 = vrot.slane %v1842_v43, 4  ;;  %v1922_v56 = vshrl.u32 %v1663_v38, 16 }
  0xb8   :  { %v1381_v6 = vpop.permute.xlu1 %1380  ;;  %v5995_v44 = vrot.slane %v1859_v59, 5  ;;  %v1925_v60 = vshll.u32 %v1663_v38, 16  ;;  %v1819_v36 = vrot.slane %v1818_v7, 4  ;;  %v1823_v59 = vrot.slane %v1821_v22, 5 }
  0xb9   :  { %1474 = vst.msk [vmem:[#allocation3 + $0x18] sm:$0xff] %vm1470_vm11, %v1381_v6  ;;  %v1377_v6 = vpop.permute.xlu0 %1376  ;;  %1539 = vrot.lane.b32.xlu1 %v5606_v30, %s4977_s0  ;;  %v1809_v2 = vrot.slane %v1808_v35, 4  ;;  %v1881_v0 = vrot.slane %v1880_v47, 4  ;;  %v1891_v37 = vrot.slane %v1890_v32, 4  ;;  %v1856_v30 = vor.u32 %v1855_v12, %v1852_v40 }
  0xba   :  { %1472 = vst.msk [vmem:[#allocation3 + $0x8] sm:$0xff] %vm1470_vm11, %v1377_v6  ;;  %v903_v6 = vld [vmem:[#allocation2 + $0x74] sm:$0x1]  ;;  %v1895_v45 = vrot.slane %v1893_v3, 5  ;;  %v1866_v38 = vor.u32 %v1865_v39, %v5995_v44  ;;  %v1924_v7 = vrot.slane %v1922_v56, 4  ;;  %v1927_v22 = vrot.slane %v1925_v60, 5 }
  0xbb   :  { %1537 = vrot.lane.b32.xlu0 %v5542_v49, %s4977_s0  ;;  %v6012_v47 = vrot.slane %v1931_v54, 5  ;;  %v1937_v32 = vrot.slane %v1935_v27, 4  ;;  %v7531_v49 = vsel %vm5942_vm12, %v5916_v4, %v5890_v21  ;;  %v917_v3 = vld [vmem:[#allocation2 + $0x8c] sm:$0x1]  ;;  %v1848_v21 = vsel %vm5942_vm12, %v5993_v31, %v1847_v14  ;;  %v1670_v27 = vld [vmem:[#allocation2 + $0x70] sm:$0xf] }
  0xbc   :  { %v1385_v9 = vpop.permute.xlu1 %1384  ;;  %v6019_v40 = vcombine.low %v7531_v49, %v1800_v15  ;;  %v1814_v4 = vsel %vm5942_vm12, %v1809_v2, %v5955_v18  ;;  %v4950_v15 = vld [vmem:[#allocation2 + $0xc0] sm:$0xff]   ;;  %v6047_v31 = vrot.slane %v1856_v30, 4  ;;  %v6049_v18 = vrot.slane %v1866_v38, 4 }
  0xbd   :  { %1476 = vst.msk [vmem:[#allocation3 + $0x28] sm:$0xff] %vm1470_vm11, %v1385_v9  ;;  %v1383_v17 = vpop.permute.xlu0 %1382  ;;  %v7529_v9 = vrot.slane %v5402_v26, 4  ;;  %v7530_v26 = vrot.slane %v5354_v48, 4  ;;  %1543 = vrot.lane.b32.xlu1 %v4943_v41, %s4977_s0  ;;  %v7532_v48 = vsel %vm5942_vm12, %v5927_v50, %v5907_v53  ;;  %v1898_v41 = vshrl.u32 %v1660_v28, 16  ;;  %v1665_v50 = vld [vmem:[#allocation2 + $0x5c] sm:$0x1] }
  0xbe   :  { %1475 = vst.msk [vmem:[#allocation3 + $0x20] sm:$0xff] %vm1470_vm11, %v1383_v17  ;;  %v6026_v12 = vcombine.low %v7532_v48, %v1776_v33  ;;  %v1824_v53 = vsel %vm5942_vm12, %v1819_v36, %v1823_v59  ;;  %v6054_v56 = vrot.slane %v1869_v16, 5  ;;  %v1928_v60 = vor.u32 %v1927_v22, %v1924_v7  ;;  %v1666_v16 = vld [vmem:[#allocation2 + $0x60] sm:$0xf]  ;;  %v1667_v22 = vld [vmem:[#allocation2 + $0x64] sm:$0xf] }
  0xbf   :  { %v904_v43 = vsel %vm5241_vm5, %v7529_v9, %v903_v6  ;;  %v897_v35 = vsel %vm5241_vm5, %v7530_v26, %v896_v51  ;;  %v1901_v6 = vshll.u32 %v1660_v28, 16  ;;  %v1838_v51 = vsel %vm5942_vm12, %v5981_v29, %v5938_v13  ;;  %v1661_v28 = vld [vmem:[#allocation2 + $0x4c] sm:$0xf]  ;;  %1541 = vrot.lane.b32.xlu0 %v4950_v15, %s4977_s0 }
  0xc0   :  { %905 = vst [vmem:[#allocation2 + $0x74] sm:$0x1] %v904_v43  ;;  %898 = vst [vmem:[#allocation2 + $0x68] sm:$0x1] %v897_v35  ;;  %v1389_v39 = vpop.permute.xlu1 %1388  ;;  %v1886_v13 = vsel %vm5942_vm12, %v1881_v0, %v5962_v58  ;;  %v1896_v29 = vsel %vm5942_vm12, %v1891_v37, %v1895_v45  ;;  %v1938_v54 = vor.u32 %v1937_v32, %v6012_v47  ;;  %v7533_v58 = vrot.slane %v5455_v5, 4 }
  0xc1   :  { %1478 = vst.msk [vmem:[#allocation3 + $0x38] sm:$0xff] %vm1470_vm11, %v1389_v39  ;;  %v1387_v33 = vpop.permute.xlu0 %1386  ;;  %1547 = vrot.lane.b32.xlu1 %v5677_v42, %s4977_s0  ;;  %v1941_v14 = vshll.u32 %v1665_v50, 16  ;;  %v1900_v2 = vrot.slane %v1898_v41, 4  ;;  %v1903_v36 = vrot.slane %v1901_v6, 5  ;;  %v1907_v9 = vshll.u32 %v1661_v28, 16 }
  0xc2   :  { %1477 = vst.msk [vmem:[#allocation3 + $0x30] sm:$0xff] %vm1470_vm11, %v1387_v33  ;;  %v918_v17 = vsel %vm5241_vm5, %v7533_v58, %v917_v3  ;;  %v6061_v43 = vcombine.low %v1838_v51, %v1848_v21  ;;  %v1911_v42 = vshrl.u32 %v1661_v28, 16  ;;  %v1970_v59 = vshrl.u32 %v1669_v63, 16  ;;  %v910_v37 = vld [vmem:[#allocation2 + $0x80] sm:$0x1] }
  0xc3   :  { %919 = vst [vmem:[#allocation2 + $0x8c] sm:$0x1] %v918_v17  ;;  %v1973_v0 = vshll.u32 %v1669_v63, 16  ;;  %1545 = vrot.lane.b32.xlu0 %v5625_v62, %s4977_s0  ;;  %v6065_v30 = vcombine.low %v1814_v4, %v1824_v53  ;;  %v6067_v5 = vcombine.low %v1886_v13, %v1896_v29  ;;  %v1862_v45 = vsel %vm5942_vm12, %v6047_v31, %v5995_v44  ;;  %v1675_v41 = vld [vmem:[#allocation2 + $0x84] sm:$0xf] }
  0xc4   :  { %v1979_v38 = vshll.u32 %v1670_v27, 16  ;;  %v1872_v26 = vsel %vm5942_vm12, %v6049_v18, %v6054_v56  ;;  %v6079_v62 = vrot.slane %v1928_v60, 4  ;;  %v6081_v35 = vrot.slane %v1938_v54, 4  ;;  %v1676_v6 = vld [vmem:[#allocation2 + $0x88] sm:$0xf] }
  0xc5   :  { %1551 = vrot.lane.b32.xlu1 %v5721_v11, %s4977_s0  ;;  %v1983_v7 = vshrl.u32 %v1670_v27, 16  ;;  %v6083_v32 = vrot.slane %v1941_v14, 5  ;;  %v1904_v49 = vor.u32 %v1903_v36, %v1900_v2  ;;  %v6085_v48 = vrot.slane %v1907_v9, 5  ;;  %v1393_v39 = vpop.permute.xlu1 %1392  ;;  %v1391_v50 = vpop.permute.xlu0 %1390  ;;  %v1662_v28 = vld [vmem:[#allocation2 + $0x50] sm:$0x1] }
  0xc6   :  { %v7534_v11 = vrot.slane %v5400_v23, 4  ;;  %v1913_v51 = vrot.slane %v1911_v42, 4  ;;  %v6091_v21 = vrot.slane %v1970_v59, 4  ;;  %v6093_v4 = vrot.slane %v1973_v0, 5  ;;  %1480 = vst.msk [vmem:[#allocation3 + $0x48] sm:$0xff] %vm1470_vm11, %v1393_v39  ;;  %1479 = vst.msk [vmem:[#allocation3 + $0x40] sm:$0xff] %vm1470_vm11, %v1391_v50 }
  0xc7   :  { %v1946_v53 = vshrl.u32 %v1666_v16, 16  ;;  %1549 = vrot.lane.b32.xlu0 %v5663_v61, %s4977_s0  ;;  %v6098_v15 = vrot.slane %v1979_v38, 5  ;;  %v1949_v23 = vshll.u32 %v1666_v16, 16  ;;  %v1955_v33 = vshll.u32 %v1667_v22, 16  ;;  %v931_v27 = vld [vmem:[#allocation2 + $0xa4] sm:$0x1] }
  0xc8   :  { %v911_v3 = vsel %vm5241_vm5, %v7534_v11, %v910_v37  ;;  %v1959_v13 = vshrl.u32 %v1667_v22, 16  ;;  %v1985_v29 = vrot.slane %v1983_v7, 4  ;;  %v2018_v63 = vshrl.u32 %v1675_v41, 16  ;;  %v1672_v14 = vld [vmem:[#allocation2 + $0x78] sm:$0xf] }
  0xc9   :  { %912 = vst [vmem:[#allocation2 + $0x80] sm:$0x1] %v911_v3  ;;  %1555 = vrot.lane.b32.xlu1 %v5762_v19, %s4977_s0  ;;  %v2021_v60 = vshll.u32 %v1675_v41, 16  ;;  %v2027_v54 = vshll.u32 %v1676_v6, 16  ;;  %v1934_v61 = vsel %vm5942_vm12, %v6079_v62, %v6012_v47  ;;  %v1944_v58 = vsel %vm5942_vm12, %v6081_v35, %v6083_v32  ;;  %v1673_v59 = vld [vmem:[#allocation2 + $0x7c] sm:$0xf] }
  0xca   :  { %v6111_v17 = vrot.slane %v1904_v49, 4  ;;  %v2031_v19 = vshrl.u32 %v1676_v6, 16  ;;  %v1914_v2 = vor.u32 %v1913_v51, %v6085_v48  ;;  %v1917_v36 = vshll.u32 %v1662_v28, 16  ;;  %v924_v0 = vld [vmem:[#allocation2 + $0x98] sm:$0x1]  ;;  %v1397_v37 = vpop.permute.xlu1 %1396 }
  0xcb   :  { %v1976_v9 = vor.u32 %v6093_v4, %v6091_v21  ;;  %v1948_v42 = vrot.slane %v1946_v53, 4  ;;  %1553 = vrot.lane.b32.xlu0 %v5703_v25, %s4977_s0  ;;  %v1671_v38 = vld [vmem:[#allocation2 + $0x74] sm:$0x1]  ;;  %v1951_v16 = vrot.slane %v1949_v23, 5  ;;  %v6118_v7 = vrot.slane %v1955_v33, 5  ;;  %1482 = vst.msk [vmem:[#allocation3 + $0x58] sm:$0xff] %vm1470_vm11, %v1397_v37 }
  0xcc   :  { %v1961_v22 = vrot.slane %v1959_v13, 4  ;;  %v7535_v49 = vrot.slane %v5486_v46, 4  ;;  %v1986_v6 = vor.u32 %v1985_v29, %v6098_v15  ;;  %v1668_v11 = vld [vmem:[#allocation2 + $0x68] sm:$0x1]  ;;  %v2020_v25 = vrot.slane %v2018_v63, 4 }
  0xcd   :  { %1559 = vrot.lane.b32.xlu1 %v5793_v34, %s4977_s0  ;;  %v2023_v3 = vrot.slane %v2021_v60, 5  ;;  %v6128_v39 = vrot.slane %v2027_v54, 5  ;;  %v2033_v51 = vrot.slane %v2031_v19, 4  ;;  %v1994_v21 = vshrl.u32 %v1672_v14, 16  ;;  %v1395_v50 = vpop.permute.xlu0 %1394  ;;  %v1677_v23 = vld [vmem:[#allocation2 + $0x8c] sm:$0x1] }
  0xce   :  { %v932_v41 = vsel %vm5241_vm5, %v7535_v49, %v931_v27  ;;  %v1997_v4 = vshll.u32 %v1672_v14, 16  ;;  %v7536_v46 = vrot.slane %v5435_v57, 4  ;;  %v6134_v34 = vrot.slane %v1914_v2, 4  ;;  %1481 = vst.msk [vmem:[#allocation3 + $0x50] sm:$0xff] %vm1470_vm11, %v1395_v50  ;;  %v945_v54 = vld [vmem:[#allocation2 + $0xbc] sm:$0x1] }
  0xcf   :  { %933 = vst [vmem:[#allocation2 + $0xa4] sm:$0x1] %v932_v41  ;;  %v6136_v28 = vrot.slane %v1917_v36, 5  ;;  %v2003_v33 = vshll.u32 %v1673_v59, 16  ;;  %v2007_v13 = vshrl.u32 %v1673_v59, 16  ;;  %1557 = vrot.lane.b32.xlu0 %v5741_v55, %s4977_s0  ;;  %v1989_v29 = vshll.u32 %v1671_v38, 16 }
  0xd0   :  { %v925_v53 = vsel %vm5241_vm5, %v7536_v46, %v924_v0  ;;  %v1952_v63 = vor.u32 %v1951_v16, %v1948_v42  ;;  %v1962_v57 = vor.u32 %v1961_v22, %v6118_v7  ;;  %v1965_v60 = vshll.u32 %v1668_v11, 16  ;;  %v1681_v2 = vld [vmem:[#allocation2 + $0x9c] sm:$0xf]  ;;  %v1401_v36 = vpop.permute.xlu1 %1400  ;;  %v1682_v38 = vld [vmem:[#allocation2 + $0xa0] sm:$0xf] }
  0xd1   :  { %926 = vst [vmem:[#allocation2 + $0x98] sm:$0x1] %v925_v53  ;;  %1563 = vrot.lane.b32.xlu1 %v5833_v10, %s4977_s0  ;;  %v1910_v27 = vsel %vm5942_vm12, %v6111_v17, %v6085_v48  ;;  %v6148_v19 = vrot.slane %v1976_v9, 4  ;;  %v6150_v14 = vrot.slane %v1986_v6, 4  ;;  %v2024_v55 = vor.u32 %v2023_v3, %v2020_v25  ;;  %1484 = vst.msk [vmem:[#allocation3 + $0x68] sm:$0xff] %vm1470_vm11, %v1401_v36  ;;  %v7538_v6 = vld [vmem:[#allocation22_spill] sm:$0xff] }
  0xd2   :  { %v2034_v42 = vor.u32 %v2033_v51, %v6128_v39  ;;  %v2037_v59 = vshll.u32 %v1677_v23, 16  ;;  %v1996_v0 = vrot.slane %v1994_v21, 4  ;;  %v1999_v37 = vrot.slane %v1997_v4, 5  ;;  %v1678_v22 = vld [vmem:[#allocation2 + $0x90] sm:$0xf] }
  0xd3   :  { %v1920_v10 = vsel %vm5942_vm12, %v6134_v34, %v6136_v28  ;;  %v6158_v9 = vrot.slane %v2003_v33, 5  ;;  %v2009_v16 = vrot.slane %v2007_v13, 4  ;;  %v7537_v49 = vrot.slane %v5544_v52, 4  ;;  %1561 = vrot.lane.b32.xlu0 %v7538_v6, %s4977_s0  ;;  %v1674_v21 = vld [vmem:[#allocation2 + $0x80] sm:$0x1]  ;;  %v1399_v4 = vpop.permute.xlu0 %1398 }
  0xd4   :  { %v1991_v11 = vrot.slane %v1989_v29, 5  ;;  %v1953_v25 = vrot.slane %v1952_v63, 4  ;;  %v1963_v3 = vrot.slane %v1962_v57, 4  ;;  %v1967_v51 = vrot.slane %v1965_v60, 5  ;;  %1483 = vst.msk [vmem:[#allocation3 + $0x60] sm:$0xff] %vm1470_vm11, %v1399_v4 }
  0xd5   :  { %v946_v41 = vsel %vm5241_vm5, %v7537_v49, %v945_v54  ;;  %1567 = vrot.lane.b32.xlu1 %v5862_v1, %s4977_s0  ;;  %v2066_v46 = vshrl.u32 %v1681_v2, 16  ;;  %v2069_v53 = vshll.u32 %v1681_v2, 16  ;;  %v2075_v50 = vshll.u32 %v1682_v38, 16  ;;  %v938_v60 = vld [vmem:[#allocation2 + $0xb0] sm:$0x1] }
  0xd6   :  { %947 = vst [vmem:[#allocation2 + $0xbc] sm:$0x1] %v946_v41  ;;  %v2079_v52 = vshrl.u32 %v1682_v38, 16  ;;  %v2025_v34 = vrot.slane %v2024_v55, 4  ;;  %v2035_v28 = vrot.slane %v2034_v42, 4  ;;  %v2039_v23 = vrot.slane %v2037_v59, 5  ;;  %v1405_v1 = vpop.permute.xlu1 %1404 }
  0xd7   :  { %v2000_v33 = vor.u32 %v1999_v37, %v1996_v0  ;;  %v2010_v13 = vor.u32 %v2009_v16, %v6158_v9  ;;  %v2013_v29 = vshll.u32 %v1674_v21, 16  ;;  %v2042_v63 = vshrl.u32 %v1678_v22, 16  ;;  %v7539_v54 = vld [vmem:[#allocation23_spill] sm:$0xff]  ;;  %v4945_v59 = vld [vmem:[#allocation2 + $0x1a4] sm:$0xff]   ;;  %1486 = vst.msk [vmem:[#allocation3 + $0x78] sm:$0xff] %vm1470_vm11, %v1405_v1 }
  0xd8   :  { %v2045_v57 = vshll.u32 %v1678_v22, 16  ;;  %1565 = vrot.lane.b32.xlu0 %v7539_v54, %s4977_s0  ;;  %v1982_v2 = vsel %vm5942_vm12, %v6148_v19, %v6098_v15  ;;  %v1992_v55 = vsel %vm5942_vm12, %v6150_v14, %v1991_v11  ;;  %v1958_v36 = vsel %vm5942_vm12, %v1953_v25, %v6118_v7  ;;  %v1679_v16 = vld [vmem:[#allocation2 + $0x94] sm:$0xf]  ;;  %v959_v41 = vld [vmem:[#allocation2 + $0xec] sm:$0x1] }
  0xd9   :  { %v1968_v42 = vsel %vm5942_vm12, %v1963_v3, %v1967_v51  ;;  %1571 = vrot.lane.b32.xlu1 %v5876_v20, %s4977_s0  ;;  %v2068_v0 = vrot.slane %v2066_v46, 4  ;;  %v2071_v37 = vrot.slane %v2069_v53, 5  ;;  %v6187_v15 = vrot.slane %v2075_v50, 5  ;;  %v7540_v22 = vld [vmem:[#allocation7_spill] sm:$0xff]  ;;  %v1683_v25 = vld [vmem:[#allocation2 + $0xa4] sm:$0x1] }
  0xda   :  { %v2081_v19 = vrot.slane %v2079_v52, 4  ;;  %v2030_v14 = vsel %vm5942_vm12, %v2025_v34, %v6128_v39  ;;  %v2040_v7 = vsel %vm5942_vm12, %v2035_v28, %v2039_v23  ;;  %v6194_v38 = vrot.slane %v2000_v33, 4  ;;  %v7542_v39 = vld [vmem:[#allocation27_spill] sm:$0xff]  ;;  %v1688_v62 = vld [vmem:[#allocation2 + $0xb8] sm:$0xf] }
  0xdb   :  { %v7541_v20 = vrot.slane %v7540_v22, 4  ;;  %v6200_v6 = vrot.slane %v2010_v13, 4  ;;  %v6202_v11 = vrot.slane %v2013_v29, 5  ;;  %v2044_v3 = vrot.slane %v2042_v63, 4  ;;  %v1687_v18 = vld [vmem:[#allocation2 + $0xb4] sm:$0xf] }
  0xdc   :  { %v2047_v51 = vrot.slane %v2045_v57, 5  ;;  %1569 = vrot.lane.b32.xlu0 %v7542_v39, %s4977_s0  ;;  %v6216_v21 = vcombine.low %v1862_v45, %v1872_v26  ;;  %v6228_v4 = vcombine.low %v1934_v61, %v1944_v58  ;;  %v6235_v44 = vcombine.low %v1910_v27, %v1920_v10  ;;  %v1684_v35 = vld [vmem:[#allocation2 + $0xa8] sm:$0xf]  ;;  %v1403_v32 = vpop.permute.xlu0 %1402  ;;  %v1685_v17 = vld [vmem:[#allocation2 + $0xac] sm:$0xf]  ;;  %v7545_v28 = vld [vmem:[#allocation28_spill] sm:$0xff] }
  0xdd   :  { %v939_v49 = vsel %vm5241_vm5, %v7541_v20, %v938_v60  ;;  %v6237_v31 = vcombine.low %v1982_v2, %v1992_v55  ;;  %1575 = vrot.lane.b32.xlu1 %v4945_v59, %s4977_s0  ;;  %v6240_v56 = vcombine.low %v1958_v36, %v1968_v42  ;;  %v6242_v45 = vcombine.low %v2030_v14, %v2040_v7  ;;  %v7543_v27 = vld [vmem:[#allocation10_spill] sm:$0xff]  ;;  %v1699_v63 = vld [vmem:[#allocation2 + $0xe4] sm:$0xf] }
  0xde   :  { %940 = vst [vmem:[#allocation2 + $0xb0] sm:$0x1] %v939_v49  ;;  %v2072_v26 = vor.u32 %v2071_v37, %v2068_v0  ;;  %v2082_v47 = vor.u32 %v2081_v19, %v6187_v15  ;;  %v2085_v61 = vshll.u32 %v1683_v25, 16  ;;  %v2051_v58 = vshll.u32 %v1679_v16, 16  ;;  %1485 = vst.msk [vmem:[#allocation3 + $0x70] sm:$0xff] %vm1470_vm11, %v1403_v32 }
  0xdf   :  { %v2055_v48 = vshrl.u32 %v1679_v16, 16  ;;  %v7544_v10 = vrot.slane %v7543_v27, 4  ;;  %v2006_v53 = vsel %vm5942_vm12, %v6194_v38, %v6158_v9  ;;  %v2016_v50 = vsel %vm5942_vm12, %v6200_v6, %v6202_v11  ;;  %v1700_v1 = vld [vmem:[#allocation2 + $0xe8] sm:$0xf]  ;;  %v1409_v2 = vpop.permute.xlu1 %1408  ;;  %v973_v0 = vld [vmem:[#allocation2 + $0x104] sm:$0x1] }
  0xe0   :  { %v2048_v52 = vor.u32 %v2047_v51, %v2044_v3  ;;  %v2114_v34 = vshrl.u32 %v1687_v18, 16  ;;  %1573 = vrot.lane.b32.xlu0 %v7545_v28, %s4977_s0  ;;  %v2117_v23 = vshll.u32 %v1687_v18, 16  ;;  %v2123_v33 = vshll.u32 %v1688_v62, 16  ;;  %1488 = vst.msk [vmem:[#allocation3 + $0x88] sm:$0xff] %vm1470_vm11, %v1409_v2  ;;  %v1680_v37 = vld [vmem:[#allocation2 + $0x98] sm:$0x1] }
  0xe1   :  { %v960_v46 = vsel %vm5241_vm5, %v7544_v10, %v959_v41  ;;  %v2127_v13 = vshrl.u32 %v1688_v62, 16  ;;  %v2090_v29 = vshrl.u32 %v1684_v35, 16  ;;  %2715 = vrot.lane.b32.xlu1 %v6019_v40, %s4978_s15  ;;  %v6262_v9 = vrot.slane %v2072_v26, 4  ;;  %v7546_v3 = vld [vmem:[#allocation12_spill] sm:$0xff] }
  0xe2   :  { %961 = vst [vmem:[#allocation2 + $0xec] sm:$0x1] %v960_v46  ;;  %v2093_v57 = vshll.u32 %v1684_v35, 16  ;;  %v2099_v60 = vshll.u32 %v1685_v17, 16  ;;  %v2103_v54 = vshrl.u32 %v1685_v17, 16  ;;  %v6264_v55 = vrot.slane %v2082_v47, 4 }
  0xe3   :  { %v6266_v36 = vrot.slane %v2085_v61, 5  ;;  %v6268_v42 = vrot.slane %v2051_v58, 5  ;;  %v2057_v59 = vrot.slane %v2055_v48, 4  ;;  %v6271_v19 = vrot.slane %v2048_v52, 4  ;;  %v1407_v41 = vpop.permute.xlu0 %1406  ;;  %v1689_v47 = vld [vmem:[#allocation2 + $0xbc] sm:$0x1] }
  0xe4   :  { %v2116_v14 = vrot.slane %v2114_v34, 4  ;;  %v2210_v7 = vshrl.u32 %v1699_v63, 16  ;;  %v2213_v38 = vshll.u32 %v1699_v63, 16  ;;  %2713 = vrot.lane.b32.xlu0 %v6026_v12, %s4978_s15  ;;  %v2119_v16 = vrot.slane %v2117_v23, 5  ;;  %1487 = vst.msk [vmem:[#allocation3 + $0x80] sm:$0xff] %vm1470_vm11, %v1407_v41 }
  0xe5   :  { %v6275_v22 = vrot.slane %v2123_v33, 5  ;;  %v2129_v20 = vrot.slane %v2127_v13, 4  ;;  %v2092_v49 = vrot.slane %v2090_v29, 4  ;;  %2719 = vrot.lane.b32.xlu1 %v6061_v43, %s4978_s15  ;;  %v2095_v6 = vrot.slane %v2093_v57, 5  ;;  %v1696_v35 = vld [vmem:[#allocation2 + $0xd8] sm:$0xf]  ;;  %v1413_v27 = vpop.permute.xlu1 %1412 }
  0xe6   :  { %v6279_v11 = vrot.slane %v2099_v60, 5  ;;  %v2105_v25 = vrot.slane %v2103_v54, 4  ;;  %v7547_v51 = vrot.slane %v7546_v3, 4  ;;  %v6286_v12 = vcombine.low %v2006_v53, %v2016_v50  ;;  %v966_v17 = vld [vmem:[#allocation2 + $0xf8] sm:$0x1]  ;;  %1490 = vst.msk [vmem:[#allocation3 + $0x98] sm:$0xff] %vm1470_vm11, %v1413_v27 }
  0xe7   :  { %v2058_v18 = vor.u32 %v2057_v59, %v6268_v42  ;;  %v2061_v26 = vshll.u32 %v1680_v37, 16  ;;  %v2219_v62 = vshll.u32 %v1700_v1, 16  ;;  %v2078_v32 = vsel %vm5942_vm12, %v6262_v9, %v6187_v15  ;;  %v1686_v52 = vld [vmem:[#allocation2 + $0xb0] sm:$0x1]  ;;  %v1697_v33 = vld [vmem:[#allocation2 + $0xdc] sm:$0xf] }
  0xe8   :  { %v974_v39 = vsel %vm5241_vm5, %v7547_v51, %v973_v0  ;;  %v2212_v61 = vrot.slane %v2210_v7, 4  ;;  %v2215_v58 = vrot.slane %v2213_v38, 5  ;;  %v2223_v48 = vshrl.u32 %v1700_v1, 16  ;;  %2717 = vrot.lane.b32.xlu0 %v6065_v30, %s4978_s15  ;;  %v1705_v60 = vld [vmem:[#allocation2 + $0xfc] sm:$0xf]  ;;  %v7548_v54 = vld [vmem:[#allocation9_spill] sm:$0xff] }
  0xe9   :  { %975 = vst [vmem:[#allocation2 + $0x104] sm:$0x1] %v974_v39  ;;  %v2088_v10 = vsel %vm5942_vm12, %v6264_v55, %v6266_v36  ;;  %v2054_v46 = vsel %vm5942_vm12, %v6271_v19, %v6268_v42  ;;  %v2120_v53 = vor.u32 %v2119_v16, %v2116_v14  ;;  %v2130_v50 = vor.u32 %v2129_v20, %v6275_v22  ;;  %v1411_v59 = vpop.permute.xlu0 %1410  ;;  %v6318_v7 = vld [vmem:[#allocation2 + $0xe0] sm:$0x1] }
  0xea   :  { %2723 = vrot.lane.b32.xlu1 %v6067_v5, %s4978_s15  ;;  %v2133_v34 = vshll.u32 %v1689_v47, 16  ;;  %v2096_v28 = vor.u32 %v2095_v6, %v2092_v49  ;;  %v2106_v23 = vor.u32 %v2105_v25, %v6279_v11  ;;  %v2186_v13 = vshrl.u32 %v1696_v35, 16  ;;  %v1706_v16 = vld [vmem:[#allocation2 + $0x100] sm:$0xf]  ;;  %1489 = vst.msk [vmem:[#allocation3 + $0x90] sm:$0xff] %vm1470_vm11, %v1411_v59 }
  0xeb   :  { %v6308_v29 = vrot.slane %v2058_v18, 4  ;;  %v6310_v63 = vrot.slane %v2061_v26, 5  ;;  %v6312_v57 = vrot.slane %v2219_v62, 5  ;;  %v7549_v1 = vrot.slane %v7548_v54, 4  ;;  %v1702_v25 = vld [vmem:[#allocation2 + $0xf0] sm:$0xf] }
  0xec   :  { %v2109_v0 = vshll.u32 %v1686_v52, 16  ;;  %v2216_v37 = vor.u32 %v2215_v58, %v2212_v61  ;;  %v2225_v14 = vrot.slane %v2223_v48, 4  ;;  %v2189_v38 = vshll.u32 %v1696_v35, 16  ;;  %2721 = vrot.lane.b32.xlu0 %v6216_v21, %s4978_s15  ;;  %v1701_v18 = vld [vmem:[#allocation2 + $0xec] sm:$0x1]  ;;  %v1417_v47 = vpop.permute.xlu1 %1416 }
  0xed   :  { %v967_v2 = vsel %vm5241_vm5, %v7549_v1, %v966_v17  ;;  %v2121_v20 = vrot.slane %v2120_v53, 4  ;;  %v2131_v49 = vrot.slane %v2130_v50, 4  ;;  %v2195_v41 = vshll.u32 %v1697_v33, 16  ;;  %v1703_v48 = vld [vmem:[#allocation2 + $0xf4] sm:$0xf]  ;;  %1492 = vst.msk [vmem:[#allocation3 + $0xa8] sm:$0xff] %vm1470_vm11, %v1417_v47 }
  0xee   :  { %968 = vst [vmem:[#allocation2 + $0xf8] sm:$0x1] %v967_v2  ;;  %v2199_v6 = vshrl.u32 %v1697_v33, 16  ;;  %2727 = vrot.lane.b32.xlu1 %v6228_v4, %s4978_s15  ;;  %v2135_v3 = vrot.slane %v2133_v34, 5  ;;  %v6325_v51 = vrot.slane %v2096_v28, 4  ;;  %v6327_v39 = vrot.slane %v2106_v23, 4 }
  0xef   :  { %v2188_v26 = vrot.slane %v2186_v13, 4  ;;  %v2258_v62 = vshrl.u32 %v1705_v60, 16  ;;  %v2261_v35 = vshll.u32 %v1705_v60, 16  ;;  %v2267_v61 = vshll.u32 %v1706_v16, 16 }
  0xf0   :  { %v2271_v58 = vshrl.u32 %v1706_v16, 16  ;;  %v6330_v17 = vrot.slane %v2109_v0, 5  ;;  %v6332_v27 = vrot.slane %v2216_v37, 4  ;;  %v2226_v53 = vor.u32 %v2225_v14, %v6312_v57  ;;  %2725 = vrot.lane.b32.xlu0 %v6235_v44, %s4978_s15  ;;  %v1415_v1 = vpop.permute.xlu0 %1414  ;;  %v1707_v36 = vld [vmem:[#allocation2 + $0x104] sm:$0x1] }
  0xf1   :  { %v2191_v50 = vrot.slane %v2189_v38, 5  ;;  %v2229_v52 = vshll.u32 %v1701_v18, 16  ;;  %v6337_v34 = vrot.slane %v2195_v41, 5  ;;  %v2201_v28 = vrot.slane %v2199_v6, 4  ;;  %1491 = vst.msk [vmem:[#allocation3 + $0xa0] sm:$0xff] %vm1470_vm11, %v1415_v1 }
  0xf2   :  { %v2205_v23 = vshll.u32 %v6318_v7, 16  ;;  %2731 = vrot.lane.b32.xlu1 %v6237_v31, %s4978_s15  ;;  %v2234_v33 = vshrl.u32 %v1702_v25, 16  ;;  %v2237_v13 = vshll.u32 %v1702_v25, 16  ;;  %v2243_v60 = vshll.u32 %v1703_v48, 16 }
  0xf3   :  { %v2247_v54 = vshrl.u32 %v1703_v48, 16  ;;  %v2260_v2 = vrot.slane %v2258_v62, 4  ;;  %v2263_v59 = vrot.slane %v2261_v35, 5  ;;  %v6342_v0 = vrot.slane %v2267_v61, 5 }
  0xf4   :  { %v2273_v37 = vrot.slane %v2271_v58, 4  ;;  %v6354_v14 = vcombine.low %v2078_v32, %v2088_v10  ;;  %v2064_v7 = vsel %vm5942_vm12, %v6308_v29, %v6310_v63  ;;  %v2126_v38 = vsel %vm5942_vm12, %v2121_v20, %v6275_v22  ;;  %2729 = vrot.lane.b32.xlu0 %v6240_v56, %s4978_s15  ;;  %v1421_v29 = vpop.permute.xlu1 %1420 }
  0xf5   :  { %v2136_v55 = vsel %vm5942_vm12, %v2131_v49, %v2135_v3  ;;  %v2227_v15 = vrot.slane %v2226_v53, 4  ;;  %v2231_v9 = vrot.slane %v2229_v52, 5  ;;  %v2192_v32 = vor.u32 %v2191_v50, %v2188_v26  ;;  %1494 = vst.msk [vmem:[#allocation3 + $0xb8] sm:$0xff] %vm1470_vm11, %v1421_v29  ;;  %v1704_v25 = vld [vmem:[#allocation2 + $0xf8] sm:$0x1] }
  0xf6   :  { %v2202_v10 = vor.u32 %v2201_v28, %v6337_v34  ;;  %2735 = vrot.lane.b32.xlu1 %v6242_v45, %s4978_s15  ;;  %v2236_v63 = vrot.slane %v2234_v33, 4  ;;  %v2239_v16 = vrot.slane %v2237_v13, 5  ;;  %v2245_v41 = vrot.slane %v2243_v60, 5 }
  0xf7   :  { %v2249_v22 = vrot.slane %v2247_v54, 4  ;;  %v2264_v20 = vor.u32 %v2263_v59, %v2260_v2  ;;  %v2274_v49 = vor.u32 %v2273_v37, %v6342_v0  ;;  %v2277_v6 = vshll.u32 %v1707_v36, 16  ;;  %v1419_v62 = vpop.permute.xlu0 %1418 }
  0xf8   :  { %v6378_v3 = vcombine.low %v2054_v46, %v2064_v7  ;;  %v6380_v18 = vcombine.low %v2126_v38, %v2136_v55  ;;  %v2102_v26 = vsel %vm5942_vm12, %v6325_v51, %v6279_v11  ;;  %v2112_v47 = vsel %vm5942_vm12, %v6327_v39, %v6330_v17  ;;  %2733 = vrot.lane.b32.xlu0 %v6286_v12, %s4978_s15 }
  0xf9   :  { %v2222_v42 = vsel %vm5942_vm12, %v6332_v27, %v6312_v57  ;;  %v2193_v19 = vrot.slane %v2192_v32, 4  ;;  %v2203_v46 = vrot.slane %v2202_v10, 4  ;;  %v2207_v35 = vrot.slane %v2205_v23, 5 }
  0xfa   :  { %8 = vsyncpa [#allocation5], 0  ;;  %2739 = vrot.lane.b32.xlu1 %v6354_v14, %s4978_s15  ;;  %1493 = vst.msk [vmem:[#allocation3 + $0xb0] sm:$0xff] %vm1470_vm11, %v1419_v62  ;;  %v2232_v11 = vsel %vm5942_vm12, %v2227_v15, %v2231_v9  ;;  %v2240_v51 = vor.u32 %v2239_v16, %v2236_v63  ;;  %v2250_v39 = vor.u32 %v2249_v22, %v2245_v41  ;;  %v2253_v61 = vshll.u32 %v1704_v25, 16  ;;  %v7550_v53 = vld [vmem:[#allocation11_spill] sm:$0xff]  ;;  %v7551_v1 = vld [vmem:[#allocation14_spill] sm:$0xff] }
  0xfb   :  { %v2265_v58 = vrot.slane %v2264_v20, 4  ;;  %v2275_v48 = vrot.slane %v2274_v49, 4  ;;  %v2279_v17 = vrot.slane %v2277_v6, 5  ;;  %v536_v57 = vrot.slane %v7550_v53, 4  ;;  %v1425_v28 = vpop.permute.xlu1 %1424  ;;  %v980_v23 = vld [vmem:[#allocation2 + $0x110] sm:$0x1] }
  0xfc   :  { %2737 = vrot.lane.b32.xlu0 %v6378_v3, %s4978_s15  ;;  %v6404_v27 = vcombine.low %v2102_v26, %v2112_v47  ;;  %v4660_v50 = vcombine.low %v2222_v42, %v2232_v11  ;;  %v2198_v52 = vsel %vm5942_vm12, %v2193_v19, %v6337_v34  ;;  %v2208_v33 = vsel %vm5942_vm12, %v2203_v46, %v2207_v35  ;;  %v987_v38 = vld [vmem:[#allocation2 + $0x11c] sm:$0x1]  ;;  %v7552_v10 = vld [vmem:[#allocation13_spill] sm:$0xff]  ;;  %v994_v16 = vld [vmem:[#allocation2 + $0x128] sm:$0x1]  ;;  %s4979_s9 = smov 16  }
  0xfd   :  { %1496 = vst.msk [vmem:[#allocation3 + $0xc8] sm:$0xff] %vm1470_vm11, %v1425_v28  ;;  %v2241_v13 = vrot.slane %v2240_v51, 4  ;;  %v2251_v60 = vrot.slane %v2250_v39, 4  ;;  %v2255_v54 = vrot.slane %v2253_v61, 5  ;;  %v553_v2 = vrot.slane %v7551_v1, 4  ;;  %v1423_v59 = vpop.permute.xlu0 %1422  ;;  %s4980_s10 = smov 28  }
  0xfe   :  { %2743 = vrot.lane.b32.xlu1 %v6380_v18, %s4978_s15  ;;  %v2270_v34 = vsel %vm5942_vm12, %v2265_v58, %v6342_v0  ;;  %v2280_v37 = vsel %vm5942_vm12, %v2275_v48, %v2279_v17  ;;  %1495 = vst.msk [vmem:[#allocation3 + $0xc0] sm:$0xff] %vm1470_vm11, %v1423_v59  ;;  %v981_v7 = vsel %vm5241_vm5, %v536_v57, %v980_v23  ;;  %v570_v29 = vrot.slane %v7552_v10, 4  ;;  %v3166_v6 = vld [vmem:[#allocation2 + $0xd8] sm:$0xe]  ;;  %v3168_v26 = vld [vmem:[#allocation2 + $0xe0] sm:$0x1] }
  0xff   :  { %v4659_v55 = vcombine.low %v2198_v52, %v2208_v33  ;;  %v1429_v36 = vpop.permute.xlu1 %1428  ;;  %982 = vst [vmem:[#allocation2 + $0x110] sm:$0x1] %v981_v7  ;;  %v6426_v15 = vcombine.low %v2270_v34, %v2280_v37  ;;  %v2246_v0 = vsel %vm5942_vm12, %v2241_v13, %v2245_v41  ;;  %v2256_v9 = vsel %vm5942_vm12, %v2251_v60, %v2255_v54  ;;  %v3167_v41 = vld [vmem:[#allocation2 + $0xdc] sm:$0xf]  ;;  %v3113_v47 = vld [vmem:[#allocation2 + $0x4] sm:$0xf] }
 0x100   :  { %2741 = vrot.lane.b32.xlu0 %v6404_v27, %s4978_s15  ;;  %1498 = vst.msk [vmem:[#allocation3 + $0xd8] sm:$0xff] %vm1470_vm11, %v1429_v36  ;;  %v988_v32 = vsel %vm5241_vm5, %v553_v2, %v987_v38  ;;  %v4661_v63 = vcombine.low %v2246_v0, %v2256_v9  ;;  %v995_v49 = vsel %vm5241_vm5, %v570_v29, %v994_v16  ;;  %v3459_v25 = vrot.slane %v3167_v41, 5  ;;  %v3170_v62 = vld [vmem:[#allocation2 + $0xe8] sm:$0xf]  ;;  %v3112_v51 = vld [vmem:[#allocation2] sm:$0xe] }
 0x101   :  { %989 = vst [vmem:[#allocation2 + $0x11c] sm:$0x1] %v988_v32  ;;  %996 = vst [vmem:[#allocation2 + $0x128] sm:$0x1] %v995_v49  ;;  %vm3328_vm13 = vcmask 1042432   ;;  %vm3329_vm14 = vcmask 1046532  }
 0x102   :  { %2747 = vrot.lane.b32.xlu1 %v4660_v50, %s4978_s15  ;;  %v4697_v19 = vrot.slane %v3166_v6, 9  ;;  %vm6449_vm15 = vmor %vm3328_vm13, %vm3329_vm14  ;;  %v3461_v35 = vrot.slane %v3459_v25, 4  ;;  %v3462_v11 = vrot.slane %v3168_v26, 5  ;;  %v3333_v39 = vrot.slane %v3113_v47, 5  ;;  %v3114_v61 = vld [vmem:[#allocation2 + $0x8] sm:$0x1] }
 0x103   :  { %v3466_v58 = vrot.slane %v3170_v62, 5  ;;  %v3116_v48 = vld [vmem:[#allocation2 + $0x10] sm:$0xf]  ;;  %v3169_v53 = vld [vmem:[#allocation2 + $0xe4] sm:$0xe]  ;;  %v7555_v57 = vld [vmem:[#allocation16_spill] sm:$0xff] }
 0x104   :  { %2745 = vrot.lane.b32.xlu0 %v4659_v55, %s4978_s15  ;;  %v1427_v22 = vpop.permute.xlu0 %1426  ;;  %vm1609_vm0 = vcmask 228544   ;;  %v3460_v52 = vsel %vm6449_vm15, %v4697_v19, %v3459_v25  ;;  %v4679_v28 = vrot.slane %v3112_v51, 9  ;;  %v3115_v23 = vld [vmem:[#allocation2 + $0xc] sm:$0xe]  ;;  %v3463_v33 = vsel %vm6449_vm15, %v3461_v35, %v3462_v11  ;;  %v1001_v1 = vld [vmem:[#allocation2 + $0x134] sm:$0x1] }
 0x105   :  { %1497 = vst.msk [vmem:[#allocation3 + $0xd0] sm:$0xff] %vm1470_vm11, %v1427_v22  ;;  %v3335_v13 = vrot.slane %v3333_v39, 4  ;;  %v3336_v60 = vrot.slane %v3114_v61, 5  ;;  %v3340_v54 = vrot.slane %v3116_v48, 5  ;;  %v4698_v59 = vrot.slane %v3169_v53, 9  ;;  %s4981_s11 = smov 8  }
 0x106   :  { %2751 = vrot.lane.b32.xlu1 %v6426_v15, %s4978_s15  ;;  %v1433_v20 = vpop.permute.xlu1 %1432  ;;  %v3468_v34 = vrot.slane %v3466_v58, 4  ;;  %v3117_v7 = vld [vmem:[#allocation2 + $0x14] sm:$0x1]  ;;  %v4731_v36 = vcombine.low %v3460_v52, %v3463_v33  ;;  %v3334_v0 = vsel %vm6449_vm15, %v4679_v28, %v3333_v39  ;;  %v4680_v10 = vrot.slane %v3115_v23, 9  ;;  %v3119_v16 = vld [vmem:[#allocation2 + $0x1c] sm:$0xf] }
 0x107   :  { %1500 = vst.msk [vmem:[#allocation3 + $0xe8] sm:$0xff] %vm1470_vm11, %v1433_v20  ;;  %v3173_v55 = vld [vmem:[#allocation2 + $0xf4] sm:$0xf]  ;;  %v3337_v32 = vsel %vm6449_vm15, %v3335_v13, %v3336_v60  ;;  %v3342_v29 = vrot.slane %v3340_v54, 4  ;;  %v3467_v22 = vsel %vm6449_vm15, %v4698_v59, %v3466_v58  ;;  %v3172_v6 = vld [vmem:[#allocation2 + $0xf0] sm:$0xe] }
 0x108   :  { %2749 = vrot.lane.b32.xlu0 %v4661_v63, %s4978_s15  ;;  %v3473_v20 = vrot.slane %v3173_v55, 5  ;;  %v3174_v25 = vld [vmem:[#allocation2 + $0xf8] sm:$0x1]  ;;  %v4715_v26 = vcombine.low %v3334_v0, %v3337_v32  ;;  %v3118_v47 = vld [vmem:[#allocation2 + $0x18] sm:$0xe]  ;;  %v3347_v62 = vrot.slane %v3119_v16, 5  ;;  %v3341_v19 = vsel %vm6449_vm15, %v4680_v10, %v3340_v54 }
 0x109   :  { %v3120_v11 = vld [vmem:[#allocation2 + $0x20] sm:$0x1]  ;;  %v4699_v61 = vrot.slane %v3172_v6, 9  ;;  %v3476_v48 = vrot.slane %v3174_v25, 5  ;;  %v1708_v53 = vld [vmem:[#allocation2 + $0x108] sm:$0xf] }
 0x10a   :  { %2880 = vrot.lane.b32.xlu1 %v4660_v50, %s4979_s9  ;;  %v1431_v42 = vpop.permute.xlu0 %1430  ;;  %v587_v50 = vrot.slane %v7555_v57, 4  ;;  %v6487_v51 = vld [vmem:[#allocation2 + $0x100] sm:$0xf]  ;;  %v3475_v58 = vrot.slane %v3473_v20, 4  ;;  %v4681_v52 = vrot.slane %v3118_v47, 9  ;;  %v3349_v13 = vrot.slane %v3347_v62, 4 }
 0x10b   :  { %1499 = vst.msk [vmem:[#allocation3 + $0xe0] sm:$0xff] %vm1470_vm11, %v1431_v42  ;;  %v6491_v28 = vld [vmem:[#allocation2 + $0x28] sm:$0xf]  ;;  %v1709_v23 = vld [vmem:[#allocation2 + $0x10c] sm:$0xf]  ;;  %v3350_v60 = vrot.slane %v3120_v11, 5 }
 0x10c   :  { %2848 = vrot.lane.b32.xlu0 %v6019_v40, %s4979_s9  ;;  %v3171_v40 = vld [vmem:[#allocation2 + $0xec] sm:$0x1]  ;;  %v1002_v9 = vsel %vm5241_vm5, %v587_v50, %v1001_v1  ;;  %v3177_v54 = vld [vmem:[#allocation2 + $0x104] sm:$0x1]  ;;  %v3480_v1 = vrot.slane %v6487_v51, 5  ;;  %v2285_v59 = vshll.u32 %v1708_v53, 16  ;;  %v3477_v55 = vsel %vm6449_vm15, %v3475_v58, %v3476_v48 }
 0x10d   :  { %v3469_v37 = vrot.slane %v3171_v40, 5  ;;  %1003 = vst [vmem:[#allocation2 + $0x134] sm:$0x1] %v1002_v9  ;;  %v7556_v40 = vld [vmem:[#allocation15_spill] sm:$0xff]  ;;  %v2295_v0 = vshrl.u32 %v1709_v23, 16  ;;  %v7557_v9 = vld [vmem:[#allocation18_spill] sm:$0xff] }
 0x10e   :  { %2882 = vrot.lane.b32.xlu1 %v4661_v63, %s4979_s9  ;;  %v604_v57 = vrot.slane %v7556_v40, 4  ;;  %v621_v32 = vrot.slane %v7557_v9, 4  ;;  %v3483_v16 = vrot.slane %v3177_v54, 5  ;;  %s4982_s14 = smov 20   ;;  %v2287_v47 = vrot.slane %v2285_v59, 5 }
 0x10f   :  { %v1437_v17 = vpop.permute.xlu1 %1436  ;;  %v3470_v41 = vsel %vm6449_vm15, %v3468_v34, %v3469_v37  ;;  %v1008_v34 = vld [vmem:[#allocation2 + $0x140] sm:$0x1]  ;;  %v2297_v51 = vrot.slane %v2295_v0, 4  ;;  %vm4234_vm1 = vcmask 1041408   ;;  %vm2809_vm2 = vcmask 64544  }
 0x110   :  { %2850 = vrot.lane.b32.xlu0 %v6065_v30, %s4979_s9  ;;  %1502 = vst.msk [vmem:[#allocation3 + $0xf8] sm:$0xff] %vm1470_vm11, %v1437_v17  ;;  %v4732_v42 = vcombine.low %v3467_v22, %v3470_v41  ;;  %v3175_v17 = vld [vmem:[#allocation2 + $0xfc] sm:$0xe]  ;;  %v4947_v37 = vld [vmem:[%s7471_s1] sm:$0xff]   ;;  %v3482_v22 = vrot.slane %v3480_v1, 4  ;;  %v1009_v6 = vsel %vm5241_vm5, %v604_v57, %v1008_v34  ;;  %vm2944_vm3 = vcmask 162944  }
 0x111   :  { %v1435_v2 = vpop.permute.xlu0 %1434  ;;  %4822 = vmatprep.subr.bf16.mxu0 %v4947_v37  ;;  %4892 = vmatprep.subr.bf16.mxu1 %v4947_v37  ;;  %v3121_v41 = vld [vmem:[#allocation2 + $0x24] sm:$0xe]  ;;  %1010 = vst [vmem:[#allocation2 + $0x140] sm:$0x1] %v1009_v6  ;;  %vm3079_vm4 = vcmask 261344   ;;  %vm3775_vm6 = vcmask 97344  }
 0x112   :  { %3015 = vrot.lane.b32.xlu1 %v4661_v63, %s4980_s10  ;;  %1501 = vst.msk [vmem:[#allocation3 + $0xf0] sm:$0xff] %vm1470_vm11, %v1435_v2  ;;  %v3343_v63 = vrot.slane %v3117_v7, 5  ;;  %v2282_v2 = vshrl.u32 %v1708_v53, 16  ;;  %4823 = vmatpush3.bf16.msra.mxu0 %v4947_v37  ;;  %v1710_v53 = vld [vmem:[#allocation2 + $0x110] sm:$0x1]  ;;  %v3484_v40 = vsel %vm6449_vm15, %v3482_v22, %v3483_v16  ;;  %vm3910_vm7 = vcmask 195744  }
 0x113   :  { %v1516_v38 = vpop.permute.xlu1 %1515  ;;  %4895 = vmatpush3.bf16.msra.mxu1 %v4947_v37  ;;  %v1713_v22 = vld [vmem:[#allocation2 + $0x11c] sm:$0x1]  ;;  %vm4045_vm8 = vcmask 294144   ;;  %vm4137_vm9 = vcmask 293888  }
 0x114   :  { %2983 = vrot.lane.b32.xlu0 %v6065_v30, %s4980_s10  ;;  %1611 = vst.msk [vmem:[#allocation3 + $0x8] sm:$0xff] %vm1609_vm0, %v1516_v38  ;;  %v3344_v35 = vsel %vm6449_vm15, %v3342_v29, %v3343_v63  ;;  %v3474_v38 = vsel %vm6449_vm15, %v4699_v61, %v3473_v20  ;;  %v3348_v29 = vsel %vm6449_vm15, %v4681_v52, %v3347_v62  ;;  %v4700_v63 = vrot.slane %v3175_v17, 9  ;;  %v3123_v20 = vld [vmem:[#allocation2 + $0x2c] sm:$0x1]  ;;  %v1712_v61 = vld [vmem:[#allocation2 + $0x118] sm:$0xf] }
 0x115   :  { %v1514_v30 = vpop.permute.xlu0 %1513  ;;  %v4716_v33 = vcombine.low %v3341_v19, %v3344_v35  ;;  %v6516_v25 = vcombine.low %v3474_v38, %v3477_v55  ;;  %v1015_v62 = vld [vmem:[#allocation2 + $0x14c] sm:$0x1]  ;;  %v4682_v17 = vrot.slane %v3121_v41, 9  ;;  %v2319_v59 = vshrl.u32 %v1712_v61, 16 }
 0x116   :  { %3017 = vrot.lane.b32.xlu1 %v6426_v15, %s4980_s10  ;;  %1610 = vst.msk [vmem:[#allocation3] sm:$0xff] %vm1609_vm0, %v1514_v30  ;;  %v3351_v30 = vsel %vm6449_vm15, %v3349_v13, %v3350_v60  ;;  %v4948_v19 = vld [vmem:[%s7471_s1 + $0x8] sm:$0xff]   ;;  %v3481_v48 = vsel %vm6449_vm15, %v4700_v63, %v3480_v1  ;;  %v1016_v52 = vsel %vm5241_vm5, %v621_v32, %v1015_v62  ;;  %v2315_v60 = vshll.u32 %v1712_v61, 16  ;;  %v7559_v61 = vld [vmem:[#allocation20_spill] sm:$0xff] }
 0x117   :  { %v1520_v49 = vpop.permute.xlu1 %1519  ;;  %v6524_v58 = vcombine.low %v3348_v29, %v3351_v30  ;;  %4824 = vmatprep.subr.bf16.mxu0 %v4948_v19  ;;  %4893 = vmatprep.subr.bf16.mxu1 %v4948_v19  ;;  %1017 = vst [vmem:[#allocation2 + $0x14c] sm:$0x1] %v1016_v52  ;;  %v6544_v37 = vcombine.low %v3481_v48, %v3484_v40  ;;  %v2321_v16 = vrot.slane %v2319_v59, 4  ;;  %v1029_v52 = vld [vmem:[#allocation2 + $0x164] sm:$0x1] }
 0x118   :  { %2985 = vrot.lane.b32.xlu0 %v6061_v43, %s4980_s10  ;;  %1613 = vst.msk [vmem:[#allocation3 + $0x18] sm:$0xff] %vm1609_vm0, %v1520_v49  ;;  %v3354_v49 = vrot.slane %v6491_v28, 5  ;;  %4825 = vmatpush3.bf16.msra.mxu0 %v4948_v19  ;;  %v2317_v63 = vrot.slane %v2315_v60, 5 }
 0x119   :  { %v1518_v39 = vpop.permute.xlu0 %1517  ;;  %4896 = vmatpush3.bf16.msra.mxu1 %v4948_v19 }
 0x11a   :  { %3711 = vrot.lane.b32.xlu1 %v4731_v36, %s4981_s11  ;;  %1612 = vst.msk [vmem:[#allocation3 + $0x10] sm:$0xff] %vm1609_vm0, %v1518_v39  ;;  %v2291_v36 = vshll.u32 %v1709_v23, 16  ;;  %v1711_v39 = vld [vmem:[#allocation2 + $0x114] sm:$0xf]  ;;  %v3356_v57 = vrot.slane %v3354_v49, 4  ;;  %v2322_v19 = vor.u32 %v2321_v16, %v2317_v63 }
 0x11b   :  { %v1524_v50 = vpop.permute.xlu1 %1523  ;;  %v2306_v23 = vshrl.u32 %v1711_v39, 16  ;;  %v2309_v13 = vshll.u32 %v1711_v39, 16  ;;  %v1022_v39 = vld [vmem:[#allocation2 + $0x158] sm:$0x1] }
 0x11c   :  { %3679 = vrot.lane.b32.xlu0 %v4715_v26, %s4981_s11  ;;  %1615 = vst.msk [vmem:[#allocation3 + $0x28] sm:$0xff] %vm1609_vm0, %v1524_v50  ;;  %v2284_v26 = vrot.slane %v2282_v2, 4  ;;  %v6521_v11 = vrot.slane %v2291_v36, 5  ;;  %v3357_v50 = vrot.slane %v3123_v20, 5  ;;  %v2301_v2 = vshll.u32 %v1710_v53, 16  ;;  %v7558_v20 = vld [vmem:[#allocation17_spill] sm:$0xff] }
 0x11d   :  { %v1522_v7 = vpop.permute.xlu0 %1521  ;;  %v2308_v0 = vrot.slane %v2306_v23, 4  ;;  %v2311_v9 = vrot.slane %v2309_v13, 5  ;;  %v2323_v53 = vrot.slane %v2322_v19, 4  ;;  %v3128_v19 = vld [vmem:[#allocation2 + $0x40] sm:$0xf] }
 0x11e   :  { %3713 = vrot.lane.b32.xlu1 %v4732_v42, %s4981_s11  ;;  %1614 = vst.msk [vmem:[#allocation3 + $0x20] sm:$0xff] %vm1609_vm0, %v1522_v7  ;;  %v2288_v28 = vor.u32 %v2287_v47, %v2284_v26  ;;  %v2298_v1 = vor.u32 %v2297_v51, %v6521_v11  ;;  %v3355_v7 = vsel %vm6449_vm15, %v4682_v17, %v3354_v49  ;;  %v2303_v29 = vrot.slane %v2301_v2, 5  ;;  %v3178_v2 = vld [vmem:[#allocation2 + $0x108] sm:$0xe] }
 0x11f   :  { %v1528_v10 = vpop.permute.xlu1 %1527  ;;  %v3358_v55 = vsel %vm6449_vm15, %v3356_v57, %v3357_v50  ;;  %v638_v49 = vrot.slane %v7558_v20, 4  ;;  %v2312_v6 = vor.u32 %v2311_v9, %v2308_v0  ;;  %v3124_v9 = vld [vmem:[#allocation2 + $0x30] sm:$0xe] }
 0x120   :  { %3681 = vrot.lane.b32.xlu0 %v4716_v33, %s4981_s11  ;;  %1617 = vst.msk [vmem:[#allocation3 + $0x38] sm:$0xff] %vm1609_vm0, %v1528_v10  ;;  %v2289_v36 = vrot.slane %v2288_v28, 4  ;;  %v2299_v10 = vrot.slane %v2298_v1, 4  ;;  %v6556_v41 = vcombine.low %v3355_v7, %v3358_v55  ;;  %v3180_v7 = vld [vmem:[#allocation2 + $0x110] sm:$0x1] }
 0x121   :  { %v1526_v35 = vpop.permute.xlu0 %1525  ;;  %v2313_v17 = vrot.slane %v2312_v6, 4  ;;  %v1023_v57 = vsel %vm5241_vm5, %v638_v49, %v1022_v39  ;;  %v3490_v0 = vrot.slane %v3180_v7, 5  ;;  %v3181_v6 = vld [vmem:[#allocation2 + $0x114] sm:$0xe] }
 0x122   :  { %3846 = vrot.lane.b32.xlu1 %v4732_v42, %s4982_s14  ;;  %1616 = vst.msk [vmem:[#allocation3 + $0x30] sm:$0xff] %vm1609_vm0, %v1526_v35  ;;  %v2294_v47 = vsel %vm5942_vm12, %v2289_v36, %v6521_v11  ;;  %v2304_v62 = vsel %vm5942_vm12, %v2299_v10, %v2303_v29  ;;  %v2325_v35 = vshll.u32 %v1713_v22, 16  ;;  %1024 = vst [vmem:[#allocation2 + $0x158] sm:$0x1] %v1023_v57  ;;  %v4701_v36 = vrot.slane %v3178_v2, 9 }
 0x123   :  { %v1532_v42 = vpop.permute.xlu1 %1531  ;;  %v6573_v11 = vcombine.low %v2294_v47, %v2304_v62  ;;  %v2318_v23 = vsel %vm5942_vm12, %v2313_v17, %v2317_v63  ;;  %v3126_v29 = vld [vmem:[#allocation2 + $0x38] sm:$0x1]  ;;  %v4683_v22 = vrot.slane %v3124_v9, 9  ;;  %v3183_v62 = vld [vmem:[#allocation2 + $0x11c] sm:$0x1]  ;;  %v3368_v57 = vrot.slane %v3128_v19, 5 }
 0x124   :  { %3814 = vrot.lane.b32.xlu0 %v4716_v33, %s4982_s14  ;;  %1619 = vst.msk [vmem:[#allocation3 + $0x48] sm:$0xff] %vm1609_vm0, %v1532_v42  ;;  %v4949_v33 = vld [vmem:[%s7471_s1 + $0x10] ss:$0 sps:$4 sm:$0x33]   ;;  %s4983_s1 = smov 32   ;;  %v655_v42 = vrot.slane %v7559_v61, 4 }
 0x125   :  { %v1530_v54 = vpop.permute.xlu0 %1529  ;;  %4898 = vmatprep.subr.msk.bf16.mxu0 %vm4234_vm1, %v4949_v33  ;;  %4899 = vmatprep.subr.msk.bf16.mxu1 %vm4234_vm1, %v4949_v33  ;;  %v4236_v38 = vsel %vm4234_vm1, %v4949_v33, 0  ;;  %v2327_v40 = vrot.slane %v2325_v35, 5  ;;  %v3182_v63 = vld [vmem:[#allocation2 + $0x118] sm:$0xf]  ;;  %v3364_v49 = vrot.slane %v3126_v29, 5  ;;  %v3370_v2 = vrot.slane %v3368_v57, 4 }
 0x126   :  { %3848 = vrot.lane.b32.xlu1 %v6516_v25, %s4982_s14  ;;  %1618 = vst.msk [vmem:[#allocation3 + $0x40] sm:$0xff] %vm1609_vm0, %v1530_v54  ;;  %4827 = vmatpush3.bf16.msra.mxu0 %v4236_v38  ;;  %v3179_v54 = vld [vmem:[#allocation2 + $0x10c] sm:$0xf]  ;;  %v1714_v35 = vld [vmem:[#allocation2 + $0x120] sm:$0xf] }
 0x127   :  { %v1536_v34 = vpop.permute.xlu1 %1535  ;;  %4897 = vmatpush3.bf16.msra.mxu1 %v4236_v38  ;;  %v2328_v13 = vsel %vm5942_vm12, %v2323_v53, %v2327_v40  ;;  %v3487_v59 = vrot.slane %v3179_v54, 5  ;;  %v3125_v38 = vld [vmem:[#allocation2 + $0x34] sm:$0xf]  ;;  %v3497_v53 = vrot.slane %v3183_v62, 5  ;;  %v3127_v40 = vld [vmem:[#allocation2 + $0x3c] sm:$0xe] }
 0x128   :  { %3816 = vrot.lane.b32.xlu0 %v6524_v58, %s4982_s14  ;;  %1621 = vst.msk [vmem:[#allocation3 + $0x58] sm:$0xff] %vm1609_vm0, %v1536_v34  ;;  %v1718_v9 = vld [vmem:[#allocation2 + $0x130] sm:$0xf] }
 0x129   :  { %v1534_v32 = vpop.permute.xlu0 %1533  ;;  %v7560_v62 = vld [vmem:[#allocation19_spill] sm:$0xff] }
 0x12a   :  { %3981 = vrot.lane.b32.xlu1 %v6516_v25, %s4983_s1  ;;  %1620 = vst.msk [vmem:[#allocation3 + $0x50] sm:$0xff] %vm1609_vm0, %v1534_v32  ;;  %v3361_v32 = vrot.slane %v3125_v38, 5  ;;  %v1716_v38 = vld [vmem:[#allocation2 + $0x128] sm:$0x1]  ;;  %v672_v19 = vrot.slane %v7560_v62, 4 }
 0x12b   :  { %v1540_v30 = vpop.permute.xlu1 %1539 }
 0x12c   :  { %3949 = vrot.lane.b32.xlu0 %v6524_v58, %s4983_s1  ;;  %1623 = vst.msk [vmem:[#allocation3 + $0x68] sm:$0xff] %vm1609_vm0, %v1540_v30  ;;  %v3488_v30 = vsel %vm6449_vm15, %v4701_v36, %v3487_v59  ;;  %v3363_v20 = vrot.slane %v3361_v32, 4  ;;  %v3362_v61 = vsel %vm6449_vm15, %v4683_v22, %v3361_v32 }
 0x12d   :  { %v1538_v26 = vpop.permute.xlu0 %1537 }
 0x12e   :  { %3983 = vrot.lane.b32.xlu1 %v6544_v37, %s4983_s1  ;;  %1622 = vst.msk [vmem:[#allocation3 + $0x60] sm:$0xff] %vm1609_vm0, %v1538_v26  ;;  %v3494_v26 = vrot.slane %v3182_v63, 5  ;;  %v2349_v63 = vshll.u32 %v1716_v38, 16 }
 0x12f   :  { %v1544_v51 = vpop.permute.xlu1 %1543 }
 0x130   :  { %3951 = vrot.lane.b32.xlu0 %v6556_v41, %s4983_s1  ;;  %1625 = vst.msk [vmem:[#allocation3 + $0x78] sm:$0xff] %vm1609_vm0, %v1544_v51  ;;  %v1715_v51 = vld [vmem:[#allocation2 + $0x124] sm:$0xf]  ;;  %v3496_v17 = vrot.slane %v3494_v26, 4 }
 0x131   :  { %v1542_v48 = vpop.permute.xlu0 %1541 }
 0x132   :  { %2884 = vrot.lane.b32.xlu1 %v6426_v15, %s4979_s9  ;;  %1624 = vst.msk [vmem:[#allocation3 + $0x70] sm:$0xff] %vm1609_vm0, %v1542_v48  ;;  %v1030_v15 = vsel %vm5241_vm5, %v655_v42, %v1029_v52  ;;  %v4702_v42 = vrot.slane %v3181_v6, 9  ;;  %v3365_v48 = vsel %vm6449_vm15, %v3363_v20, %v3364_v49  ;;  %v3129_v52 = vld [vmem:[#allocation2 + $0x44] sm:$0x1]  ;;  %v2363_v49 = vshll.u32 %v1718_v9, 16 }
 0x133   :  { %v1548_v50 = vpop.permute.xlu1 %1547  ;;  %1031 = vst [vmem:[#allocation2 + $0x164] sm:$0x1] %v1030_v15  ;;  %v2330_v15 = vshrl.u32 %v1714_v35, 16  ;;  %v2367_v6 = vshrl.u32 %v1718_v9, 16 }
 0x134   :  { %2852 = vrot.lane.b32.xlu0 %v6061_v43, %s4979_s9  ;;  %1627 = vst.msk [vmem:[#allocation3 + $0x88] sm:$0xff] %vm1609_vm0, %v1548_v50  ;;  %v6595_v43 = vcombine.low %v2318_v23, %v2328_v13  ;;  %v2339_v23 = vshll.u32 %v1715_v51, 16  ;;  %v2343_v13 = vshrl.u32 %v1715_v51, 16  ;;  %v3495_v54 = vsel %vm6449_vm15, %v4702_v42, %v3494_v26 }
 0x135   :  { %v1546_v28 = vpop.permute.xlu0 %1545 }
 0x136   :  { %2886 = vrot.lane.b32.xlu1 %v6573_v11, %s4979_s9  ;;  %1626 = vst.msk [vmem:[#allocation3 + $0x80] sm:$0xff] %vm1609_vm0, %v1546_v28  ;;  %v2333_v28 = vshll.u32 %v1714_v35, 16  ;;  %v2341_v36 = vrot.slane %v2339_v23, 5 }
 0x137   :  { %v1552_v60 = vpop.permute.xlu1 %1551 }
 0x138   :  { %2854 = vrot.lane.b32.xlu0 %v6216_v21, %s4979_s9  ;;  %1629 = vst.msk [vmem:[#allocation3 + $0x98] sm:$0xff] %vm1609_vm0, %v1552_v60 }
 0x139   :  { %v1550_v33 = vpop.permute.xlu0 %1549 }
 0x13a   :  { %3019 = vrot.lane.b32.xlu1 %v6573_v11, %s4980_s10  ;;  %1628 = vst.msk [vmem:[#allocation3 + $0x90] sm:$0xff] %vm1609_vm0, %v1550_v33  ;;  %v4684_v33 = vrot.slane %v3127_v40, 9 }
 0x13b   :  { %v1556_v1 = vpop.permute.xlu1 %1555 }
 0x13c   :  { %2987 = vrot.lane.b32.xlu0 %v6216_v21, %s4980_s10  ;;  %1631 = vst.msk [vmem:[#allocation3 + $0xa8] sm:$0xff] %vm1609_vm0, %v1556_v1  ;;  %v3489_v21 = vrot.slane %v3487_v59, 4  ;;  %v3498_v1 = vsel %vm6449_vm15, %v3496_v17, %v3497_v53  ;;  %v3371_v59 = vrot.slane %v3129_v52, 5  ;;  %v2365_v17 = vrot.slane %v2363_v49, 5 }
 0x13d   :  { %v1554_v34 = vpop.permute.xlu0 %1553  ;;  %v6647_v32 = vcombine.low %v3495_v54, %v3498_v1  ;;  %v2369_v53 = vrot.slane %v2367_v6, 4  ;;  %v7561_v1 = vld [vmem:[#allocation24_spill] sm:$0xff] }
 0x13e   :  { %3021 = vrot.lane.b32.xlu1 %v6595_v43, %s4980_s10  ;;  %1630 = vst.msk [vmem:[#allocation3 + $0xa0] sm:$0xff] %vm1609_vm0, %v1554_v34  ;;  %v1717_v34 = vld [vmem:[#allocation2 + $0x12c] sm:$0xf]  ;;  %v3372_v29 = vsel %vm6449_vm15, %v3370_v2, %v3371_v59  ;;  %v689_v2 = vrot.slane %v7561_v1, 4 }
 0x13f   :  { %v1560_v55 = vpop.permute.xlu1 %1559 }
 0x140   :  { %2989 = vrot.lane.b32.xlu0 %v6067_v5, %s4980_s10  ;;  %1633 = vst.msk [vmem:[#allocation3 + $0xb8] sm:$0xff] %vm1609_vm0, %v1560_v55  ;;  %v2335_v55 = vrot.slane %v2333_v28, 5 }
 0x141   :  { %v1558_v10 = vpop.permute.xlu0 %1557 }
 0x142   :  { %3715 = vrot.lane.b32.xlu1 %v6516_v25, %s4981_s11  ;;  %1632 = vst.msk [vmem:[#allocation3 + $0xb0] sm:$0xff] %vm1609_vm0, %v1558_v10  ;;  %v3491_v25 = vsel %vm6449_vm15, %v3489_v21, %v3490_v0  ;;  %v2345_v21 = vrot.slane %v2343_v13, 4  ;;  %v3369_v10 = vsel %vm6449_vm15, %v4684_v33, %v3368_v57  ;;  %v1719_v57 = vld [vmem:[#allocation2 + $0x134] sm:$0x1] }
 0x143   :  { %v1564_v16 = vpop.permute.xlu1 %1563  ;;  %v6623_v39 = vcombine.low %v3488_v30, %v3491_v25  ;;  %v2357_v30 = vshll.u32 %v1717_v34, 16  ;;  %v2373_v33 = vshll.u32 %v1719_v57, 16  ;;  %v3189_v57 = vld [vmem:[#allocation2 + $0x134] sm:$0x1] }
 0x144   :  { %3683 = vrot.lane.b32.xlu0 %v6524_v58, %s4981_s11  ;;  %1635 = vst.msk [vmem:[#allocation3 + $0xc8] sm:$0xff] %vm1609_vm0, %v1564_v16  ;;  %v2354_v16 = vshrl.u32 %v1717_v34, 16  ;;  %v2346_v20 = vor.u32 %v2345_v21, %v2341_v36  ;;  %v3511_v1 = vrot.slane %v3189_v57, 5 }
 0x145   :  { %v1562_v47 = vpop.permute.xlu0 %1561  ;;  %v2359_v51 = vrot.slane %v2357_v30, 5 }
 0x146   :  { %3717 = vrot.lane.b32.xlu1 %v6544_v37, %s4981_s11  ;;  %1634 = vst.msk [vmem:[#allocation3 + $0xc0] sm:$0xff] %vm1609_vm0, %v1562_v47  ;;  %v6659_v47 = vcombine.low %v3369_v10, %v3372_v29  ;;  %v2356_v35 = vrot.slane %v2354_v16, 4  ;;  %v3185_v10 = vld [vmem:[#allocation2 + $0x124] sm:$0xf]  ;;  %v3184_v16 = vld [vmem:[#allocation2 + $0x120] sm:$0xe] }
 0x147   :  { %v1568_v58 = vpop.permute.xlu1 %1567  ;;  %v3501_v30 = vrot.slane %v3185_v10, 5  ;;  %v4703_v6 = vrot.slane %v3184_v16, 9 }
 0x148   :  { %3685 = vrot.lane.b32.xlu0 %v6556_v41, %s4981_s11  ;;  %1637 = vst.msk [vmem:[#allocation3 + $0xd8] sm:$0xff] %vm1609_vm0, %v1568_v58  ;;  %v2351_v58 = vrot.slane %v2349_v63, 5  ;;  %v2360_v52 = vor.u32 %v2359_v51, %v2356_v35  ;;  %v3188_v51 = vld [vmem:[#allocation2 + $0x130] sm:$0xf] }
 0x14a   :  { %3850 = vrot.lane.b32.xlu1 %v6544_v37, %s4982_s14  ;;  %v1566_v50 = vpop.permute.xlu0 %1565  ;;  %v6635_v37 = vcombine.low %v3362_v61, %v3365_v48  ;;  %v2347_v48 = vrot.slane %v2346_v20, 4 }
 0x14b   :  { %1636 = vst.msk [vmem:[#allocation3 + $0xd0] sm:$0xff] %vm1609_vm0, %v1566_v50  ;;  %v1572_v60 = vpop.permute.xlu1 %1571  ;;  %v1036_v50 = vld [vmem:[#allocation2 + $0x170] sm:$0x1] }
 0x14c   :  { %3818 = vrot.lane.b32.xlu0 %v6556_v41, %s4982_s14  ;;  %1639 = vst.msk [vmem:[#allocation3 + $0xe8] sm:$0xff] %vm1609_vm0, %v1572_v60  ;;  %v2332_v41 = vrot.slane %v2330_v15, 4  ;;  %v1037_v15 = vsel %vm5241_vm5, %v672_v19, %v1036_v50  ;;  %v2352_v13 = vsel %vm5942_vm12, %v2347_v48, %v2351_v58  ;;  %v2370_v60 = vor.u32 %v2369_v53, %v2365_v17  ;;  %v3130_v19 = vld [vmem:[#allocation2 + $0x48] sm:$0xe]  ;;  %v3132_v58 = vld [vmem:[#allocation2 + $0x50] sm:$0x1] }
 0x14d   :  { %1038 = vst [vmem:[#allocation2 + $0x170] sm:$0x1] %v1037_v15  ;;  %v3378_v53 = vrot.slane %v3132_v58, 5  ;;  %v3508_v50 = vrot.slane %v3188_v51, 5  ;;  %v3134_v15 = vld [vmem:[#allocation2 + $0x58] sm:$0xf] }
 0x14e   :  { %3852 = vrot.lane.b32.xlu1 %v6623_v39, %s4982_s14  ;;  %v1570_v7 = vpop.permute.xlu0 %1569  ;;  %v2336_v25 = vor.u32 %v2335_v55, %v2332_v41  ;;  %v2371_v38 = vrot.slane %v2370_v60, 4  ;;  %v2375_v41 = vrot.slane %v2373_v33, 5 }
 0x14f   :  { %1638 = vst.msk [vmem:[#allocation3 + $0xe0] sm:$0xff] %vm1609_vm0, %v1570_v7  ;;  %v1576_v0 = vpop.permute.xlu1 %1575  ;;  %v2361_v7 = vrot.slane %v2360_v52, 4 }
 0x150   :  { %3820 = vrot.lane.b32.xlu0 %v6635_v37, %s4982_s14  ;;  %1641 = vst.msk [vmem:[#allocation3 + $0xf8] sm:$0xff] %vm1609_vm0, %v1576_v0  ;;  %v2337_v42 = vrot.slane %v2336_v25, 4  ;;  %v2376_v0 = vsel %vm5942_vm12, %v2371_v38, %v2375_v41  ;;  %v3131_v25 = vld [vmem:[#allocation2 + $0x4c] sm:$0xf]  ;;  %v3382_v38 = vrot.slane %v3134_v15, 5 }
 0x151   :  { %v2366_v21 = vsel %vm5942_vm12, %v2361_v7, %v2365_v17  ;;  %v3375_v62 = vrot.slane %v3131_v25, 5  ;;  %v4685_v17 = vrot.slane %v3130_v19, 9  ;;  %v3135_v7 = vld [vmem:[#allocation2 + $0x5c] sm:$0x1] }
 0x152   :  { %3985 = vrot.lane.b32.xlu1 %v6623_v39, %s4983_s1  ;;  %v1574_v22 = vpop.permute.xlu0 %1573  ;;  %v2342_v23 = vsel %vm5942_vm12, %v2337_v42, %v2341_v36  ;;  %v1043_v36 = vld [vmem:[#allocation2 + $0x17c] sm:$0x1]  ;;  %v3502_v42 = vsel %vm6449_vm15, %v4703_v6, %v3501_v30  ;;  %v3385_v10 = vrot.slane %v3135_v7, 5  ;;  %v1722_v6 = vld [vmem:[#allocation2 + $0x140] sm:$0x1] }
 0x153   :  { %1640 = vst.msk [vmem:[#allocation3 + $0xf0] sm:$0xff] %vm1609_vm0, %v1574_v22  ;;  %v2716_v26 = vpop.permute.xlu1 %2715  ;;  %v6683_v59 = vcombine.low %v2342_v23, %v2352_v13  ;;  %v3186_v22 = vld [vmem:[#allocation2 + $0x128] sm:$0x1]  ;;  %v1721_v13 = vld [vmem:[#allocation2 + $0x13c] sm:$0xf]  ;;  %v3376_v60 = vsel %vm6449_vm15, %v4685_v17, %v3375_v62 }
 0x154   :  { %3953 = vrot.lane.b32.xlu0 %v6635_v37, %s4983_s1  ;;  %2811 = vst.msk [vmem:[#allocation3 + $0x8] sm:$0xff] %vm2809_vm2, %v2716_v26  ;;  %v3504_v26 = vrot.slane %v3186_v22, 5 }
 0x156   :  { %3987 = vrot.lane.b32.xlu1 %v6647_v32, %s4983_s1  ;;  %v2714_v61 = vpop.permute.xlu0 %2713 }
 0x157   :  { %2810 = vst.msk [vmem:[#allocation3] sm:$0xff] %vm2809_vm2, %v2714_v61  ;;  %v2720_v40 = vpop.permute.xlu1 %2719 }
 0x158   :  { %3955 = vrot.lane.b32.xlu0 %v6659_v47, %s4983_s1  ;;  %2813 = vst.msk [vmem:[#allocation3 + $0x18] sm:$0xff] %vm2809_vm2, %v2720_v40  ;;  %v3187_v40 = vld [vmem:[#allocation2 + $0x12c] sm:$0xe] }
 0x15a   :  { %2755 = vrot.lane.b32.xlu1 %v6595_v43, %s4978_s15  ;;  %v2718_v28 = vpop.permute.xlu0 %2717 }
 0x15b   :  { %2812 = vst.msk [vmem:[#allocation3 + $0x10] sm:$0xff] %vm2809_vm2, %v2718_v28  ;;  %v1720_v28 = vld [vmem:[#allocation2 + $0x138] sm:$0xf] }
 0x15c   :  { %v2724_v54 = vpop.permute.xlu1 %2723  ;;  %2753 = vrot.lane.b32.xlu0 %v6573_v11, %s4978_s15  ;;  %v1044_v11 = vsel %vm5241_vm5, %v689_v2, %v1043_v36  ;;  %v3133_v2 = vld [vmem:[#allocation2 + $0x54] sm:$0xe]  ;;  %v2378_v41 = vshrl.u32 %v1720_v28, 16 }
 0x15d   :  { %2815 = vst.msk [vmem:[#allocation3 + $0x28] sm:$0xff] %vm2809_vm2, %v2724_v54  ;;  %1045 = vst [vmem:[#allocation2 + $0x17c] sm:$0x1] %v1044_v11  ;;  %v4704_v54 = vrot.slane %v3187_v40, 9  ;;  %v2387_v11 = vshll.u32 %v1721_v13, 16  ;;  %v7562_v40 = vld [vmem:[#allocation21_spill] sm:$0xff] }
 0x15e   :  { %2888 = vrot.lane.b32.xlu1 %v6595_v43, %s4979_s9  ;;  %v2722_v34 = vpop.permute.xlu0 %2721  ;;  %v2380_v16 = vrot.slane %v2378_v41, 4  ;;  %v706_v57 = vrot.slane %v7562_v40, 4  ;;  %v3138_v40 = vld [vmem:[#allocation2 + $0x68] sm:$0x1] }
 0x15f   :  { %2814 = vst.msk [vmem:[#allocation3 + $0x20] sm:$0xff] %vm2809_vm2, %v2722_v34  ;;  %v3510_v34 = vrot.slane %v3508_v50, 4 }
 0x160   :  { %v2728_v55 = vpop.permute.xlu1 %2727  ;;  %2856 = vrot.lane.b32.xlu0 %v6067_v5, %s4979_s9  ;;  %v6703_v5 = vcombine.low %v2366_v21, %v2376_v0 }
 0x161   :  { %2817 = vst.msk [vmem:[#allocation3 + $0x38] sm:$0xff] %vm2809_vm2, %v2728_v55  ;;  %v2381_v55 = vshll.u32 %v1720_v28, 16 }
 0x162   :  { %2890 = vrot.lane.b32.xlu1 %v6683_v59, %s4979_s9  ;;  %v2726_v43 = vpop.permute.xlu0 %2725 }
 0x163   :  { %2816 = vst.msk [vmem:[#allocation3 + $0x30] sm:$0xff] %vm2809_vm2, %v2726_v43  ;;  %v2391_v43 = vshrl.u32 %v1721_v13, 16 }
 0x164   :  { %v2732_v9 = vpop.permute.xlu1 %2731  ;;  %2858 = vrot.lane.b32.xlu0 %v6235_v44, %s4979_s9 }
 0x165   :  { %2819 = vst.msk [vmem:[#allocation3 + $0x48] sm:$0xff] %vm2809_vm2, %v2732_v9  ;;  %v4686_v9 = vrot.slane %v3133_v2, 9  ;;  %v2393_v25 = vrot.slane %v2391_v43, 4  ;;  %v1725_v2 = vld [vmem:[#allocation2 + $0x14c] sm:$0x1] }
 0x166   :  { %3023 = vrot.lane.b32.xlu1 %v6683_v59, %s4980_s10  ;;  %v2730_v29 = vpop.permute.xlu0 %2729  ;;  %v2421_v43 = vshll.u32 %v1725_v2, 16 }
 0x167   :  { %2818 = vst.msk [vmem:[#allocation3 + $0x40] sm:$0xff] %vm2809_vm2, %v2730_v29  ;;  %v3512_v29 = vsel %vm6449_vm15, %v3510_v34, %v3511_v1  ;;  %v1050_v34 = vld [vmem:[#allocation2 + $0x188] sm:$0x1] }
 0x168   :  { %v2736_v63 = vpop.permute.xlu1 %2735  ;;  %2991 = vrot.lane.b32.xlu0 %v6235_v44, %s4980_s10  ;;  %v3503_v44 = vrot.slane %v3501_v30, 4  ;;  %v2383_v30 = vrot.slane %v2381_v55, 5 }
 0x169   :  { %2821 = vst.msk [vmem:[#allocation3 + $0x58] sm:$0xff] %vm2809_vm2, %v2736_v63  ;;  %v3384_v63 = vrot.slane %v3382_v38, 4 }
 0x16a   :  { %3025 = vrot.lane.b32.xlu1 %v6703_v5, %s4980_s10  ;;  %v2734_v20 = vpop.permute.xlu0 %2733  ;;  %v3505_v48 = vsel %vm6449_vm15, %v3503_v44, %v3504_v26  ;;  %v1724_v44 = vld [vmem:[#allocation2 + $0x148] sm:$0xf]  ;;  %v2384_v58 = vor.u32 %v2383_v30, %v2380_v16  ;;  %v2423_v30 = vrot.slane %v2421_v43, 5 }
 0x16b   :  { %2820 = vst.msk [vmem:[#allocation3 + $0x50] sm:$0xff] %vm2809_vm2, %v2734_v20  ;;  %v6728_v23 = vcombine.low %v3502_v42, %v3505_v48  ;;  %v1723_v20 = vld [vmem:[#allocation2 + $0x144] sm:$0xf]  ;;  %v3386_v19 = vsel %vm6449_vm15, %v3384_v63, %v3385_v10  ;;  %v2397_v48 = vshll.u32 %v1722_v6, 16  ;;  %v2411_v17 = vshll.u32 %v1724_v44, 16 }
 0x16c   :  { %v2740_v49 = vpop.permute.xlu1 %2739  ;;  %2993 = vrot.lane.b32.xlu0 %v6228_v4, %s4980_s10  ;;  %v2405_v51 = vshll.u32 %v1723_v20, 16 }
 0x16d   :  { %2823 = vst.msk [vmem:[#allocation3 + $0x68] sm:$0xff] %vm2809_vm2, %v2740_v49 }
 0x16e   :  { %3719 = vrot.lane.b32.xlu1 %v6623_v39, %s4981_s11  ;;  %v2738_v35 = vpop.permute.xlu0 %2737  ;;  %v3377_v39 = vrot.slane %v3375_v62, 4  ;;  %v3383_v62 = vsel %vm6449_vm15, %v4686_v9, %v3382_v38  ;;  %v2407_v28 = vrot.slane %v2405_v51, 5  ;;  %v1051_v38 = vsel %vm5241_vm5, %v706_v57, %v1050_v34  ;;  %v3190_v51 = vld [vmem:[#allocation2 + $0x138] sm:$0xe]  ;;  %v3140_v34 = vld [vmem:[#allocation2 + $0x70] sm:$0xf] }
 0x16f   :  { %2822 = vst.msk [vmem:[#allocation3 + $0x60] sm:$0xff] %vm2809_vm2, %v2738_v35  ;;  %v2402_v35 = vshrl.u32 %v1723_v20, 16  ;;  %1052 = vst [vmem:[#allocation2 + $0x188] sm:$0x1] %v1051_v38 }
 0x170   :  { %v2744_v61 = vpop.permute.xlu1 %2743  ;;  %3687 = vrot.lane.b32.xlu0 %v6635_v37, %s4981_s11  ;;  %v3379_v33 = vsel %vm6449_vm15, %v3377_v39, %v3378_v53  ;;  %v2415_v39 = vshrl.u32 %v1724_v44, 16  ;;  %v3191_v44 = vld [vmem:[#allocation2 + $0x13c] sm:$0xf] }
 0x171   :  { %2825 = vst.msk [vmem:[#allocation3 + $0x78] sm:$0xff] %vm2809_vm2, %v2744_v61  ;;  %v6743_v0 = vcombine.low %v3376_v60, %v3379_v33  ;;  %v2404_v15 = vrot.slane %v2402_v35, 4  ;;  %v2399_v60 = vrot.slane %v2397_v48, 5  ;;  %v2413_v33 = vrot.slane %v2411_v17, 5  ;;  %v3136_v48 = vld [vmem:[#allocation2 + $0x60] sm:$0xe] }
 0x172   :  { %3721 = vrot.lane.b32.xlu1 %v6647_v32, %s4981_s11  ;;  %v2742_v52 = vpop.permute.xlu0 %2741  ;;  %v4705_v17 = vrot.slane %v3190_v51, 9 }
 0x173   :  { %2824 = vst.msk [vmem:[#allocation3 + $0x70] sm:$0xff] %vm2809_vm2, %v2742_v52  ;;  %v2385_v52 = vrot.slane %v2384_v58, 4  ;;  %v3137_v58 = vld [vmem:[#allocation2 + $0x64] sm:$0xf] }
 0x174   :  { %v2748_v37 = vpop.permute.xlu1 %2747  ;;  %3689 = vrot.lane.b32.xlu0 %v6659_v47, %s4981_s11 }
 0x175   :  { %2827 = vst.msk [vmem:[#allocation3 + $0x88] sm:$0xff] %vm2809_vm2, %v2748_v37 }
 0x176   :  { %3854 = vrot.lane.b32.xlu1 %v6647_v32, %s4982_s14  ;;  %v2746_v36 = vpop.permute.xlu0 %2745  ;;  %v3509_v32 = vsel %vm6449_vm15, %v4704_v54, %v3508_v50  ;;  %v6768_v50 = vcombine.low %v3383_v62, %v3386_v19  ;;  %v2417_v54 = vrot.slane %v2415_v39, 4  ;;  %v3515_v19 = vrot.slane %v3191_v44, 5 }
 0x177   :  { %2826 = vst.msk [vmem:[#allocation3 + $0x80] sm:$0xff] %vm2809_vm2, %v2746_v36  ;;  %v6755_v26 = vcombine.low %v3509_v32, %v3512_v29  ;;  %v2408_v36 = vor.u32 %v2407_v28, %v2404_v15  ;;  %v7563_v32 = vld [vmem:[#allocation26_spill] sm:$0xff]  ;;  %v4687_v28 = vrot.slane %v3136_v48, 9 }
 0x178   :  { %v2752_v21 = vpop.permute.xlu1 %2751  ;;  %3822 = vrot.lane.b32.xlu0 %v6659_v47, %s4982_s14  ;;  %v2389_v47 = vrot.slane %v2387_v11, 5  ;;  %v2418_v11 = vor.u32 %v2417_v54, %v2413_v33  ;;  %v723_v9 = vrot.slane %v7563_v32, 4  ;;  %v3517_v39 = vrot.slane %v3515_v19, 4  ;;  %v3195_v54 = vld [vmem:[#allocation2 + $0x14c] sm:$0x1] }
 0x179   :  { %2829 = vst.msk [vmem:[#allocation3 + $0x98] sm:$0xff] %vm2809_vm2, %v2752_v21  ;;  %v2409_v63 = vrot.slane %v2408_v36, 4  ;;  %v3525_v43 = vrot.slane %v3195_v54, 5 }
 0x17a   :  { %3856 = vrot.lane.b32.xlu1 %v6728_v23, %s4982_s14  ;;  %v2750_v22 = vpop.permute.xlu0 %2749  ;;  %v2394_v42 = vor.u32 %v2393_v25, %v2389_v47  ;;  %v2390_v7 = vsel %vm5942_vm12, %v2385_v52, %v2389_v47  ;;  %v2419_v16 = vrot.slane %v2418_v11, 4  ;;  %v1057_v47 = vld [vmem:[#allocation2 + $0x194] sm:$0x1]  ;;  %v3194_v52 = vld [vmem:[#allocation2 + $0x148] sm:$0xf] }
 0x17b   :  { %2828 = vst.msk [vmem:[#allocation3 + $0x90] sm:$0xff] %vm2809_vm2, %v2750_v22  ;;  %v2414_v25 = vsel %vm5942_vm12, %v2409_v63, %v2413_v33  ;;  %v3193_v33 = vld [vmem:[#allocation2 + $0x144] sm:$0xe] }
 0x17c   :  { %v2881_v49 = vpop.permute.xlu1 %2880  ;;  %3824 = vrot.lane.b32.xlu0 %v6743_v0, %s4982_s14  ;;  %v2395_v13 = vrot.slane %v2394_v42, 4  ;;  %v2424_v20 = vsel %vm5942_vm12, %v2419_v16, %v2423_v30  ;;  %v4706_v11 = vrot.slane %v3193_v33, 9 }
 0x17d   :  { %2961 = vst.msk [vmem:[#allocation3 + $0x80] sm:$0xff] %vm2944_vm3, %v2881_v49 }
 0x17e   :  { %3989 = vrot.lane.b32.xlu1 %v6728_v23, %s4983_s1  ;;  %v2849_v61 = vpop.permute.xlu0 %2848  ;;  %v2400_v55 = vsel %vm5942_vm12, %v2395_v13, %v2399_v60  ;;  %v3392_v13 = vrot.slane %v3138_v40, 5 }
 0x17f   :  { %2945 = vst.msk [vmem:[#allocation3] sm:$0xff] %vm2944_vm3, %v2849_v61  ;;  %v6791_v10 = vcombine.low %v2390_v7, %v2400_v55  ;;  %v3192_v61 = vld [vmem:[#allocation2 + $0x140] sm:$0x1]  ;;  %v1726_v7 = vld [vmem:[#allocation2 + $0x150] sm:$0xf] }
 0x180   :  { %v2883_v53 = vpop.permute.xlu1 %2882  ;;  %3957 = vrot.lane.b32.xlu0 %v6743_v0, %s4983_s1  ;;  %v2426_v63 = vshrl.u32 %v1726_v7, 16  ;;  %v2429_v16 = vshll.u32 %v1726_v7, 16  ;;  %v7565_v7 = vld [vmem:[#allocation25_spill] sm:$0xff] }
 0x181   :  { %2962 = vst.msk [vmem:[#allocation3 + $0x88] sm:$0xff] %vm2944_vm3, %v2883_v53  ;;  %v3518_v53 = vrot.slane %v3192_v61, 5  ;;  %v1729_v61 = vld [vmem:[#allocation2 + $0x15c] sm:$0xf] }
 0x182   :  { %3991 = vrot.lane.b32.xlu1 %v6755_v26, %s4983_s1  ;;  %v2851_v37 = vpop.permute.xlu0 %2850 }
 0x183   :  { %2946 = vst.msk [vmem:[#allocation3 + $0x8] sm:$0xff] %vm2944_vm3, %v2851_v37  ;;  %v3519_v60 = vsel %vm6449_vm15, %v3517_v39, %v3518_v53 }
 0x184   :  { %v3016_v1 = vpop.permute.xlu1 %3015  ;;  %3959 = vrot.lane.b32.xlu0 %v6768_v50, %s4983_s1 }
 0x185   :  { %3096 = vst.msk [vmem:[#allocation3 + $0x80] sm:$0xff] %vm3079_vm4, %v3016_v1  ;;  %v3522_v1 = vrot.slane %v3194_v52, 5  ;;  %v2450_v52 = vshrl.u32 %v1729_v61, 16 }
 0x186   :  { %2759 = vrot.lane.b32.xlu1 %v6703_v5, %s4978_s15  ;;  %v2984_v41 = vpop.permute.xlu0 %2983 }
 0x187   :  { %3080 = vst.msk [vmem:[#allocation3] sm:$0xff] %vm3079_vm4, %v2984_v41  ;;  %v1727_v41 = vld [vmem:[#allocation2 + $0x154] sm:$0xf]  ;;  %v3524_v32 = vrot.slane %v3522_v1, 4 }
 0x188   :  { %v3018_v21 = vpop.permute.xlu1 %3017  ;;  %2757 = vrot.lane.b32.xlu0 %v6683_v59, %s4978_s15  ;;  %v1058_v59 = vsel %vm5241_vm5, %v723_v9, %v1057_v47  ;;  %v3141_v9 = vld [vmem:[#allocation2 + $0x74] sm:$0x1]  ;;  %v2439_v47 = vshrl.u32 %v1727_v41, 16 }
 0x189   :  { %3097 = vst.msk [vmem:[#allocation3 + $0x88] sm:$0xff] %vm3079_vm4, %v3018_v21  ;;  %1059 = vst [vmem:[#allocation2 + $0x194] sm:$0x1] %v1058_v59  ;;  %v3139_v21 = vld [vmem:[#allocation2 + $0x6c] sm:$0xe] }
 0x18a   :  { %2892 = vrot.lane.b32.xlu1 %v6703_v5, %s4979_s9  ;;  %v2986_v29 = vpop.permute.xlu0 %2985  ;;  %v2441_v51 = vrot.slane %v2439_v47, 4 }
 0x18b   :  { %3081 = vst.msk [vmem:[#allocation3 + $0x8] sm:$0xff] %vm3079_vm4, %v2986_v29  ;;  %v3396_v29 = vrot.slane %v3140_v34, 5 }
 0x18c   :  { %v3712_v22 = vpop.permute.xlu1 %3711  ;;  %2860 = vrot.lane.b32.xlu0 %v6228_v4, %s4979_s9  ;;  %v6811_v4 = vcombine.low %v2414_v25, %v2424_v20  ;;  %v3523_v25 = vsel %vm6449_vm15, %v4706_v11, %v3522_v1  ;;  %v4688_v20 = vrot.slane %v3139_v21, 9  ;;  %v7564_v1 = vld [vmem:[#allocation8_spill] sm:$0xff] }
 0x18d   :  { %3792 = vst.msk [vmem:[#allocation3 + $0x80] sm:$0xff] %vm3775_vm6, %v3712_v22  ;;  %v2435_v22 = vshll.u32 %v1727_v41, 16  ;;  %v3398_v44 = vrot.slane %v3396_v29, 4  ;;  %v2452_v41 = vrot.slane %v2450_v52, 4 }
 0x18e   :  { %2894 = vrot.lane.b32.xlu1 %v6791_v10, %s4979_s9  ;;  %v3680_v5 = vpop.permute.xlu0 %3679  ;;  %v3397_v53 = vsel %vm6449_vm15, %v4688_v20, %v3396_v29 }
 0x18f   :  { %3776 = vst.msk [vmem:[#allocation3] sm:$0xff] %vm3775_vm6, %v3680_v5 }
 0x190   :  { %v3714_v49 = vpop.permute.xlu1 %3713  ;;  %2862 = vrot.lane.b32.xlu0 %v6240_v56, %s4979_s9 }
 0x191   :  { %3793 = vst.msk [vmem:[#allocation3 + $0x88] sm:$0xff] %vm3775_vm6, %v3714_v49  ;;  %v3399_v49 = vrot.slane %v3141_v9, 5 }
 0x192   :  { %3027 = vrot.lane.b32.xlu1 %v6791_v10, %s4980_s10  ;;  %v3682_v6 = vpop.permute.xlu0 %3681 }
 0x193   :  { %3777 = vst.msk [vmem:[#allocation3 + $0x8] sm:$0xff] %vm3775_vm6, %v3682_v6  ;;  %v3526_v6 = vsel %vm6449_vm15, %v3524_v32, %v3525_v43  ;;  %v3400_v40 = vsel %vm6449_vm15, %v3398_v44, %v3399_v49 }
 0x194   :  { %v3847_v62 = vpop.permute.xlu1 %3846  ;;  %2995 = vrot.lane.b32.xlu0 %v6240_v56, %s4980_s10  ;;  %v3389_v56 = vrot.slane %v3137_v58, 5  ;;  %v6868_v39 = vcombine.low %v3523_v25, %v3526_v6  ;;  %v6883_v34 = vcombine.low %v3397_v53, %v3400_v40  ;;  %v3143_v53 = vld [vmem:[#allocation2 + $0x7c] sm:$0xf]  ;;  %v3196_v40 = vld [vmem:[#allocation2 + $0x150] sm:$0xe] }
 0x195   :  { %3927 = vst.msk [vmem:[#allocation3 + $0x80] sm:$0xff] %vm3910_vm7, %v3847_v62  ;;  %v2428_v62 = vrot.slane %v2426_v63, 4  ;;  %v1731_v63 = vld [vmem:[#allocation2 + $0x164] sm:$0x1] }
 0x196   :  { %3029 = vrot.lane.b32.xlu1 %v6811_v4, %s4980_s10  ;;  %v3815_v35 = vpop.permute.xlu0 %3814  ;;  %v3391_v37 = vrot.slane %v3389_v56, 4  ;;  %v3390_v38 = vsel %vm6449_vm15, %v4687_v28, %v3389_v56  ;;  %v1728_v56 = vld [vmem:[#allocation2 + $0x158] sm:$0x1]  ;;  %v2469_v49 = vshll.u32 %v1731_v63, 16 }
 0x197   :  { %3911 = vst.msk [vmem:[#allocation3] sm:$0xff] %vm3910_vm7, %v3815_v35  ;;  %v6860_v35 = vrot.slane %v2435_v22, 5 }
 0x198   :  { %v3849_v42 = vpop.permute.xlu1 %3848  ;;  %2997 = vrot.lane.b32.xlu0 %v6237_v31, %s4980_s10  ;;  %v3393_v36 = vsel %vm6449_vm15, %v3391_v37, %v3392_v13 }
 0x199   :  { %3928 = vst.msk [vmem:[#allocation3 + $0x88] sm:$0xff] %vm3910_vm7, %v3849_v42  ;;  %v2442_v13 = vor.u32 %v2441_v51, %v6860_v35 }
 0x19a   :  { %3723 = vrot.lane.b32.xlu1 %v6728_v23, %s4981_s11  ;;  %v3817_v57 = vpop.permute.xlu0 %3816  ;;  %v3516_v23 = vsel %vm6449_vm15, %v4705_v17, %v3515_v19  ;;  %v1730_v17 = vld [vmem:[#allocation2 + $0x160] sm:$0xf] }
 0x19b   :  { %3912 = vst.msk [vmem:[#allocation3 + $0x8] sm:$0xff] %vm3910_vm7, %v3817_v57  ;;  %v6841_v55 = vcombine.low %v3516_v23, %v3519_v60  ;;  %v2445_v23 = vshll.u32 %v1728_v56, 16  ;;  %v2459_v60 = vshll.u32 %v1730_v17, 16  ;;  %v2463_v33 = vshrl.u32 %v1730_v17, 16 }
 0x19c   :  { %v3982_v15 = vpop.permute.xlu1 %3981  ;;  %3691 = vrot.lane.b32.xlu0 %v6743_v0, %s4981_s11  ;;  %v2443_v43 = vrot.slane %v2442_v13, 4 }
 0x19d   :  { %4062 = vst.msk [vmem:[#allocation3 + $0x80] sm:$0xff] %vm4045_vm8, %v3982_v15  ;;  %v2453_v15 = vshll.u32 %v1729_v61, 16  ;;  %v2447_v21 = vrot.slane %v2445_v23, 5  ;;  %v2461_v32 = vrot.slane %v2459_v60, 5  ;;  %v2465_v9 = vrot.slane %v2463_v33, 4 }
 0x19e   :  { %3725 = vrot.lane.b32.xlu1 %v6755_v26, %s4981_s11  ;;  %v3950_v2 = vpop.permute.xlu0 %3949  ;;  %v3144_v60 = vld [vmem:[#allocation2 + $0x80] sm:$0x1] }
 0x19f   :  { %4046 = vst.msk [vmem:[#allocation3] sm:$0xff] %vm4045_vm8, %v3950_v2  ;;  %v468_v2 = vrot.slane %v7564_v1, 4  ;;  %v2448_v25 = vsel %vm5942_vm12, %v2443_v43, %v2447_v21  ;;  %v2466_v20 = vor.u32 %v2465_v9, %v2461_v32  ;;  %v3200_v33 = vld [vmem:[#allocation2 + $0x160] sm:$0xf]  ;;  %v3146_v43 = vld [vmem:[#allocation2 + $0x88] sm:$0xf] }
 0x1a0   :  { %v3984_v0 = vpop.permute.xlu1 %3983  ;;  %3693 = vrot.lane.b32.xlu0 %v6768_v50, %s4981_s11  ;;  %v1733_v9 = vld [vmem:[#allocation2 + $0x16c] sm:$0xf] }
 0x1a1   :  { %4063 = vst.msk [vmem:[#allocation3 + $0x88] sm:$0xff] %vm4045_vm8, %v3984_v0  ;;  %v740_v0 = vrot.slane %v7565_v7, 4 }
 0x1a2   :  { %3858 = vrot.lane.b32.xlu1 %v6755_v26, %s4982_s14  ;;  %v3952_v30 = vpop.permute.xlu0 %3951  ;;  %v6852_v26 = vcombine.low %v3390_v38, %v3393_v36  ;;  %v2455_v36 = vrot.slane %v2453_v15, 5 }
 0x1a3   :  { %4047 = vst.msk [vmem:[#allocation3 + $0x8] sm:$0xff] %vm4045_vm8, %v3952_v30  ;;  %v952_v30 = vld [vmem:[#allocation2 + $0xc8] sm:$0x1] }
 0x1a4   :  { %v2885_v59 = vpop.permute.xlu1 %2884  ;;  %v4100_v5 = vld [vmem:[#allocation3 + $0x80] sm:$0xff]  ;;  %3826 = vrot.lane.b32.xlu0 %v6768_v50, %s4982_s14  ;;  %v2431_v50 = vrot.slane %v2429_v16, 5  ;;  %v1064_v16 = vld [vmem:[#allocation2 + $0x1a0] sm:$0x1]  ;;  %v2456_v47 = vor.u32 %v2455_v36, %v2452_v41  ;;  %v953_v6 = vsel %vm5241_vm5, %v468_v2, %v952_v30  ;;  %v3199_v36 = vld [vmem:[#allocation2 + $0x15c] sm:$0xe] }
 0x1a5   :  { %2963 = vst.msk [vmem:[#allocation3 + $0x90] sm:$0xff] %vm2944_vm3, %v2885_v59  ;;  %4860 = vmatprep.mubr.msk.bf16.mxu1 %vm4137_vm9, %v4100_v5  ;;  %v1065_v59 = vsel %vm5241_vm5, %v740_v0, %v1064_v16  ;;  %954 = vst [vmem:[#allocation2 + $0xc8] sm:$0x1] %v953_v6  ;;  %v3406_v0 = vrot.slane %v3144_v60, 5 }
 0x1a6   :  { %3860 = vrot.lane.b32.xlu1 %v6841_v55, %s4982_s14  ;;  %v2853_v19 = vpop.permute.xlu0 %2852  ;;  %v4084_v58 = vld [vmem:[#allocation3] sm:$0xff]  ;;  %v2432_v57 = vor.u32 %v2431_v50, %v2428_v62  ;;  %1066 = vst [vmem:[#allocation2 + $0x1a0] sm:$0x1] %v1065_v59 }
 0x1a7   :  { %2947 = vst.msk [vmem:[#allocation3 + $0x10] sm:$0xff] %vm2944_vm3, %v2853_v19  ;;  %4828 = vmatprep.mubr.msk.bf16.mxu0 %vm4137_vm9, %v4084_v58  ;;  %v2457_v19 = vrot.slane %v2456_v47, 4  ;;  %v2467_v58 = vrot.slane %v2466_v20, 4  ;;  %v3147_v20 = vld [vmem:[#allocation2 + $0x8c] sm:$0x1] }
 0x1a8   :  { %v2887_v42 = vpop.permute.xlu1 %2886  ;;  %v4101_v48 = vld [vmem:[#allocation3 + $0x88] sm:$0xff]  ;;  %3828 = vrot.lane.b32.xlu0 %v6852_v26, %s4982_s14  ;;  %v2433_v38 = vrot.slane %v2432_v57, 4 }
 0x1a9   :  { %2964 = vst.msk [vmem:[#allocation3 + $0x98] sm:$0xff] %vm2944_vm3, %v2887_v42  ;;  %4861 = vmatmul.mubr.msk.bf16.vlgmr.msra.gmra.mrb[0].mxu1 %vm4137_vm9, %v4101_v48  ;;  %v3197_v42 = vld [vmem:[#allocation2 + $0x154] sm:$0xf]  ;;  %v3198_v57 = vld [vmem:[#allocation2 + $0x158] sm:$0x1] }
 0x1aa   :  { %3993 = vrot.lane.b32.xlu1 %v6841_v55, %s4983_s1  ;;  %v2855_v28 = vpop.permute.xlu0 %2854  ;;  %v4085_v37 = vld [vmem:[#allocation3 + $0x8] sm:$0xff]  ;;  %v2438_v22 = vsel %vm5942_vm12, %v2433_v38, %v6860_v35  ;;  %v2471_v35 = vrot.slane %v2469_v49, 5  ;;  %v3529_v17 = vrot.slane %v3197_v42, 5  ;;  %v3532_v23 = vrot.slane %v3198_v57, 5  ;;  %v1734_v57 = vld [vmem:[#allocation2 + $0x170] sm:$0x1] }
 0x1ab   :  { %2948 = vst.msk [vmem:[#allocation3 + $0x18] sm:$0xff] %vm2944_vm3, %v2855_v28  ;;  %4829 = vmatmul.mubr.msk.bf16.vlgmr.msra.gmra.mrb[0].mxu0 %vm4137_vm9, %v4085_v37  ;;  %v6909_v62 = vcombine.low %v2438_v22, %v2448_v25  ;;  %v3142_v28 = vld [vmem:[#allocation2 + $0x78] sm:$0xe]  ;;  %v3403_v37 = vrot.slane %v3143_v53, 5  ;;  %v4708_v22 = vrot.slane %v3199_v36, 9  ;;  %v3410_v25 = vrot.slane %v3146_v43, 5 }
 0x1ac   :  { %v3020_v54 = vpop.permute.xlu1 %3019  ;;  %3961 = vrot.lane.b32.xlu0 %v6852_v26, %s4983_s1  ;;  %v2472_v51 = vsel %vm5942_vm12, %v2467_v58, %v2471_v35  ;;  %v3531_v13 = vrot.slane %v3529_v17, 4  ;;  %v4689_v2 = vrot.slane %v3142_v28, 9  ;;  %v3413_v42 = vrot.slane %v3147_v20, 5  ;;  %v1736_v28 = vld [vmem:[#allocation2 + $0x178] sm:$0xf] }
 0x1ad   :  { %3098 = vst.msk [vmem:[#allocation3 + $0x90] sm:$0xff] %vm3079_vm4, %v3020_v54  ;;  %v3405_v7 = vrot.slane %v3403_v37, 4 }
 0x1ae   :  { %3995 = vrot.lane.b32.xlu1 %v6868_v39, %s4983_s1  ;;  %v2988_v11 = vpop.permute.xlu0 %2987  ;;  %v3533_v41 = vsel %vm6449_vm15, %v3531_v13, %v3532_v23  ;;  %v3404_v16 = vsel %vm6449_vm15, %v4689_v2, %v3403_v37 }
 0x1af   :  { %3082 = vst.msk [vmem:[#allocation3 + $0x10] sm:$0xff] %vm3079_vm4, %v2988_v11  ;;  %v3201_v11 = vld [vmem:[#allocation2 + $0x164] sm:$0x1]  ;;  %v3407_v30 = vsel %vm6449_vm15, %v3405_v7, %v3406_v0  ;;  %v2507_v7 = vshll.u32 %v1736_v28, 16  ;;  %v2511_v0 = vshrl.u32 %v1736_v28, 16 }
 0x1b0   :  { %v3022_v29 = vpop.permute.xlu1 %3021  ;;  %3963 = vrot.lane.b32.xlu0 %v6883_v34, %s4983_s1  ;;  %v3539_v59 = vrot.slane %v3201_v11, 5  ;;  %v3206_v28 = vld [vmem:[#allocation2 + $0x178] sm:$0xf] }
 0x1b1   :  { %3099 = vst.msk [vmem:[#allocation3 + $0x98] sm:$0xff] %vm3079_vm4, %v3022_v29 }
 0x1b2   :  { %2763 = vrot.lane.b32.xlu1 %v6811_v4, %s4978_s15  ;;  %v2990_v5 = vpop.permute.xlu0 %2989 }
 0x1b3   :  { %3083 = vst.msk [vmem:[#allocation3 + $0x18] sm:$0xff] %vm3079_vm4, %v2990_v5  ;;  %v3145_v5 = vld [vmem:[#allocation2 + $0x84] sm:$0xe] }
 0x1b4   :  { %v3716_v44 = vpop.permute.xlu1 %3715  ;;  %2761 = vrot.lane.b32.xlu0 %v6791_v10, %s4978_s15 }
 0x1b5   :  { %3794 = vst.msk [vmem:[#allocation3 + $0x90] sm:$0xff] %vm3775_vm6, %v3716_v44  ;;  %v2483_v44 = vshll.u32 %v1733_v9, 16 }
 0x1b6   :  { %2896 = vrot.lane.b32.xlu1 %v6811_v4, %s4979_s9  ;;  %v3684_v50 = vpop.permute.xlu0 %3683  ;;  %v2462_v4 = vsel %vm5942_vm12, %v2457_v19, %v2461_v32  ;;  %v1732_v32 = vld [vmem:[#allocation2 + $0x168] sm:$0xf] }
 0x1b7   :  { %3778 = vst.msk [vmem:[#allocation3 + $0x10] sm:$0xff] %vm3775_vm6, %v3684_v50  ;;  %v2474_v49 = vshrl.u32 %v1732_v32, 16  ;;  %v2477_v6 = vshll.u32 %v1732_v32, 16  ;;  %v2487_v50 = vshrl.u32 %v1733_v9, 16  ;;  %v2509_v9 = vrot.slane %v2507_v7, 5 }
 0x1b8   :  { %v3718_v8 = vpop.permute.xlu1 %3717  ;;  %2864 = vrot.lane.b32.xlu0 %v6237_v31, %s4979_s9  ;;  %v6927_v31 = vcombine.low %v2462_v4, %v2472_v51  ;;  %v4690_v4 = vrot.slane %v3145_v5, 9  ;;  %v3207_v7 = vld [vmem:[#allocation2 + $0x17c] sm:$0x1] }
 0x1b9   :  { %3795 = vst.msk [vmem:[#allocation3 + $0x98] sm:$0xff] %vm3775_vm6, %v3718_v8  ;;  %v2489_v53 = vrot.slane %v2487_v50, 4 }
 0x1ba   :  { %2898 = vrot.lane.b32.xlu1 %v6909_v62, %s4979_s9  ;;  %v3686_v10 = vpop.permute.xlu0 %3685 }
 0x1bb   :  { %3779 = vst.msk [vmem:[#allocation3 + $0x18] sm:$0xff] %vm3775_vm6, %v3686_v10  ;;  %v6966_v10 = vcombine.low %v3404_v16, %v3407_v30  ;;  %v1737_v16 = vld [vmem:[#allocation2 + $0x17c] sm:$0x1] }
 0x1bc   :  { %v3851_v61 = vpop.permute.xlu1 %3850  ;;  %2866 = vrot.lane.b32.xlu0 %v6286_v12, %s4979_s9 }
 0x1bd   :  { %3929 = vst.msk [vmem:[#allocation3 + $0x90] sm:$0xff] %vm3910_vm7, %v3851_v61  ;;  %v3412_v61 = vrot.slane %v3410_v25, 4 }
 0x1be   :  { %3031 = vrot.lane.b32.xlu1 %v6909_v62, %s4980_s10  ;;  %v3819_v48 = vpop.permute.xlu0 %3818 }
 0x1bf   :  { %3913 = vst.msk [vmem:[#allocation3 + $0x10] sm:$0xff] %vm3910_vm7, %v3819_v48  ;;  %v2476_v48 = vrot.slane %v2474_v49, 4  ;;  %v3414_v13 = vsel %vm6449_vm15, %v3412_v61, %v3413_v42  ;;  %v3149_v42 = vld [vmem:[#allocation2 + $0x94] sm:$0xf] }
 0x1c0   :  { %v3853_v56 = vpop.permute.xlu1 %3852  ;;  %2999 = vrot.lane.b32.xlu0 %v6286_v12, %s4980_s10  ;;  %v4707_v12 = vrot.slane %v3196_v40, 9 }
 0x1c1   :  { %3930 = vst.msk [vmem:[#allocation3 + $0x98] sm:$0xff] %vm3910_vm7, %v3853_v56  ;;  %v2479_v56 = vrot.slane %v2477_v6, 5 }
 0x1c2   :  { %3033 = vrot.lane.b32.xlu1 %v6927_v31, %s4980_s10  ;;  %v3821_v52 = vpop.permute.xlu0 %3820  ;;  %v3530_v38 = vsel %vm6449_vm15, %v4707_v12, %v3529_v17  ;;  %v2485_v17 = vrot.slane %v2483_v44, 5  ;;  %v3411_v12 = vsel %vm6449_vm15, %v4690_v4, %v3410_v25  ;;  %v2517_v25 = vshll.u32 %v1737_v16, 16  ;;  %v3203_v4 = vld [vmem:[#allocation2 + $0x16c] sm:$0xf]  ;;  %v3151_v16 = vld [vmem:[#allocation2 + $0x9c] sm:$0xe] }
 0x1c3   :  { %3914 = vst.msk [vmem:[#allocation3 + $0x18] sm:$0xff] %vm3910_vm7, %v3821_v52  ;;  %v6952_v63 = vcombine.low %v3530_v38, %v3533_v41  ;;  %v2480_v23 = vor.u32 %v2479_v56, %v2476_v48  ;;  %v6995_v41 = vcombine.low %v3411_v12, %v3414_v13  ;;  %v3543_v61 = vrot.slane %v3203_v4, 5  ;;  %v3202_v48 = vld [vmem:[#allocation2 + $0x168] sm:$0xe]  ;;  %v3204_v56 = vld [vmem:[#allocation2 + $0x170] sm:$0x1] }
 0x1c4   :  { %v3986_v15 = vpop.permute.xlu1 %3985  ;;  %3001 = vrot.lane.b32.xlu0 %v6242_v45, %s4980_s10  ;;  %v2490_v60 = vor.u32 %v2489_v53, %v2485_v17 }
 0x1c5   :  { %4064 = vst.msk [vmem:[#allocation3 + $0x90] sm:$0xff] %vm4045_vm8, %v3986_v15  ;;  %v1735_v15 = vld [vmem:[#allocation2 + $0x174] sm:$0xf] }
 0x1c6   :  { %3727 = vrot.lane.b32.xlu1 %v6841_v55, %s4981_s11  ;;  %v3954_v54 = vpop.permute.xlu0 %3953  ;;  %v3536_v55 = vrot.slane %v3200_v33, 5  ;;  %v2493_v33 = vshll.u32 %v1734_v57, 16  ;;  %v2501_v2 = vshll.u32 %v1735_v15, 16  ;;  %v2491_v36 = vrot.slane %v2490_v60, 4 }
 0x1c7   :  { %4048 = vst.msk [vmem:[#allocation3 + $0x10] sm:$0xff] %vm4045_vm8, %v3954_v54  ;;  %v3545_v57 = vrot.slane %v3543_v61, 4 }
 0x1c8   :  { %v3988_v1 = vpop.permute.xlu1 %3987  ;;  %3695 = vrot.lane.b32.xlu0 %v6852_v26, %s4981_s11  ;;  %v3538_v47 = vrot.slane %v3536_v55, 4  ;;  %v2495_v11 = vrot.slane %v2493_v33, 5  ;;  %v2503_v32 = vrot.slane %v2501_v2, 5  ;;  %v3205_v2 = vld [vmem:[#allocation2 + $0x174] sm:$0xe] }
 0x1c9   :  { %4065 = vst.msk [vmem:[#allocation3 + $0x98] sm:$0xff] %vm4045_vm8, %v3988_v1  ;;  %v2498_v1 = vshrl.u32 %v1735_v15, 16  ;;  %v3150_v15 = vld [vmem:[#allocation2 + $0x98] sm:$0x1] }
 0x1ca   :  { %3729 = vrot.lane.b32.xlu1 %v6868_v39, %s4981_s11  ;;  %v3956_v21 = vpop.permute.xlu0 %3955  ;;  %v3540_v51 = vsel %vm6449_vm15, %v3538_v47, %v3539_v59  ;;  %v2496_v47 = vsel %vm5942_vm12, %v2491_v36, %v2495_v11  ;;  %v3420_v33 = vrot.slane %v3150_v15, 5  ;;  %v1739_v36 = vld [vmem:[#allocation2 + $0x184] sm:$0xf] }
 0x1cb   :  { %4049 = vst.msk [vmem:[#allocation3 + $0x18] sm:$0xff] %vm4045_vm8, %v3956_v21  ;;  %v2500_v21 = vrot.slane %v2498_v1, 4 }
 0x1cc   :  { %v2756_v26 = vpop.permute.xlu1 %2755  ;;  %v4102_v29 = vld [vmem:[#allocation3 + $0x90] sm:$0xff]  ;;  %3697 = vrot.lane.b32.xlu0 %v6883_v34, %s4981_s11 }
 0x1cd   :  { %2831 = vst.msk [vmem:[#allocation3 + $0xa8] sm:$0xff] %vm2809_vm2, %v2756_v26  ;;  %4864 = vmatprep.mubr.msk.bf16.mxu1 %vm4137_vm9, %v4102_v29  ;;  %v2513_v26 = vrot.slane %v2511_v0, 4  ;;  %v2504_v59 = vor.u32 %v2503_v32, %v2500_v21  ;;  %v3152_v0 = vld [vmem:[#allocation2 + $0xa0] sm:$0xf] }
 0x1ce   :  { %3862 = vrot.lane.b32.xlu1 %v6868_v39, %s4982_s14  ;;  %v2754_v19 = vpop.permute.xlu0 %2753  ;;  %v4086_v58 = vld [vmem:[#allocation3 + $0x10] sm:$0xff]  ;;  %v3537_v39 = vsel %vm6449_vm15, %v4708_v22, %v3536_v55  ;;  %v2481_v55 = vrot.slane %v2480_v23, 4 }
 0x1cf   :  { %2830 = vst.msk [vmem:[#allocation3 + $0xa0] sm:$0xff] %vm2809_vm2, %v2754_v19  ;;  %4832 = vmatprep.mubr.msk.bf16.mxu0 %vm4137_vm9, %v4086_v58  ;;  %v6983_v37 = vcombine.low %v3537_v39, %v3540_v51  ;;  %v2514_v5 = vor.u32 %v2513_v26, %v2509_v9  ;;  %v2505_v44 = vrot.slane %v2504_v59, 4  ;;  %v2519_v19 = vrot.slane %v2517_v25, 5 }
 0x1d0   :  { %v2889_v35 = vpop.permute.xlu1 %2888  ;;  %v4103_v8 = vld [vmem:[#allocation3 + $0x98] sm:$0xff]  ;;  %3830 = vrot.lane.b32.xlu0 %v6883_v34, %s4982_s14  ;;  %v2486_v30 = vsel %vm5942_vm12, %v2481_v55, %v2485_v17  ;;  %v1738_v55 = vld [vmem:[#allocation2 + $0x180] sm:$0xf]  ;;  %v2535_v25 = vshrl.u32 %v1739_v36, 16 }
 0x1d1   :  { %2965 = vst.msk [vmem:[#allocation3 + $0xa0] sm:$0xff] %vm2944_vm3, %v2889_v35  ;;  %4865 = vmatmul.mubr.msk.bf16.gmra.mrb[4].mxu1 %vm4137_vm9, %v4103_v8  ;;  %v7015_v49 = vcombine.low %v2486_v30, %v2496_v47  ;;  %v2515_v50 = vrot.slane %v2514_v5, 4  ;;  %v3424_v30 = vrot.slane %v3152_v0, 5  ;;  %v2522_v47 = vshrl.u32 %v1738_v55, 16 }
 0x1d2   :  { %3864 = vrot.lane.b32.xlu1 %v6952_v63, %s4982_s14  ;;  %v2857_v34 = vpop.permute.xlu0 %2856  ;;  %v4087_v40 = vld [vmem:[#allocation3 + $0x18] sm:$0xff]  ;;  %v2525_v59 = vshll.u32 %v1738_v55, 16  ;;  %v2531_v5 = vshll.u32 %v1739_v36, 16 }
 0x1d3   :  { %2949 = vst.msk [vmem:[#allocation3 + $0x20] sm:$0xff] %vm2944_vm3, %v2857_v34  ;;  %4833 = vmatmul.mubr.msk.bf16.gmra.mrb[4].mxu0 %vm4137_vm9, %v4087_v40  ;;  %v2520_v35 = vsel %vm5942_vm12, %v2515_v50, %v2519_v19  ;;  %v3148_v34 = vld [vmem:[#allocation2 + $0x90] sm:$0xe]  ;;  %v3417_v40 = vrot.slane %v3149_v42, 5  ;;  %v1740_v42 = vld [vmem:[#allocation2 + $0x188] sm:$0x1] }
 0x1d4   :  { %v2891_v52 = vpop.permute.xlu1 %2890  ;;  %3832 = vrot.lane.b32.xlu0 %v6966_v10, %s4982_s14  ;;  %v4691_v23 = vrot.slane %v3148_v34, 9  ;;  %v2527_v4 = vrot.slane %v2525_v59, 5 }
 0x1d5   :  { %2966 = vst.msk [vmem:[#allocation3 + $0xa8] sm:$0xff] %vm2944_vm3, %v2891_v52  ;;  %v3546_v52 = vrot.slane %v3204_v56, 5  ;;  %v3419_v60 = vrot.slane %v3417_v40, 4  ;;  %v1741_v56 = vld [vmem:[#allocation2 + $0x18c] sm:$0xf] }
 0x1d6   :  { %3997 = vrot.lane.b32.xlu1 %v6952_v63, %s4983_s1  ;;  %v2859_v54 = vpop.permute.xlu0 %2858  ;;  %v3418_v21 = vsel %vm6449_vm15, %v4691_v23, %v3417_v40 }
 0x1d7   :  { %2950 = vst.msk [vmem:[#allocation3 + $0x28] sm:$0xff] %vm2944_vm3, %v2859_v54  ;;  %v3547_v1 = vsel %vm6449_vm15, %v3545_v57, %v3546_v52  ;;  %v3421_v32 = vsel %vm6449_vm15, %v3419_v60, %v3420_v33  ;;  %v2541_v52 = vshll.u32 %v1740_v42, 16 }
 0x1d8   :  { %v3024_v38 = vpop.permute.xlu1 %3023  ;;  %3965 = vrot.lane.b32.xlu0 %v6966_v10, %s4983_s1  ;;  %v7072_v19 = vcombine.low %v3418_v21, %v3421_v32 }
 0x1d9   :  { %3100 = vst.msk [vmem:[#allocation3 + $0xa0] sm:$0xff] %vm3079_vm4, %v3024_v38 }
 0x1da   :  { %3999 = vrot.lane.b32.xlu1 %v6983_v37, %s4983_s1  ;;  %v2992_v43 = vpop.permute.xlu0 %2991 }
 0x1db   :  { %3084 = vst.msk [vmem:[#allocation3 + $0x20] sm:$0xff] %vm3079_vm4, %v2992_v43 }
 0x1dc   :  { %v3026_v29 = vpop.permute.xlu1 %3025  ;;  %3967 = vrot.lane.b32.xlu0 %v6995_v41, %s4983_s1 }
 0x1dd   :  { %3101 = vst.msk [vmem:[#allocation3 + $0xa8] sm:$0xff] %vm3079_vm4, %v3026_v29  ;;  %v3553_v29 = vrot.slane %v3207_v7, 5 }
 0x1de   :  { %2767 = vrot.lane.b32.xlu1 %v6927_v31, %s4978_s15  ;;  %v2994_v22 = vpop.permute.xlu0 %2993 }
 0x1df   :  { %3085 = vst.msk [vmem:[#allocation3 + $0x28] sm:$0xff] %vm3079_vm4, %v2994_v22  ;;  %v3153_v22 = vld [vmem:[#allocation2 + $0xa4] sm:$0x1] }
 0x1e0   :  { %v3720_v20 = vpop.permute.xlu1 %3719  ;;  %2765 = vrot.lane.b32.xlu0 %v6909_v62, %s4978_s15 }
 0x1e1   :  { %3796 = vst.msk [vmem:[#allocation3 + $0xa0] sm:$0xff] %vm3775_vm6, %v3720_v20 }
 0x1e2   :  { %2900 = vrot.lane.b32.xlu1 %v6927_v31, %s4979_s9  ;;  %v3688_v6 = vpop.permute.xlu0 %3687  ;;  %v2510_v31 = vsel %vm5942_vm12, %v2505_v44, %v2509_v9  ;;  %v4710_v9 = vrot.slane %v3205_v2, 9 }
 0x1e3   :  { %3780 = vst.msk [vmem:[#allocation3 + $0x20] sm:$0xff] %vm3775_vm6, %v3688_v6 }
 0x1e4   :  { %v3722_v58 = vpop.permute.xlu1 %3721  ;;  %2868 = vrot.lane.b32.xlu0 %v6242_v45, %s4979_s9  ;;  %v7033_v45 = vcombine.low %v2510_v31, %v2520_v35  ;;  %v3426_v31 = vrot.slane %v3424_v30, 4  ;;  %v3427_v35 = vrot.slane %v3153_v22, 5 }
 0x1e5   :  { %3797 = vst.msk [vmem:[#allocation3 + $0xa8] sm:$0xff] %vm3775_vm6, %v3722_v58  ;;  %v4692_v58 = vrot.slane %v3151_v16, 9 }
 0x1e6   :  { %2902 = vrot.lane.b32.xlu1 %v7015_v49, %s4979_s9  ;;  %v3690_v62 = vpop.permute.xlu0 %3689  ;;  %v3428_v40 = vsel %vm6449_vm15, %v3426_v31, %v3427_v35 }
 0x1e7   :  { %3781 = vst.msk [vmem:[#allocation3 + $0x28] sm:$0xff] %vm3775_vm6, %v3690_v62  ;;  %v3425_v34 = vsel %vm6449_vm15, %v4692_v58, %v3424_v30  ;;  %v3155_v58 = vld [vmem:[#allocation2 + $0xac] sm:$0xf] }
 0x1e8   :  { %v3855_v8 = vpop.permute.xlu1 %3854  ;;  %2870 = vrot.lane.b32.xlu0 %v6378_v3, %s4979_s9  ;;  %v7101_v33 = vcombine.low %v3425_v34, %v3428_v40  ;;  %v3431_v31 = vrot.slane %v3155_v58, 5  ;;  %v7153_v40 = vld [vmem:[#allocation2 + $0x190] sm:$0xf] }
 0x1e9   :  { %3931 = vst.msk [vmem:[#allocation3 + $0xa0] sm:$0xff] %vm3910_vm7, %v3855_v8  ;;  %v2524_v8 = vrot.slane %v2522_v47, 4 }
 0x1ea   :  { %3035 = vrot.lane.b32.xlu1 %v7015_v49, %s4980_s10  ;;  %v3823_v39 = vpop.permute.xlu0 %3822 }
 0x1eb   :  { %3915 = vst.msk [vmem:[#allocation3 + $0x20] sm:$0xff] %vm3910_vm7, %v3823_v39  ;;  %v2533_v39 = vrot.slane %v2531_v5, 5 }
 0x1ec   :  { %v3857_v51 = vpop.permute.xlu1 %3856  ;;  %3003 = vrot.lane.b32.xlu0 %v6378_v3, %s4980_s10  ;;  %v4709_v3 = vrot.slane %v3202_v48, 9 }
 0x1ed   :  { %3932 = vst.msk [vmem:[#allocation3 + $0xa8] sm:$0xff] %vm3910_vm7, %v3857_v51  ;;  %v2537_v51 = vrot.slane %v2535_v25, 4 }
 0x1ee   :  { %3037 = vrot.lane.b32.xlu1 %v7033_v45, %s4980_s10  ;;  %v3825_v17 = vpop.permute.xlu0 %3824  ;;  %v3544_v54 = vsel %vm6449_vm15, %v4709_v3, %v3543_v61  ;;  %v2528_v3 = vor.u32 %v2527_v4, %v2524_v8  ;;  %v3208_v8 = vld [vmem:[#allocation2 + $0x180] sm:$0xe]  ;;  %v3210_v4 = vld [vmem:[#allocation2 + $0x188] sm:$0x1] }
 0x1ef   :  { %3916 = vst.msk [vmem:[#allocation3 + $0x28] sm:$0xff] %vm3910_vm7, %v3825_v17  ;;  %v7058_v43 = vcombine.low %v3544_v54, %v3547_v1  ;;  %v1742_v17 = vld [vmem:[#allocation2 + $0x190] sm:$0xf]  ;;  %v2538_v57 = vor.u32 %v2537_v51, %v2533_v39  ;;  %v3560_v42 = vrot.slane %v3210_v4, 5 }
 0x1f0   :  { %v3990_v53 = vpop.permute.xlu1 %3989  ;;  %3005 = vrot.lane.b32.xlu0 %v6354_v14, %s4980_s10  ;;  %v2559_v23 = vshrl.u32 %v1742_v17, 16  ;;  %v2529_v54 = vrot.slane %v2528_v3, 4  ;;  %v7155_v3 = vld [vmem:[#allocation2 + $0xb8] sm:$0xf] }
 0x1f1   :  { %4066 = vst.msk [vmem:[#allocation3 + $0xa0] sm:$0xff] %vm4045_vm8, %v3990_v53  ;;  %v2539_v1 = vrot.slane %v2538_v57, 4 }
 0x1f2   :  { %3731 = vrot.lane.b32.xlu1 %v6952_v63, %s4981_s11  ;;  %v3958_v12 = vpop.permute.xlu0 %3957  ;;  %v3550_v63 = vrot.slane %v3206_v28, 5  ;;  %v2546_v28 = vshrl.u32 %v1741_v56, 16  ;;  %v2561_v55 = vrot.slane %v2559_v23, 4 }
 0x1f3   :  { %4050 = vst.msk [vmem:[#allocation3 + $0x20] sm:$0xff] %vm4045_vm8, %v3958_v12  ;;  %v2549_v12 = vshll.u32 %v1741_v56, 16 }
 0x1f4   :  { %v3992_v13 = vpop.permute.xlu1 %3991  ;;  %3699 = vrot.lane.b32.xlu0 %v6966_v10, %s4981_s11  ;;  %v3552_v26 = vrot.slane %v3550_v63, 4  ;;  %v2548_v7 = vrot.slane %v2546_v28, 4  ;;  %v1745_v28 = vld [vmem:[#allocation2 + $0x19c] sm:$0xf] }
 0x1f5   :  { %4067 = vst.msk [vmem:[#allocation3 + $0xa8] sm:$0xff] %vm4045_vm8, %v3992_v13  ;;  %v2555_v13 = vshll.u32 %v1742_v17, 16  ;;  %v2551_v0 = vrot.slane %v2549_v12, 5  ;;  %v3433_v17 = vrot.slane %v3431_v31, 4 }
 0x1f6   :  { %3733 = vrot.lane.b32.xlu1 %v6983_v37, %s4981_s11  ;;  %v3960_v38 = vpop.permute.xlu0 %3959  ;;  %v3554_v62 = vsel %vm6449_vm15, %v3552_v26, %v3553_v29 }
 0x1f7   :  { %4051 = vst.msk [vmem:[#allocation3 + $0x28] sm:$0xff] %vm4045_vm8, %v3960_v38  ;;  %v2557_v38 = vrot.slane %v2555_v13, 5 }
 0x1f8   :  { %v2760_v10 = vpop.permute.xlu1 %2759  ;;  %v4104_v11 = vld [vmem:[#allocation3 + $0xa0] sm:$0xff]  ;;  %3701 = vrot.lane.b32.xlu0 %v6995_v41, %s4981_s11 }
 0x1f9   :  { %2833 = vst.msk [vmem:[#allocation3 + $0xb8] sm:$0xff] %vm2809_vm2, %v2760_v10  ;;  %4868 = vmatprep.mubr.msk.bf16.mxu1 %vm4137_vm9, %v4104_v11  ;;  %v1743_v10 = vld [vmem:[#allocation2 + $0x194] sm:$0x1]  ;;  %v2534_v11 = vsel %vm5942_vm12, %v2529_v54, %v2533_v39  ;;  %v2562_v26 = vor.u32 %v2561_v55, %v2557_v38  ;;  %v3154_v39 = vld [vmem:[#allocation2 + $0xa8] sm:$0xe] }
 0x1fa   :  { %3866 = vrot.lane.b32.xlu1 %v6983_v37, %s4982_s14  ;;  %v2758_v20 = vpop.permute.xlu0 %2757  ;;  %v4088_v6 = vld [vmem:[#allocation3 + $0x20] sm:$0xff]  ;;  %v3551_v37 = vsel %vm6449_vm15, %v4710_v9, %v3550_v63  ;;  %v2543_v63 = vrot.slane %v2541_v52, 5  ;;  %v2552_v9 = vor.u32 %v2551_v0, %v2548_v7  ;;  %v2565_v29 = vshll.u32 %v1743_v10, 16  ;;  %v3211_v54 = vld [vmem:[#allocation2 + $0x18c] sm:$0xe] }
 0x1fb   :  { %2832 = vst.msk [vmem:[#allocation3 + $0xb0] sm:$0xff] %vm2809_vm2, %v2758_v20  ;;  %4836 = vmatprep.mubr.msk.bf16.mxu0 %vm4137_vm9, %v4088_v6  ;;  %v7089_v53 = vcombine.low %v3551_v37, %v3554_v62  ;;  %v2563_v59 = vrot.slane %v2562_v26, 4  ;;  %v3438_v52 = vrot.slane %v7155_v3, 5  ;;  %v3159_v0 = vld [vmem:[#allocation2 + $0xbc] sm:$0x1]  ;;  %v2579_v10 = vshll.u32 %v1745_v28, 16 }
 0x1fc   :  { %v2893_v44 = vpop.permute.xlu1 %2892  ;;  %v4105_v50 = vld [vmem:[#allocation3 + $0xa8] sm:$0xff]  ;;  %3834 = vrot.lane.b32.xlu0 %v6995_v41, %s4982_s14  ;;  %v2544_v32 = vsel %vm5942_vm12, %v2539_v1, %v2543_v63  ;;  %v2553_v47 = vrot.slane %v2552_v9, 4  ;;  %v2567_v5 = vrot.slane %v2565_v29, 5  ;;  %v3213_v1 = vld [vmem:[#allocation2 + $0x194] sm:$0x1]  ;;  %v4712_v26 = vrot.slane %v3211_v54, 9 }
 0x1fd   :  { %2967 = vst.msk [vmem:[#allocation3 + $0xb0] sm:$0xff] %vm2944_vm3, %v2893_v44  ;;  %4869 = vmatmul.mubr.msk.bf16.gmra.mrb[8].mxu1 %vm4137_vm9, %v4105_v50  ;;  %v7121_v30 = vcombine.low %v2534_v11, %v2544_v32  ;;  %v3209_v50 = vld [vmem:[#allocation2 + $0x184] sm:$0xf]  ;;  %v3157_v63 = vld [vmem:[#allocation2 + $0xb4] sm:$0xe]  ;;  %v2583_v11 = vshrl.u32 %v1745_v28, 16 }
 0x1fe   :  { %3868 = vrot.lane.b32.xlu1 %v7058_v43, %s4982_s14  ;;  %v2861_v41 = vpop.permute.xlu0 %2860  ;;  %v4089_v61 = vld [vmem:[#allocation3 + $0x28] sm:$0xff]  ;;  %v2568_v20 = vsel %vm5942_vm12, %v2563_v59, %v2567_v5  ;;  %v3557_v62 = vrot.slane %v3209_v50, 5  ;;  %v4694_v59 = vrot.slane %v3157_v63, 9  ;;  %v3440_v5 = vrot.slane %v3438_v52, 4 }
 0x1ff   :  { %2951 = vst.msk [vmem:[#allocation3 + $0x30] sm:$0xff] %vm2944_vm3, %v2861_v41  ;;  %4837 = vmatmul.mubr.msk.bf16.gmra.mrb[8].mxu0 %vm4137_vm9, %v4089_v61  ;;  %v3156_v41 = vld [vmem:[#allocation2 + $0xb0] sm:$0x1] }
 0x200   :  { %v2895_v48 = vpop.permute.xlu1 %2894  ;;  %3836 = vrot.lane.b32.xlu0 %v7072_v19, %s4982_s14  ;;  %v3559_v61 = vrot.slane %v3557_v62, 4  ;;  %v3434_v34 = vrot.slane %v3156_v41, 5 }
 0x201   :  { %2968 = vst.msk [vmem:[#allocation3 + $0xb8] sm:$0xff] %vm2944_vm3, %v2895_v48  ;;  %v4693_v48 = vrot.slane %v3154_v39, 9  ;;  %v3439_v39 = vsel %vm6449_vm15, %v4694_v59, %v3438_v52 }
 0x202   :  { %4001 = vrot.lane.b32.xlu1 %v7058_v43, %s4983_s1  ;;  %v2863_v15 = vpop.permute.xlu0 %2862  ;;  %v3561_v23 = vsel %vm6449_vm15, %v3559_v61, %v3560_v42 }
 0x203   :  { %2952 = vst.msk [vmem:[#allocation3 + $0x38] sm:$0xff] %vm2944_vm3, %v2863_v15  ;;  %v1744_v15 = vld [vmem:[#allocation2 + $0x198] sm:$0xf] }
 0x204   :  { %v3028_v60 = vpop.permute.xlu1 %3027  ;;  %3969 = vrot.lane.b32.xlu0 %v7072_v19, %s4983_s1  ;;  %v2570_v55 = vshrl.u32 %v1744_v15, 16 }
 0x205   :  { %3102 = vst.msk [vmem:[#allocation3 + $0xb0] sm:$0xff] %vm3079_vm4, %v3028_v60  ;;  %v3435_v60 = vsel %vm6449_vm15, %v3433_v17, %v3434_v34 }
 0x206   :  { %4003 = vrot.lane.b32.xlu1 %v7089_v53, %s4983_s1  ;;  %v2996_v2 = vpop.permute.xlu0 %2995  ;;  %v2572_v50 = vrot.slane %v2570_v55, 4 }
 0x207   :  { %3086 = vst.msk [vmem:[#allocation3 + $0x30] sm:$0xff] %vm3079_vm4, %v2996_v2 }
 0x208   :  { %v3030_v36 = vpop.permute.xlu1 %3029  ;;  %3971 = vrot.lane.b32.xlu0 %v7101_v33, %s4983_s1 }
 0x209   :  { %3103 = vst.msk [vmem:[#allocation3 + $0xb8] sm:$0xff] %vm3079_vm4, %v3030_v36  ;;  %v2573_v36 = vshll.u32 %v1744_v15, 16 }
 0x20a   :  { %2771 = vrot.lane.b32.xlu1 %v7033_v45, %s4978_s15  ;;  %v2998_v21 = vpop.permute.xlu0 %2997 }
 0x20b   :  { %3087 = vst.msk [vmem:[#allocation3 + $0x38] sm:$0xff] %vm3079_vm4, %v2998_v21  ;;  %v1691_v21 = vld [vmem:[#allocation2 + $0xc4] sm:$0xf]  ;;  %v2575_v58 = vrot.slane %v2573_v36, 5 }
 0x20c   :  { %v3724_v16 = vpop.permute.xlu1 %3723  ;;  %2769 = vrot.lane.b32.xlu0 %v7015_v49, %s4978_s15 }
 0x20d   :  { %3798 = vst.msk [vmem:[#allocation3 + $0xb0] sm:$0xff] %vm3775_vm6, %v3724_v16  ;;  %v2576_v34 = vor.u32 %v2575_v58, %v2572_v50 }
 0x20e   :  { %2904 = vrot.lane.b32.xlu1 %v7033_v45, %s4979_s9  ;;  %v3692_v22 = vpop.permute.xlu0 %3691  ;;  %v2558_v45 = vsel %vm5942_vm12, %v2553_v47, %v2557_v38  ;;  %v1690_v38 = vld [vmem:[#allocation2 + $0xc0] sm:$0xf]  ;;  %v3567_v47 = vrot.slane %v3213_v1, 5 }
 0x20f   :  { %3782 = vst.msk [vmem:[#allocation3 + $0x30] sm:$0xff] %vm3775_vm6, %v3692_v22 }
 0x210   :  { %v3726_v25 = vpop.permute.xlu1 %3725  ;;  %2872 = vrot.lane.b32.xlu0 %v6354_v14, %s4979_s9  ;;  %v7139_v14 = vcombine.low %v2558_v45, %v2568_v20  ;;  %v2138_v20 = vshrl.u32 %v1690_v38, 16 }
 0x211   :  { %3799 = vst.msk [vmem:[#allocation3 + $0xb8] sm:$0xff] %vm3775_vm6, %v3726_v25  ;;  %v3441_v25 = vrot.slane %v3159_v0, 5 }
 0x212   :  { %2906 = vrot.lane.b32.xlu1 %v7121_v30, %s4979_s9  ;;  %v3694_v49 = vpop.permute.xlu0 %3693 }
 0x213   :  { %3783 = vst.msk [vmem:[#allocation3 + $0x38] sm:$0xff] %vm3775_vm6, %v3694_v49  ;;  %v3442_v17 = vsel %vm6449_vm15, %v3440_v5, %v3441_v25  ;;  %v1749_v5 = vld [vmem:[#allocation2 + $0x1ac] sm:$0x1] }
 0x214   :  { %v3859_v6 = vpop.permute.xlu1 %3858  ;;  %2874 = vrot.lane.b32.xlu0 %v6404_v27, %s4979_s9  ;;  %v7215_v54 = vcombine.low %v3439_v39, %v3442_v17 }
 0x215   :  { %3933 = vst.msk [vmem:[#allocation3 + $0xb0] sm:$0xff] %vm3910_vm7, %v3859_v6  ;;  %v2147_v6 = vshll.u32 %v1691_v21, 16 }
 0x216   :  { %3039 = vrot.lane.b32.xlu1 %v7121_v30, %s4980_s10  ;;  %v3827_v44 = vpop.permute.xlu0 %3826 }
 0x217   :  { %3917 = vst.msk [vmem:[#allocation3 + $0x30] sm:$0xff] %vm3910_vm7, %v3827_v44  ;;  %v2151_v44 = vshrl.u32 %v1691_v21, 16  ;;  %v7202_v42 = vrot.slane %v2147_v6, 5 }
 0x218   :  { %v3861_v37 = vpop.permute.xlu1 %3860  ;;  %3007 = vrot.lane.b32.xlu0 %v6404_v27, %s4980_s10  ;;  %v4711_v27 = vrot.slane %v3208_v8, 9 }
 0x219   :  { %3934 = vst.msk [vmem:[#allocation3 + $0xb8] sm:$0xff] %vm3910_vm7, %v3861_v37  ;;  %v7190_v37 = vrot.slane %v2579_v10, 5 }
 0x21a   :  { %3041 = vrot.lane.b32.xlu1 %v7139_v14, %s4980_s10  ;;  %v3829_v35 = vpop.permute.xlu0 %3828  ;;  %v3558_v13 = vsel %vm6449_vm15, %v4711_v27, %v3557_v62  ;;  %v2585_v62 = vrot.slane %v2583_v11, 4  ;;  %v2140_v27 = vrot.slane %v2138_v20, 4 }
 0x21b   :  { %3918 = vst.msk [vmem:[#allocation3 + $0x38] sm:$0xff] %vm3910_vm7, %v3829_v35  ;;  %v7180_v32 = vcombine.low %v3558_v13, %v3561_v23  ;;  %v1693_v23 = vld [vmem:[#allocation2 + $0xcc] sm:$0xf] }
 0x21c   :  { %v3994_v51 = vpop.permute.xlu1 %3993  ;;  %3009 = vrot.lane.b32.xlu0 %v6380_v18, %s4980_s10  ;;  %v2162_v55 = vshrl.u32 %v1693_v23, 16  ;;  %v2165_v36 = vshll.u32 %v1693_v23, 16 }
 0x21d   :  { %4068 = vst.msk [vmem:[#allocation3 + $0xb0] sm:$0xff] %vm4045_vm8, %v3994_v51  ;;  %v1747_v51 = vld [vmem:[#allocation2 + $0x1a4] sm:$0xf] }
 0x21e   :  { %3735 = vrot.lane.b32.xlu1 %v7058_v43, %s4981_s11  ;;  %v3962_v56 = vpop.permute.xlu0 %3961  ;;  %v3564_v43 = vrot.slane %v7153_v40, 5  ;;  %v2586_v40 = vor.u32 %v2585_v62, %v7190_v37  ;;  %v2594_v52 = vshrl.u32 %v1747_v51, 16  ;;  %v2597_v15 = vshll.u32 %v1747_v51, 16 }
 0x21f   :  { %4052 = vst.msk [vmem:[#allocation3 + $0x30] sm:$0xff] %vm4045_vm8, %v3962_v56  ;;  %v1748_v56 = vld [vmem:[#allocation2 + $0x1a8] sm:$0xf]  ;;  %v2167_v6 = vrot.slane %v2165_v36, 5 }
 0x220   :  { %v3996_v57 = vpop.permute.xlu1 %3995  ;;  %3703 = vrot.lane.b32.xlu0 %v7072_v19, %s4981_s11  ;;  %v3432_v19 = vsel %vm6449_vm15, %v4693_v48, %v3431_v31  ;;  %v3566_v29 = vrot.slane %v3564_v43, 4  ;;  %v1746_v31 = vld [vmem:[#allocation2 + $0x1a0] sm:$0x1]  ;;  %v3565_v4 = vsel %vm6449_vm15, %v4712_v26, %v3564_v43  ;;  %v2153_v48 = vrot.slane %v2151_v44, 4  ;;  %v1692_v43 = vld [vmem:[#allocation2 + $0xc8] sm:$0x1] }
 0x221   :  { %4069 = vst.msk [vmem:[#allocation3 + $0xb8] sm:$0xff] %vm4045_vm8, %v3996_v57  ;;  %v7182_v9 = vcombine.low %v3432_v19, %v3435_v60  ;;  %v2589_v3 = vshll.u32 %v1746_v31, 16  ;;  %v2607_v13 = vshrl.u32 %v1748_v56, 16  ;;  %v1694_v19 = vld [vmem:[#allocation2 + $0xd0] sm:$0xf]  ;;  %v2596_v26 = vrot.slane %v2594_v52, 4 }
 0x222   :  { %3737 = vrot.lane.b32.xlu1 %v7089_v53, %s4981_s11  ;;  %v3964_v12 = vpop.permute.xlu0 %3963  ;;  %v2154_v63 = vor.u32 %v2153_v48, %v7202_v42  ;;  %v2171_v10 = vshll.u32 %v1694_v19, 16  ;;  %v2175_v11 = vshrl.u32 %v1694_v19, 16  ;;  %v3215_v19 = vld [vmem:[#allocation2 + $0x19c] sm:$0xf] }
 0x223   :  { %4053 = vst.msk [vmem:[#allocation3 + $0x38] sm:$0xff] %vm4045_vm8, %v3964_v12  ;;  %v2603_v12 = vshll.u32 %v1748_v56, 16  ;;  %v2591_v0 = vrot.slane %v2589_v3, 5 }
 0x224   :  { %v2764_v2 = vpop.permute.xlu1 %2763  ;;  %v4106_v7 = vld [vmem:[#allocation3 + $0xb0] sm:$0xff]  ;;  %3705 = vrot.lane.b32.xlu0 %v7101_v33, %s4981_s11  ;;  %v2173_v44 = vrot.slane %v2171_v10, 5  ;;  %v2177_v50 = vrot.slane %v2175_v11, 4 }
 0x225   :  { %2835 = vst.msk [vmem:[#allocation3 + $0xc8] sm:$0xff] %vm2809_vm2, %v2764_v2  ;;  %4872 = vmatprep.mubr.msk.bf16.mxu1 %vm4137_vm9, %v4106_v7  ;;  %v2577_v2 = vrot.slane %v2576_v34, 4  ;;  %v2587_v7 = vrot.slane %v2586_v40, 4 }
 0x226   :  { %3870 = vrot.lane.b32.xlu1 %v7089_v53, %s4982_s14  ;;  %v2762_v16 = vpop.permute.xlu0 %2761  ;;  %v4090_v22 = vld [vmem:[#allocation3 + $0x30] sm:$0xff]  ;;  %v2141_v53 = vshll.u32 %v1690_v38, 16  ;;  %v2157_v38 = vshll.u32 %v1692_v43, 16 }
 0x227   :  { %2834 = vst.msk [vmem:[#allocation3 + $0xc0] sm:$0xff] %vm2809_vm2, %v2762_v16  ;;  %4840 = vmatprep.mubr.msk.bf16.mxu0 %vm4137_vm9, %v4090_v22  ;;  %v2605_v16 = vrot.slane %v2603_v12, 5  ;;  %v2609_v22 = vrot.slane %v2607_v13, 4  ;;  %v2582_v25 = vsel %vm5942_vm12, %v2577_v2, %v7190_v37  ;;  %v3571_v2 = vrot.slane %v3215_v19, 5 }
 0x228   :  { %v2897_v49 = vpop.permute.xlu1 %2896  ;;  %v4107_v45 = vld [vmem:[#allocation3 + $0xb8] sm:$0xff]  ;;  %3838 = vrot.lane.b32.xlu0 %v7101_v33, %s4982_s14  ;;  %v3568_v33 = vsel %vm6449_vm15, %v3566_v29, %v3567_v47  ;;  %v2143_v61 = vrot.slane %v2141_v53, 5  ;;  %v2599_v29 = vrot.slane %v2597_v15, 5  ;;  %v2159_v20 = vrot.slane %v2157_v38, 5 }
 0x229   :  { %2969 = vst.msk [vmem:[#allocation3 + $0xc0] sm:$0xff] %vm2944_vm3, %v2897_v49  ;;  %4873 = vmatmul.mubr.msk.bf16.gmra.mrb[12].mxu1 %vm4137_vm9, %v4107_v45  ;;  %v7212_v57 = vcombine.low %v3565_v4, %v3568_v33  ;;  %v2592_v49 = vsel %vm5942_vm12, %v2587_v7, %v2591_v0  ;;  %v2155_v45 = vrot.slane %v2154_v63, 4  ;;  %v2164_v53 = vrot.slane %v2162_v55, 4  ;;  %v3214_v63 = vld [vmem:[#allocation2 + $0x198] sm:$0xe] }
 0x22a   :  { %3872 = vrot.lane.b32.xlu1 %v7180_v32, %s4982_s14  ;;  %v2865_v35 = vpop.permute.xlu0 %2864  ;;  %v4091_v8 = vld [vmem:[#allocation3 + $0x38] sm:$0xff]  ;;  %v2144_v1 = vor.u32 %v2143_v61, %v2140_v27  ;;  %v2600_v62 = vor.u32 %v2599_v29, %v2596_v26  ;;  %v2610_v31 = vor.u32 %v2609_v22, %v2605_v16  ;;  %v4676_v4 = vcombine.low %v2582_v25, %v2592_v49  ;;  %v3161_v7 = vld [vmem:[#allocation2 + $0xc4] sm:$0xf]  ;;  %v3216_v0 = vld [vmem:[#allocation2 + $0x1a0] sm:$0x1] }
 0x22b   :  { %2953 = vst.msk [vmem:[#allocation3 + $0x40] sm:$0xff] %vm2944_vm3, %v2865_v35  ;;  %4841 = vmatmul.mubr.msk.bf16.gmra.mrb[12].mxu0 %vm4137_vm9, %v4091_v8  ;;  %v2613_v35 = vshll.u32 %v1749_v5, 16  ;;  %v1695_v8 = vld [vmem:[#allocation2 + $0xd4] sm:$0x1]  ;;  %v2160_v39 = vsel %vm5942_vm12, %v2155_v45, %v2159_v20  ;;  %v2168_v51 = vor.u32 %v2167_v6, %v2164_v53  ;;  %v4713_v38 = vrot.slane %v3214_v63, 9 }
 0x22c   :  { %v2899_v41 = vpop.permute.xlu1 %2898  ;;  %3840 = vrot.lane.b32.xlu0 %v7182_v9, %s4982_s14  ;;  %v2145_v59 = vrot.slane %v2144_v1, 4  ;;  %v2181_v27 = vshll.u32 %v1695_v8, 16  ;;  %v2601_v48 = vrot.slane %v2600_v62, 4  ;;  %v2611_v56 = vrot.slane %v2610_v31, 4  ;;  %v3162_v26 = vld [vmem:[#allocation2 + $0xc8] sm:$0x1] }
 0x22d   :  { %2970 = vst.msk [vmem:[#allocation3 + $0xc8] sm:$0xff] %vm2944_vm3, %v2899_v41  ;;  %v2178_v41 = vor.u32 %v2177_v50, %v2173_v44  ;;  %v3445_v55 = vrot.slane %v3161_v7, 5  ;;  %v3573_v10 = vrot.slane %v3571_v2, 4  ;;  %v3574_v11 = vrot.slane %v3216_v0, 5  ;;  %v3164_v45 = vld [vmem:[#allocation2 + $0xd0] sm:$0xf] }
 0x22e   :  { %4005 = vrot.lane.b32.xlu1 %v7180_v32, %s4983_s1  ;;  %v2867_v28 = vpop.permute.xlu0 %2866  ;;  %v2150_v33 = vsel %vm5942_vm12, %v2145_v59, %v7202_v42  ;;  %v2183_v40 = vrot.slane %v2181_v27, 5  ;;  %v2606_v43 = vsel %vm5942_vm12, %v2601_v48, %v2605_v16  ;;  %v3218_v16 = vld [vmem:[#allocation2 + $0x1a8] sm:$0xf]  ;;  %v3572_v5 = vsel %vm6449_vm15, %v4713_v38, %v3571_v2  ;;  %v3217_v53 = vld [vmem:[#allocation2 + $0x1a4] sm:$0xe] }
 0x22f   :  { %2954 = vst.msk [vmem:[#allocation3 + $0x48] sm:$0xff] %vm2944_vm3, %v2867_v28  ;;  %v4675_v42 = vcombine.low %v2150_v33, %v2160_v39  ;;  %v2179_v34 = vrot.slane %v2178_v41, 4  ;;  %v3447_v22 = vrot.slane %v3445_v55, 4  ;;  %v3575_v25 = vsel %vm6449_vm15, %v3573_v10, %v3574_v11  ;;  %v3219_v6 = vld [vmem:[#allocation2 + $0x1ac] sm:$0x1] }
 0x230   :  { %v3032_v60 = vpop.permute.xlu1 %3031  ;;  %3973 = vrot.lane.b32.xlu0 %v7182_v9, %s4983_s1  ;;  %v3578_v49 = vrot.slane %v3218_v16, 5  ;;  %v3163_v62 = vld [vmem:[#allocation2 + $0xcc] sm:$0xe]  ;;  %v3452_v31 = vrot.slane %v3164_v45, 5  ;;  %v3581_v33 = vrot.slane %v3219_v6, 5 }
 0x231   :  { %3104 = vst.msk [vmem:[#allocation3 + $0xc0] sm:$0xff] %vm3079_vm4, %v3032_v60  ;;  %v2184_v12 = vsel %vm5942_vm12, %v2179_v34, %v2183_v40  ;;  %v3165_v39 = vld [vmem:[#allocation2 + $0xd4] sm:$0x1]  ;;  %v4696_v27 = vrot.slane %v3163_v62, 9  ;;  %v7334_v0 = vld [vmem:[%s7472_s2] ss:$0 sm:$0xff] }
 0x232   :  { %4007 = vrot.lane.b32.xlu1 %v7212_v57, %s4983_s1  ;;  %v3000_v21 = vpop.permute.xlu0 %2999  ;;  %v3455_v48 = vrot.slane %v3165_v39, 5  ;;  %s4984_s2 = smov [#allocation4]  }
 0x233   :  { %3088 = vst.msk [vmem:[#allocation3 + $0x40] sm:$0xff] %vm3079_vm4, %v3000_v21  ;;  %v3160_v21 = vld [vmem:[#allocation2 + $0xc0] sm:$0xe]  ;;  %v3453_v34 = vsel %vm6449_vm15, %v4696_v27, %v3452_v31  ;;  %s4596_s22 = sshll.u32 %s4984_s2, 4  ;;  %s4597_s22 = int_to_ptr.vmem [resolvable:$true] %s4596_s22 }
 0x234   :  { %v3034_v47 = vpop.permute.xlu1 %3033  ;;  %3975 = vrot.lane.b32.xlu0 %v7215_v54, %s4983_s1  ;;  %s4951_s23 = scalar_lea.vmem %s4597_s22, 8192  ;;  %p4956_p1 = scmp.lt.s32.totalorder %s4597_s22, %s4597_s22 }
 0x235   :  { %3105 = vst.msk [vmem:[#allocation3 + $0xc8] sm:$0xff] %vm3079_vm4, %v3034_v47  ;;  %v3448_v47 = vrot.slane %v3162_v26, 5  ;;  %p4952_p0 = scmp.ne.s32.totalorder %s4597_s22, %s4951_s23  ;;  %p4957_p2 = scmp.lt.s32.totalorder %s4951_s23, %s4951_s23 }
 0x236   :  { %2775 = vrot.lane.b32.xlu1 %v7139_v14, %s4978_s15  ;;  %v3002_v58 = vpop.permute.xlu0 %3001 }
 0x237   :  { %3089 = vst.msk [vmem:[#allocation3 + $0x48] sm:$0xff] %vm3079_vm4, %v3002_v58  ;;  %v3449_v58 = vsel %vm6449_vm15, %v3447_v22, %v3448_v47  ;;  %p4958_p3 = por %p4957_p2, %p4956_p1 }
 0x238   :  { %v3728_v37 = vpop.permute.xlu1 %3727  ;;  %2773 = vrot.lane.b32.xlu0 %v7121_v30, %s4978_s15  ;;  %v2615_v30 = vrot.slane %v2613_v35, 5 }
 0x239   :  { %3800 = vst.msk [vmem:[#allocation3 + $0xc0] sm:$0xff] %vm3775_vm6, %v3728_v37  ;;  %v4714_v37 = vrot.slane %v3217_v53, 9  ;;  %p4959_p4 = pnand %p4958_p3, %p4952_p0 }
 0x23a   :  { %2908 = vrot.lane.b32.xlu1 %v7139_v14, %s4979_s9  ;;  %v3696_v61 = vpop.permute.xlu0 %3695  ;;  %v2169_v14 = vrot.slane %v2168_v51, 4  ;;  %v2616_v52 = vsel %vm5942_vm12, %v2611_v56, %v2615_v30 }
 0x23b   :  { %3784 = vst.msk [vmem:[#allocation3 + $0x40] sm:$0xff] %vm3775_vm6, %v3696_v61  ;;  %v3454_v61 = vrot.slane %v3452_v31, 4 }
 0x23c   :  { %v3730_v17 = vpop.permute.xlu1 %3729  ;;  %2876 = vrot.lane.b32.xlu0 %v6380_v18, %s4979_s9  ;;  %v4678_v18 = vcombine.low %v2606_v43, %v2616_v52  ;;  %v2174_v28 = vsel %vm5942_vm12, %v2169_v14, %v2173_v44  ;;  %v4748_v44 = vcombine.low %v3572_v5, %v3575_v25 }
 0x23d   :  { %3801 = vst.msk [vmem:[#allocation3 + $0xc8] sm:$0xff] %vm3775_vm6, %v3730_v17  ;;  %v4677_v60 = vcombine.low %v2174_v28, %v2184_v12  ;;  %v3579_v17 = vsel %vm6449_vm15, %v4714_v37, %v3578_v49  ;;  %v3456_v40 = vsel %vm6449_vm15, %v3454_v61, %v3455_v48 }
 0x23e   :  { %2910 = vrot.lane.b32.xlu1 %v4676_v4, %s4979_s9  ;;  %v3698_v3 = vpop.permute.xlu0 %3697  ;;  %v4749_v52 = vcombine.low %v3453_v34, %v3456_v40 }
 0x23f   :  { %3785 = vst.msk [vmem:[#allocation3 + $0x48] sm:$0xff] %vm3775_vm6, %v3698_v3 }
 0x240   :  { %v3863_v15 = vpop.permute.xlu1 %3862  ;;  %2878 = vrot.lane.b32.xlu0 %v4675_v42, %s4979_s9 }
 0x241   :  { %3935 = vst.msk [vmem:[#allocation3 + $0xc0] sm:$0xff] %vm3910_vm7, %v3863_v15 }
 0x242   :  { %3043 = vrot.lane.b32.xlu1 %v4676_v4, %s4980_s10  ;;  %v3831_v13 = vpop.permute.xlu0 %3830  ;;  %v3580_v4 = vrot.slane %v3578_v49, 4 }
 0x243   :  { %3919 = vst.msk [vmem:[#allocation3 + $0x40] sm:$0xff] %vm3910_vm7, %v3831_v13 }
 0x244   :  { %v3865_v23 = vpop.permute.xlu1 %3864  ;;  %3011 = vrot.lane.b32.xlu0 %v4675_v42, %s4980_s10  ;;  %v3582_v42 = vsel %vm6449_vm15, %v3580_v4, %v3581_v33 }
 0x245   :  { %3936 = vst.msk [vmem:[#allocation3 + $0xc8] sm:$0xff] %vm3910_vm7, %v3865_v23  ;;  %v4750_v14 = vcombine.low %v3579_v17, %v3582_v42 }
 0x246   :  { %3045 = vrot.lane.b32.xlu1 %v4678_v18, %s4980_s10  ;;  %v3833_v1 = vpop.permute.xlu0 %3832 }
 0x247   :  { %3920 = vst.msk [vmem:[#allocation3 + $0x48] sm:$0xff] %vm3910_vm7, %v3833_v1 }
 0x248   :  { %v3998_v24 = vpop.permute.xlu1 %3997  ;;  %3013 = vrot.lane.b32.xlu0 %v4677_v60, %s4980_s10 }
 0x249   :  { %4070 = vst.msk [vmem:[#allocation3 + $0xc0] sm:$0xff] %vm4045_vm8, %v3998_v24 }
 0x24a   :  { %3739 = vrot.lane.b32.xlu1 %v7180_v32, %s4981_s11  ;;  %v3966_v36 = vpop.permute.xlu0 %3965  ;;  %v4695_v32 = vrot.slane %v3160_v21, 9 }
 0x24b   :  { %4054 = vst.msk [vmem:[#allocation3 + $0x40] sm:$0xff] %vm4045_vm8, %v3966_v36 }
 0x24c   :  { %v4000_v29 = vpop.permute.xlu1 %3999  ;;  %3707 = vrot.lane.b32.xlu0 %v7182_v9, %s4981_s11  ;;  %v3446_v50 = vsel %vm6449_vm15, %v4695_v32, %v3445_v55 }
 0x24d   :  { %4071 = vst.msk [vmem:[#allocation3 + $0xc8] sm:$0xff] %vm4045_vm8, %v4000_v29  ;;  %v4747_v41 = vcombine.low %v3446_v50, %v3449_v58 }
 0x24e   :  { %3741 = vrot.lane.b32.xlu1 %v7212_v57, %s4981_s11  ;;  %v3968_v59 = vpop.permute.xlu0 %3967 }
 0x24f   :  { %4055 = vst.msk [vmem:[#allocation3 + $0x48] sm:$0xff] %vm4045_vm8, %v3968_v59 }
 0x250   :  { %v2768_v9 = vpop.permute.xlu1 %2767  ;;  %v4108_v20 = vld [vmem:[#allocation3 + $0xc0] sm:$0xff]  ;;  %3709 = vrot.lane.b32.xlu0 %v7215_v54, %s4981_s11 }
 0x251   :  { %2837 = vst.msk [vmem:[#allocation3 + $0xd8] sm:$0xff] %vm2809_vm2, %v2768_v9  ;;  %4876 = vmatprep.mubr.msk.bf16.mxu1 %vm4137_vm9, %v4108_v20 }
 0x252   :  { %3874 = vrot.lane.b32.xlu1 %v7212_v57, %s4982_s14  ;;  %v2766_v35 = vpop.permute.xlu0 %2765  ;;  %v4092_v8 = vld [vmem:[#allocation3 + $0x40] sm:$0xff] }
 0x253   :  { %2836 = vst.msk [vmem:[#allocation3 + $0xd0] sm:$0xff] %vm2809_vm2, %v2766_v35  ;;  %4844 = vmatprep.mubr.msk.bf16.mxu0 %vm4137_vm9, %v4092_v8 }
 0x254   :  { %v2901_v57 = vpop.permute.xlu1 %2900  ;;  %v4109_v51 = vld [vmem:[#allocation3 + $0xc8] sm:$0xff]  ;;  %3842 = vrot.lane.b32.xlu0 %v7215_v54, %s4982_s14 }
 0x255   :  { %2971 = vst.msk [vmem:[#allocation3 + $0xd0] sm:$0xff] %vm2944_vm3, %v2901_v57  ;;  %4877 = vmatmul.mubr.msk.bf16.gmra.mrb[16].mxu1 %vm4137_vm9, %v4109_v51 }
 0x256   :  { %3876 = vrot.lane.b32.xlu1 %v4748_v44, %s4982_s14  ;;  %v2869_v56 = vpop.permute.xlu0 %2868  ;;  %v4093_v30 = vld [vmem:[#allocation3 + $0x48] sm:$0xff] }
 0x257   :  { %2955 = vst.msk [vmem:[#allocation3 + $0x50] sm:$0xff] %vm2944_vm3, %v2869_v56  ;;  %4845 = vmatmul.mubr.msk.bf16.gmra.mrb[16].mxu0 %vm4137_vm9, %v4093_v30 }
 0x258   :  { %v2903_v54 = vpop.permute.xlu1 %2902  ;;  %3844 = vrot.lane.b32.xlu0 %v4747_v41, %s4982_s14 }
 0x259   :  { %2972 = vst.msk [vmem:[#allocation3 + $0xd8] sm:$0xff] %vm2944_vm3, %v2903_v54 }
 0x25a   :  { %4009 = vrot.lane.b32.xlu1 %v4748_v44, %s4983_s1  ;;  %v2871_v3 = vpop.permute.xlu0 %2870 }
 0x25b   :  { %2956 = vst.msk [vmem:[#allocation3 + $0x58] sm:$0xff] %vm2944_vm3, %v2871_v3 }
 0x25c   :  { %v3036_v43 = vpop.permute.xlu1 %3035  ;;  %3977 = vrot.lane.b32.xlu0 %v4747_v41, %s4983_s1 }
 0x25d   :  { %3106 = vst.msk [vmem:[#allocation3 + $0xd0] sm:$0xff] %vm3079_vm4, %v3036_v43 }
 0x25e   :  { %4011 = vrot.lane.b32.xlu1 %v4750_v14, %s4983_s1  ;;  %v3004_v15 = vpop.permute.xlu0 %3003 }
 0x25f   :  { %3090 = vst.msk [vmem:[#allocation3 + $0x50] sm:$0xff] %vm3079_vm4, %v3004_v15 }
 0x260   :  { %v3038_v18 = vpop.permute.xlu1 %3037  ;;  %3979 = vrot.lane.b32.xlu0 %v4749_v52, %s4983_s1 }
 0x261   :  { %3107 = vst.msk [vmem:[#allocation3 + $0xd8] sm:$0xff] %vm3079_vm4, %v3038_v18 }
 0x262   :  { %v3006_v46 = vpop.permute.xlu0 %3005 }
 0x263   :  { %3091 = vst.msk [vmem:[#allocation3 + $0x58] sm:$0xff] %vm3079_vm4, %v3006_v46 }
 0x264   :  { %v3732_v28 = vpop.permute.xlu1 %3731 }
 0x265   :  { %3802 = vst.msk [vmem:[#allocation3 + $0xd0] sm:$0xff] %vm3775_vm6, %v3732_v28 }
 0x266   :  { %v3700_v12 = vpop.permute.xlu0 %3699 }
 0x267   :  { %3786 = vst.msk [vmem:[#allocation3 + $0x50] sm:$0xff] %vm3775_vm6, %v3700_v12 }
 0x268   :  { %v3734_v13 = vpop.permute.xlu1 %3733 }
 0x269   :  { %3803 = vst.msk [vmem:[#allocation3 + $0xd8] sm:$0xff] %vm3775_vm6, %v3734_v13 }
 0x26a   :  { %v3702_v23 = vpop.permute.xlu0 %3701 }
 0x26b   :  { %3787 = vst.msk [vmem:[#allocation3 + $0x58] sm:$0xff] %vm3775_vm6, %v3702_v23 }
 0x26c   :  { %v3867_v19 = vpop.permute.xlu1 %3866 }
 0x26d   :  { %3937 = vst.msk [vmem:[#allocation3 + $0xd0] sm:$0xff] %vm3910_vm7, %v3867_v19 }
 0x26e   :  { %v3835_v60 = vpop.permute.xlu0 %3834 }
 0x26f   :  { %3921 = vst.msk [vmem:[#allocation3 + $0x50] sm:$0xff] %vm3910_vm7, %v3835_v60 }
 0x270   :  { %v3869_v1 = vpop.permute.xlu1 %3868 }
 0x271   :  { %3938 = vst.msk [vmem:[#allocation3 + $0xd8] sm:$0xff] %vm3910_vm7, %v3869_v1 }
 0x272   :  { %v3837_v63 = vpop.permute.xlu0 %3836 }
 0x273   :  { %3922 = vst.msk [vmem:[#allocation3 + $0x58] sm:$0xff] %vm3910_vm7, %v3837_v63 }
 0x274   :  { %v4002_v2 = vpop.permute.xlu1 %4001 }
 0x275   :  { %4072 = vst.msk [vmem:[#allocation3 + $0xd0] sm:$0xff] %vm4045_vm8, %v4002_v2 }
 0x276   :  { %v3970_v7 = vpop.permute.xlu0 %3969 }
 0x277   :  { %4056 = vst.msk [vmem:[#allocation3 + $0x50] sm:$0xff] %vm4045_vm8, %v3970_v7 }
 0x278   :  { %v4004_v24 = vpop.permute.xlu1 %4003 }
 0x279   :  { %4073 = vst.msk [vmem:[#allocation3 + $0xd8] sm:$0xff] %vm4045_vm8, %v4004_v24 }
 0x27a   :  { %v3972_v38 = vpop.permute.xlu0 %3971 }
 0x27b   :  { %4057 = vst.msk [vmem:[#allocation3 + $0x58] sm:$0xff] %vm4045_vm8, %v3972_v38 }
 0x27c   :  { %v2772_v55 = vpop.permute.xlu1 %2771  ;;  %v4862_v36 = vpop.f32.mrb[0].mxu1  ;;  %v4110_v10 = vld [vmem:[#allocation3 + $0xd0] sm:$0xff] }
 0x27d   :  { %2839 = vst.msk [vmem:[#allocation3 + $0xe8] sm:$0xff] %vm2809_vm2, %v2772_v55  ;;  %v4409_v11 = vadd.f32 %v4862_v36, %v7334_v0  ;;  %v4400_v21 = vpop.f32.mrb[1].mxu1  ;;  %4880 = vmatprep.mubr.msk.bf16.mxu1 %vm4137_vm9, %v4110_v10 }
 0x27e   :  { %v4401_v26 = vadd.f32 %v7334_v0, %v4400_v21  ;;  %v4863_v29 = vpop.f32.mrb[2].mxu1  ;;  %v2770_v16 = vpop.permute.xlu0 %2769  ;;  %v4094_v22 = vld [vmem:[#allocation3 + $0x50] sm:$0xff] }
 0x27f   :  { %4561 = vst [vmem:[#allocation4 + $0x110] sm:$0xff] %v4409_v11  ;;  %v4830_v32 = vpop.f32.mrb[0].mxu0  ;;  %v4412_v47 = vadd.f32 %v4863_v29, %v7334_v0  ;;  %2838 = vst.msk [vmem:[#allocation3 + $0xe0] sm:$0xff] %vm2809_vm2, %v2770_v16  ;;  %4848 = vmatprep.mubr.msk.bf16.mxu0 %vm4137_vm9, %v4094_v22  ;;  %v4403_v25 = vpop.f32.mrb[3].mxu1 }
 0x280   :  { %v4281_v59 = vadd.f32 %v4830_v32, %v7334_v0  ;;  %v4272_v5 = vpop.f32.mrb[1].mxu0  ;;  %4559 = vst [vmem:[#allocation4 + $0x100] sm:$0xff] %v4401_v26  ;;  %v4111_v49 = vld [vmem:[#allocation3 + $0xd8] sm:$0xff]  ;;  %v4404_v20 = vadd.f32 %v7334_v0, %v4403_v25  ;;  %v2905_v53 = vpop.permute.xlu1 %2904 }
 0x281   :  { %v4273_v45 = vadd.f32 %v7334_v0, %v4272_v5  ;;  %v4831_v9 = vpop.f32.mrb[2].mxu0  ;;  %4562 = vst [vmem:[#allocation4 + $0x118] sm:$0xff] %v4412_v47  ;;  %4881 = vmatmul.mubr.msk.bf16.gmra.mrb[20].mxu1 %vm4137_vm9, %v4111_v49  ;;  %2973 = vst.msk [vmem:[#allocation3 + $0xe0] sm:$0xff] %vm2944_vm3, %v2905_v53 }
 0x282   :  { %4529 = vst [vmem:[#allocation4 + $0x10] sm:$0xff] %v4281_v59  ;;  %v4284_v6 = vadd.f32 %v4831_v9, %v7334_v0  ;;  %v4275_v44 = vpop.f32.mrb[3].mxu0  ;;  %4560 = vst [vmem:[#allocation4 + $0x108] sm:$0xff] %v4404_v20  ;;  %v2873_v58 = vpop.permute.xlu0 %2872  ;;  %v4095_v62 = vld [vmem:[#allocation3 + $0x58] sm:$0xff] }
 0x283   :  { %4527 = vst [vmem:[#allocation4] sm:$0xff] %v4273_v45  ;;  %v4276_v50 = vadd.f32 %v7334_v0, %v4275_v44  ;;  %2957 = vst.msk [vmem:[#allocation3 + $0x60] sm:$0xff] %vm2944_vm3, %v2873_v58  ;;  %4849 = vmatmul.mubr.msk.bf16.gmra.mrb[20].mxu0 %vm4137_vm9, %v4095_v62 }
 0x284   :  { %4530 = vst [vmem:[#allocation4 + $0x18] sm:$0xff] %v4284_v6  ;;  %v2907_v31 = vpop.permute.xlu1 %2906 }
 0x285   :  { %4528 = vst [vmem:[#allocation4 + $0x8] sm:$0xff] %v4276_v50  ;;  %2974 = vst.msk [vmem:[#allocation3 + $0xe8] sm:$0xff] %vm2944_vm3, %v2907_v31 }
 0x286   :  { %v2875_v35 = vpop.permute.xlu0 %2874 }
 0x287   :  { %2958 = vst.msk [vmem:[#allocation3 + $0x68] sm:$0xff] %vm2944_vm3, %v2875_v35 }
 0x288   :  { %v3040_v8 = vpop.permute.xlu1 %3039 }
 0x289   :  { %3108 = vst.msk [vmem:[#allocation3 + $0xe0] sm:$0xff] %vm3079_vm4, %v3040_v8 }
 0x28a   :  { %v3008_v37 = vpop.permute.xlu0 %3007 }
 0x28b   :  { %3092 = vst.msk [vmem:[#allocation3 + $0x60] sm:$0xff] %vm3079_vm4, %v3008_v37 }
 0x28c   :  { %v3042_v4 = vpop.permute.xlu1 %3041 }
 0x28d   :  { %3109 = vst.msk [vmem:[#allocation3 + $0xe8] sm:$0xff] %vm3079_vm4, %v3042_v4 }
 0x28e   :  { %v3010_v33 = vpop.permute.xlu0 %3009 }
 0x28f   :  { %3093 = vst.msk [vmem:[#allocation3 + $0x68] sm:$0xff] %vm3079_vm4, %v3010_v33 }
 0x290   :  { %v3736_v39 = vpop.permute.xlu1 %3735 }
 0x291   :  { %3804 = vst.msk [vmem:[#allocation3 + $0xe0] sm:$0xff] %vm3775_vm6, %v3736_v39 }
 0x292   :  { %v3704_v57 = vpop.permute.xlu0 %3703 }
 0x293   :  { %3788 = vst.msk [vmem:[#allocation3 + $0x60] sm:$0xff] %vm3775_vm6, %v3704_v57 }
 0x294   :  { %v3738_v51 = vpop.permute.xlu1 %3737 }
 0x295   :  { %3805 = vst.msk [vmem:[#allocation3 + $0xe8] sm:$0xff] %vm3775_vm6, %v3738_v51 }
 0x296   :  { %v3706_v41 = vpop.permute.xlu0 %3705 }
 0x297   :  { %3789 = vst.msk [vmem:[#allocation3 + $0x68] sm:$0xff] %vm3775_vm6, %v3706_v41 }
 0x298   :  { %v3871_v27 = vpop.permute.xlu1 %3870 }
 0x299   :  { %3939 = vst.msk [vmem:[#allocation3 + $0xe0] sm:$0xff] %vm3910_vm7, %v3871_v27 }
 0x29a   :  { %v3839_v61 = vpop.permute.xlu0 %3838 }
 0x29b   :  { %3923 = vst.msk [vmem:[#allocation3 + $0x60] sm:$0xff] %vm3910_vm7, %v3839_v61 }
 0x29c   :  { %v3873_v48 = vpop.permute.xlu1 %3872 }
 0x29d   :  { %3940 = vst.msk [vmem:[#allocation3 + $0xe8] sm:$0xff] %vm3910_vm7, %v3873_v48 }
 0x29e   :  { %v3841_v56 = vpop.permute.xlu0 %3840 }
 0x29f   :  { %3924 = vst.msk [vmem:[#allocation3 + $0x68] sm:$0xff] %vm3910_vm7, %v3841_v56 }
 0x2a0   :  { %v4006_v30 = vpop.permute.xlu1 %4005 }
 0x2a1   :  { %4074 = vst.msk [vmem:[#allocation3 + $0xe0] sm:$0xff] %vm4045_vm8, %v4006_v30 }
 0x2a2   :  { %v3974_v17 = vpop.permute.xlu0 %3973 }
 0x2a3   :  { %4058 = vst.msk [vmem:[#allocation3 + $0x60] sm:$0xff] %vm4045_vm8, %v3974_v17 }
 0x2a4   :  { %v4866_v42 = vpop.f32.mrb[4].mxu1  ;;  %v4008_v54 = vpop.permute.xlu1 %4007 }
 0x2a5   :  { %v4425_v14 = vadd.f32 %v4866_v42, %v7334_v0  ;;  %v4416_v34 = vpop.f32.mrb[5].mxu1  ;;  %4075 = vst.msk [vmem:[#allocation3 + $0xe8] sm:$0xff] %vm4045_vm8, %v4008_v54 }
 0x2a6   :  { %v4417_v40 = vadd.f32 %v7334_v0, %v4416_v34  ;;  %v4867_v3 = vpop.f32.mrb[6].mxu1  ;;  %v3976_v43 = vpop.permute.xlu0 %3975 }
 0x2a7   :  { %4565 = vst [vmem:[#allocation4 + $0x130] sm:$0xff] %v4425_v14  ;;  %v4834_v52 = vpop.f32.mrb[4].mxu0  ;;  %v4428_v15 = vadd.f32 %v4867_v3, %v7334_v0  ;;  %4059 = vst.msk [vmem:[#allocation3 + $0x68] sm:$0xff] %vm4045_vm8, %v3976_v43  ;;  %v4419_v28 = vpop.f32.mrb[7].mxu1 }
 0x2a8   :  { %v4297_v18 = vadd.f32 %v4834_v52, %v7334_v0  ;;  %v4288_v46 = vpop.f32.mrb[5].mxu0  ;;  %4563 = vst [vmem:[#allocation4 + $0x120] sm:$0xff] %v4417_v40  ;;  %v4420_v23 = vadd.f32 %v7334_v0, %v4419_v28  ;;  %v2776_v19 = vpop.permute.xlu1 %2775  ;;  %v4112_v60 = vld [vmem:[#allocation3 + $0xe0] sm:$0xff] }
 0x2a9   :  { %v4289_v12 = vadd.f32 %v7334_v0, %v4288_v46  ;;  %v4835_v13 = vpop.f32.mrb[6].mxu0  ;;  %4566 = vst [vmem:[#allocation4 + $0x138] sm:$0xff] %v4428_v15  ;;  %2841 = vst.msk [vmem:[#allocation3 + $0xf8] sm:$0xff] %vm2809_vm2, %v2776_v19  ;;  %4884 = vmatprep.mubr.msk.bf16.mxu1 %vm4137_vm9, %v4112_v60 }
 0x2aa   :  { %4533 = vst [vmem:[#allocation4 + $0x30] sm:$0xff] %v4297_v18  ;;  %v4300_v1 = vadd.f32 %v4835_v13, %v7334_v0  ;;  %v4291_v63 = vpop.f32.mrb[7].mxu0  ;;  %4564 = vst [vmem:[#allocation4 + $0x128] sm:$0xff] %v4420_v23  ;;  %v2774_v7 = vpop.permute.xlu0 %2773  ;;  %v4096_v24 = vld [vmem:[#allocation3 + $0x60] sm:$0xff] }
 0x2ab   :  { %4531 = vst [vmem:[#allocation4 + $0x20] sm:$0xff] %v4289_v12  ;;  %v4292_v2 = vadd.f32 %v7334_v0, %v4291_v63  ;;  %2840 = vst.msk [vmem:[#allocation3 + $0xf0] sm:$0xff] %vm2809_vm2, %v2774_v7  ;;  %4852 = vmatprep.mubr.msk.bf16.mxu0 %vm4137_vm9, %v4096_v24 }
 0x2ac   :  { %4534 = vst [vmem:[#allocation4 + $0x38] sm:$0xff] %v4300_v1  ;;  %v2909_v38 = vpop.permute.xlu1 %2908  ;;  %v4113_v55 = vld [vmem:[#allocation3 + $0xe8] sm:$0xff] }
 0x2ad   :  { %4532 = vst [vmem:[#allocation4 + $0x28] sm:$0xff] %v4292_v2  ;;  %2975 = vst.msk [vmem:[#allocation3 + $0xf0] sm:$0xff] %vm2944_vm3, %v2909_v38  ;;  %4885 = vmatmul.mubr.msk.bf16.gmra.mrb[24].mxu1 %vm4137_vm9, %v4113_v55 }
 0x2ae   :  { %v2877_v36 = vpop.permute.xlu0 %2876  ;;  %v4097_v10 = vld [vmem:[#allocation3 + $0x68] sm:$0xff] }
 0x2af   :  { %2959 = vst.msk [vmem:[#allocation3 + $0x70] sm:$0xff] %vm2944_vm3, %v2877_v36  ;;  %4853 = vmatmul.mubr.msk.bf16.gmra.mrb[24].mxu0 %vm4137_vm9, %v4097_v10 }
 0x2b0   :  { %v2911_v11 = vpop.permute.xlu1 %2910 }
 0x2b1   :  { %2976 = vst.msk [vmem:[#allocation3 + $0xf8] sm:$0xff] %vm2944_vm3, %v2911_v11 }
 0x2b2   :  { %v2879_v21 = vpop.permute.xlu0 %2878 }
 0x2b3   :  { %2960 = vst.msk [vmem:[#allocation3 + $0x78] sm:$0xff] %vm2944_vm3, %v2879_v21 }
 0x2b4   :  { %v3044_v26 = vpop.permute.xlu1 %3043 }
 0x2b5   :  { %3110 = vst.msk [vmem:[#allocation3 + $0xf0] sm:$0xff] %vm3079_vm4, %v3044_v26 }
 0x2b6   :  { %v3012_v29 = vpop.permute.xlu0 %3011 }
 0x2b7   :  { %3094 = vst.msk [vmem:[#allocation3 + $0x70] sm:$0xff] %vm3079_vm4, %v3012_v29 }
 0x2b8   :  { %v3046_v16 = vpop.permute.xlu1 %3045 }
 0x2b9   :  { %3111 = vst.msk [vmem:[#allocation3 + $0xf8] sm:$0xff] %vm3079_vm4, %v3046_v16 }
 0x2ba   :  { %v3014_v32 = vpop.permute.xlu0 %3013 }
 0x2bb   :  { %3095 = vst.msk [vmem:[#allocation3 + $0x78] sm:$0xff] %vm3079_vm4, %v3014_v32 }
 0x2bc   :  { %v3740_v22 = vpop.permute.xlu1 %3739 }
 0x2bd   :  { %3806 = vst.msk [vmem:[#allocation3 + $0xf0] sm:$0xff] %vm3775_vm6, %v3740_v22 }
 0x2be   :  { %v3708_v47 = vpop.permute.xlu0 %3707 }
 0x2bf   :  { %3790 = vst.msk [vmem:[#allocation3 + $0x70] sm:$0xff] %vm3775_vm6, %v3708_v47 }
 0x2c0   :  { %v3742_v59 = vpop.permute.xlu1 %3741 }
 0x2c1   :  { %3807 = vst.msk [vmem:[#allocation3 + $0xf8] sm:$0xff] %vm3775_vm6, %v3742_v59 }
 0x2c2   :  { %v3710_v5 = vpop.permute.xlu0 %3709 }
 0x2c3   :  { %3791 = vst.msk [vmem:[#allocation3 + $0x78] sm:$0xff] %vm3775_vm6, %v3710_v5 }
 0x2c4   :  { %v3875_v25 = vpop.permute.xlu1 %3874 }
 0x2c5   :  { %3941 = vst.msk [vmem:[#allocation3 + $0xf0] sm:$0xff] %vm3910_vm7, %v3875_v25 }
 0x2c6   :  { %v3843_v49 = vpop.permute.xlu0 %3842 }
 0x2c7   :  { %3925 = vst.msk [vmem:[#allocation3 + $0x70] sm:$0xff] %vm3910_vm7, %v3843_v49 }
 0x2c8   :  { %v3877_v45 = vpop.permute.xlu1 %3876 }
 0x2c9   :  { %3942 = vst.msk [vmem:[#allocation3 + $0xf8] sm:$0xff] %vm3910_vm7, %v3877_v45 }
 0x2ca   :  { %v3845_v9 = vpop.permute.xlu0 %3844 }
 0x2cb   :  { %3926 = vst.msk [vmem:[#allocation3 + $0x78] sm:$0xff] %vm3910_vm7, %v3845_v9 }
 0x2cc   :  { %v4010_v20 = vpop.permute.xlu1 %4009 }
 0x2cd   :  { %4076 = vst.msk [vmem:[#allocation3 + $0xf0] sm:$0xff] %vm4045_vm8, %v4010_v20 }
 0x2ce   :  { %v3978_v53 = vpop.permute.xlu0 %3977 }
 0x2cf   :  { %4060 = vst.msk [vmem:[#allocation3 + $0x70] sm:$0xff] %vm4045_vm8, %v3978_v53 }
 0x2d0   :  { %v4870_v6 = vpop.f32.mrb[8].mxu1  ;;  %v4012_v44 = vpop.permute.xlu1 %4011 }
 0x2d1   :  { %v4441_v50 = vadd.f32 %v4870_v6, %v7334_v0  ;;  %v4432_v58 = vpop.f32.mrb[9].mxu1  ;;  %4077 = vst.msk [vmem:[#allocation3 + $0xf8] sm:$0xff] %vm4045_vm8, %v4012_v44 }
 0x2d2   :  { %v4433_v62 = vadd.f32 %v7334_v0, %v4432_v58  ;;  %v4871_v31 = vpop.f32.mrb[10].mxu1  ;;  %v3980_v35 = vpop.permute.xlu0 %3979 }
 0x2d3   :  { %4569 = vst [vmem:[#allocation4 + $0x150] sm:$0xff] %v4441_v50  ;;  %v4838_v8 = vpop.f32.mrb[8].mxu0  ;;  %v4444_v37 = vadd.f32 %v4871_v31, %v7334_v0  ;;  %4061 = vst.msk [vmem:[#allocation3 + $0x78] sm:$0xff] %vm4045_vm8, %v3980_v35  ;;  %v4435_v39 = vpop.f32.mrb[11].mxu1 }
 0x2d4   :  { %v4313_v4 = vadd.f32 %v4838_v8, %v7334_v0  ;;  %v4304_v33 = vpop.f32.mrb[9].mxu0  ;;  %4567 = vst [vmem:[#allocation4 + $0x140] sm:$0xff] %v4433_v62  ;;  %v4436_v41 = vadd.f32 %v7334_v0, %v4435_v39  ;;  %v4114_v27 = vld [vmem:[#allocation3 + $0xf0] sm:$0xff] }
 0x2d5   :  { %v4305_v57 = vadd.f32 %v7334_v0, %v4304_v33  ;;  %v4839_v51 = vpop.f32.mrb[10].mxu0  ;;  %4570 = vst [vmem:[#allocation4 + $0x158] sm:$0xff] %v4444_v37  ;;  %4888 = vmatprep.mubr.msk.bf16.mxu1 %vm4137_vm9, %v4114_v27 }
 0x2d6   :  { %4537 = vst [vmem:[#allocation4 + $0x50] sm:$0xff] %v4313_v4  ;;  %v4316_v61 = vadd.f32 %v4839_v51, %v7334_v0  ;;  %v4307_v48 = vpop.f32.mrb[11].mxu0  ;;  %4568 = vst [vmem:[#allocation4 + $0x148] sm:$0xff] %v4436_v41  ;;  %v4098_v30 = vld [vmem:[#allocation3 + $0x70] sm:$0xff] }
 0x2d7   :  { %4535 = vst [vmem:[#allocation4 + $0x40] sm:$0xff] %v4305_v57  ;;  %v4308_v56 = vadd.f32 %v7334_v0, %v4307_v48  ;;  %4856 = vmatprep.mubr.msk.bf16.mxu0 %vm4137_vm9, %v4098_v30 }
 0x2d8   :  { %4538 = vst [vmem:[#allocation4 + $0x58] sm:$0xff] %v4316_v61  ;;  %v4115_v17 = vld [vmem:[#allocation3 + $0xf8] sm:$0xff] }
 0x2d9   :  { %4536 = vst [vmem:[#allocation4 + $0x48] sm:$0xff] %v4308_v56  ;;  %4889 = vmatmul.mubr.msk.bf16.gmra.mrb[28].mxu1 %vm4137_vm9, %v4115_v17 }
 0x2da   :  { %v4099_v42 = vld [vmem:[#allocation3 + $0x78] sm:$0xff] }
 0x2db   :  { %4857 = vmatmul.mubr.msk.bf16.gmra.mrb[28].mxu0 %vm4137_vm9, %v4099_v42 }
 0x2fc   :  { %v4874_v54 = vpop.f32.mrb[12].mxu1 }
 0x2fd   :  { %v4457_v14 = vadd.f32 %v4874_v54, %v7334_v0  ;;  %v4448_v34 = vpop.f32.mrb[13].mxu1 }
 0x2fe   :  { %v4449_v40 = vadd.f32 %v7334_v0, %v4448_v34  ;;  %v4875_v3 = vpop.f32.mrb[14].mxu1  ;;  %v4842_v43 = vpop.f32.mrb[12].mxu0 }
 0x2ff   :  { %4573 = vst [vmem:[#allocation4 + $0x170] sm:$0xff] %v4457_v14  ;;  %v4460_v52 = vadd.f32 %v4875_v3, %v7334_v0  ;;  %v4451_v15 = vpop.f32.mrb[15].mxu1  ;;  %v4329_v18 = vadd.f32 %v4842_v43, %v7334_v0  ;;  %v4320_v46 = vpop.f32.mrb[13].mxu0 }
 0x300   :  { %4571 = vst [vmem:[#allocation4 + $0x160] sm:$0xff] %v4449_v40  ;;  %v4452_v28 = vadd.f32 %v7334_v0, %v4451_v15  ;;  %v4321_v12 = vadd.f32 %v7334_v0, %v4320_v46  ;;  %v4843_v13 = vpop.f32.mrb[14].mxu0 }
 0x301   :  { %4574 = vst [vmem:[#allocation4 + $0x178] sm:$0xff] %v4460_v52  ;;  %4541 = vst [vmem:[#allocation4 + $0x70] sm:$0xff] %v4329_v18  ;;  %v4332_v23 = vadd.f32 %v4843_v13, %v7334_v0  ;;  %v4323_v19 = vpop.f32.mrb[15].mxu0 }
 0x302   :  { %4572 = vst [vmem:[#allocation4 + $0x168] sm:$0xff] %v4452_v28  ;;  %4539 = vst [vmem:[#allocation4 + $0x60] sm:$0xff] %v4321_v12  ;;  %v4324_v60 = vadd.f32 %v7334_v0, %v4323_v19 }
 0x303   :  { %4542 = vst [vmem:[#allocation4 + $0x78] sm:$0xff] %v4332_v23 }
 0x304   :  { %4540 = vst [vmem:[#allocation4 + $0x68] sm:$0xff] %v4324_v60 }
 0x328   :  { %v4878_v1 = vpop.f32.mrb[16].mxu1 }
 0x329   :  { %v4473_v63 = vadd.f32 %v4878_v1, %v7334_v0  ;;  %v4464_v2 = vpop.f32.mrb[17].mxu1 }
 0x32a   :  { %v4465_v7 = vadd.f32 %v7334_v0, %v4464_v2  ;;  %v4879_v24 = vpop.f32.mrb[18].mxu1  ;;  %v4846_v38 = vpop.f32.mrb[16].mxu0 }
 0x32b   :  { %4577 = vst [vmem:[#allocation4 + $0x190] sm:$0xff] %v4473_v63  ;;  %v4476_v55 = vadd.f32 %v4879_v24, %v7334_v0  ;;  %v4467_v36 = vpop.f32.mrb[19].mxu1  ;;  %v4345_v10 = vadd.f32 %v4846_v38, %v7334_v0  ;;  %v4336_v11 = vpop.f32.mrb[17].mxu0 }
 0x32c   :  { %4575 = vst [vmem:[#allocation4 + $0x180] sm:$0xff] %v4465_v7  ;;  %v4468_v21 = vadd.f32 %v7334_v0, %v4467_v36  ;;  %v4337_v26 = vadd.f32 %v7334_v0, %v4336_v11  ;;  %v4847_v29 = vpop.f32.mrb[18].mxu0 }
 0x32d   :  { %4578 = vst [vmem:[#allocation4 + $0x198] sm:$0xff] %v4476_v55  ;;  %4545 = vst [vmem:[#allocation4 + $0x90] sm:$0xff] %v4345_v10  ;;  %v4348_v16 = vadd.f32 %v4847_v29, %v7334_v0  ;;  %v4339_v32 = vpop.f32.mrb[19].mxu0 }
 0x32e   :  { %4576 = vst [vmem:[#allocation4 + $0x188] sm:$0xff] %v4468_v21  ;;  %4543 = vst [vmem:[#allocation4 + $0x80] sm:$0xff] %v4337_v26  ;;  %v4340_v22 = vadd.f32 %v7334_v0, %v4339_v32 }
 0x32f   :  { %4546 = vst [vmem:[#allocation4 + $0x98] sm:$0xff] %v4348_v16 }
 0x330   :  { %4544 = vst [vmem:[#allocation4 + $0x88] sm:$0xff] %v4340_v22 }
 0x354   :  { %v4882_v47 = vpop.f32.mrb[20].mxu1 }
 0x355   :  { %v4489_v59 = vadd.f32 %v4882_v47, %v7334_v0  ;;  %v4480_v5 = vpop.f32.mrb[21].mxu1 }
 0x356   :  { %v4481_v25 = vadd.f32 %v7334_v0, %v4480_v5  ;;  %v4883_v49 = vpop.f32.mrb[22].mxu1  ;;  %v4850_v45 = vpop.f32.mrb[20].mxu0 }
 0x357   :  { %4581 = vst [vmem:[#allocation4 + $0x1b0] sm:$0xff] %v4489_v59  ;;  %v4492_v9 = vadd.f32 %v4883_v49, %v7334_v0  ;;  %v4483_v20 = vpop.f32.mrb[23].mxu1  ;;  %v4361_v53 = vadd.f32 %v4850_v45, %v7334_v0  ;;  %v4352_v6 = vpop.f32.mrb[21].mxu0 }
 0x358   :  { %4579 = vst [vmem:[#allocation4 + $0x1a0] sm:$0xff] %v4481_v25  ;;  %v4484_v44 = vadd.f32 %v7334_v0, %v4483_v20  ;;  %v4353_v50 = vadd.f32 %v7334_v0, %v4352_v6  ;;  %v4851_v58 = vpop.f32.mrb[22].mxu0 }
 0x359   :  { %4582 = vst [vmem:[#allocation4 + $0x1b8] sm:$0xff] %v4492_v9  ;;  %4549 = vst [vmem:[#allocation4 + $0xb0] sm:$0xff] %v4361_v53  ;;  %v4364_v62 = vadd.f32 %v4851_v58, %v7334_v0  ;;  %v4355_v31 = vpop.f32.mrb[23].mxu0 }
 0x35a   :  { %4580 = vst [vmem:[#allocation4 + $0x1a8] sm:$0xff] %v4484_v44  ;;  %4547 = vst [vmem:[#allocation4 + $0xa0] sm:$0xff] %v4353_v50  ;;  %v4356_v35 = vadd.f32 %v7334_v0, %v4355_v31 }
 0x35b   :  { %4550 = vst [vmem:[#allocation4 + $0xb8] sm:$0xff] %v4364_v62 }
 0x35c   :  { %4548 = vst [vmem:[#allocation4 + $0xa8] sm:$0xff] %v4356_v35 }
 0x380   :  { %v4886_v8 = vpop.f32.mrb[24].mxu1 }
 0x381   :  { %v4505_v37 = vadd.f32 %v4886_v8, %v7334_v0  ;;  %v4496_v4 = vpop.f32.mrb[25].mxu1 }
 0x382   :  { %v4854_v33 = vpop.f32.mrb[24].mxu0  ;;  %v4497_v39 = vadd.f32 %v7334_v0, %v4496_v4  ;;  %v4887_v57 = vpop.f32.mrb[26].mxu1 }
 0x383   :  { %v4377_v51 = vadd.f32 %v4854_v33, %v7334_v0  ;;  %4585 = vst [vmem:[#allocation4 + $0x1d0] sm:$0xff] %v4505_v37  ;;  %v4368_v41 = vpop.f32.mrb[25].mxu0  ;;  %v4508_v27 = vadd.f32 %v4887_v57, %v7334_v0  ;;  %v4499_v61 = vpop.f32.mrb[27].mxu1 }
 0x384   :  { %v4369_v48 = vadd.f32 %v7334_v0, %v4368_v41  ;;  %4583 = vst [vmem:[#allocation4 + $0x1c0] sm:$0xff] %v4497_v39  ;;  %v4855_v56 = vpop.f32.mrb[26].mxu0  ;;  %v4500_v30 = vadd.f32 %v7334_v0, %v4499_v61 }
 0x385   :  { %4553 = vst [vmem:[#allocation4 + $0xd0] sm:$0xff] %v4377_v51  ;;  %v4380_v17 = vadd.f32 %v4855_v56, %v7334_v0  ;;  %4586 = vst [vmem:[#allocation4 + $0x1d8] sm:$0xff] %v4508_v27  ;;  %v4371_v42 = vpop.f32.mrb[27].mxu0 }
 0x386   :  { %4551 = vst [vmem:[#allocation4 + $0xc0] sm:$0xff] %v4369_v48  ;;  %v4372_v54 = vadd.f32 %v7334_v0, %v4371_v42  ;;  %4584 = vst [vmem:[#allocation4 + $0x1c8] sm:$0xff] %v4500_v30 }
 0x387   :  { %4554 = vst [vmem:[#allocation4 + $0xd8] sm:$0xff] %v4380_v17 }
 0x388   :  { %4552 = vst [vmem:[#allocation4 + $0xc8] sm:$0xff] %v4372_v54 }
 0x3ac   :  { %v4890_v14 = vpop.f32.mrb[28].mxu1 }
 0x3ad   :  { %v4521_v34 = vadd.f32 %v4890_v14, %v7334_v0  ;;  %v4512_v40 = vpop.f32.mrb[29].mxu1 }
 0x3ae   :  { %v4858_v3 = vpop.f32.mrb[28].mxu0  ;;  %v4513_v43 = vadd.f32 %v7334_v0, %v4512_v40  ;;  %v4891_v52 = vpop.f32.mrb[30].mxu1 }
 0x3af   :  { %v4393_v15 = vadd.f32 %v4858_v3, %v7334_v0  ;;  %4589 = vst [vmem:[#allocation4 + $0x1f0] sm:$0xff] %v4521_v34  ;;  %v4384_v18 = vpop.f32.mrb[29].mxu0  ;;  %v4524_v46 = vadd.f32 %v4891_v52, %v7334_v0  ;;  %v4515_v28 = vpop.f32.mrb[31].mxu1 }
 0x3b0   :  { %v4385_v12 = vadd.f32 %v7334_v0, %v4384_v18  ;;  %4587 = vst [vmem:[#allocation4 + $0x1e0] sm:$0xff] %v4513_v43  ;;  %v4859_v13 = vpop.f32.mrb[30].mxu0  ;;  %v4516_v23 = vadd.f32 %v7334_v0, %v4515_v28 }
 0x3b1   :  { %4557 = vst [vmem:[#allocation4 + $0xf0] sm:$0xff] %v4393_v15  ;;  %v4396_v19 = vadd.f32 %v4859_v13, %v7334_v0  ;;  %4590 = vst [vmem:[#allocation4 + $0x1f8] sm:$0xff] %v4524_v46  ;;  %v4387_v60 = vpop.f32.mrb[31].mxu0 }
 0x3b2   :  { %4555 = vst [vmem:[#allocation4 + $0xe0] sm:$0xff] %v4385_v12  ;;  %v4388_v1 = vadd.f32 %v7334_v0, %v4387_v60  ;;  %4588 = vst [vmem:[#allocation4 + $0x1e8] sm:$0xff] %v4516_v23 }
 0x3b3   :  { %4558 = vst [vmem:[#allocation4 + $0xf8] sm:$0xff] %v4396_v19 }
 0x3b4   :  { %4556 = vst [vmem:[#allocation4 + $0xe8] sm:$0xff] %v4388_v1 }
 0x3b5   :  { %4962 = shalt.err (!%p4959_p4)
}
 0x3b6   :  { %s4963_s26 = scalar_lea.hbm %s7473_s3, 8192 }
 0x3b7   :  { %p4964_p5 = scmp.ne.s32.totalorder %s7473_s3, %s4963_s26  ;;  %p4967_p6 = scmp.lt.u32.totalorder %s4963_s26, %s7473_s3 }
 0x3b9   :  { %p4969_p7 = pnand %p4967_p6, %p4964_p5 }
 0x3bb   :  { %4972 = shalt.err (!%p4969_p7)
}
 0x3bc   :  { %s4985_s4 = smov 128  }
 0x3bd   :  { %4602 = dma.vmem_to_hbm [thread:$0]  %s4597_s22, 8192, %s7473_s3, [#allocation5], %s4985_s4, %s4985_s4, %s4981_s11  }
 0x3be   :  { %4973 = dma.done.wait [#allocation5], 8192  }
 0x3bf   :  { %4974 = vsyncadd [#allocation5], 4294959104 }
 0x3c0   :  { %4606 = vsyncpa [#allocation5], 1 }

</bundles_post_ra>
